<compile_context>
chip_gen: v7x
topology: tpu7x:2x2x1
jax: 0.10.0
libtpu: 0.0.40
codegen_flags: <defaults>
</compile_context>

<pallas_src>
import numpy as np
import jax
import jax.numpy as jnp
from jax import lax
from jax.experimental import pallas as pl
from jax.experimental.pallas import tpu as pltpu


# ----------------------------- Fused kernel --------------------------------

def _lstm2_fused_kernel(xw1_ref, xw2_ref, whh1_ref, whh2_ref,
                        w1a_ref, w1b_ref, b1_ref, w2_ref, b2_ref,
                        o_ref, h1_sc, c1_sc, h2_sc, c2_sc):
    # xw*_ref:  (T, B, 4H)  precomputed x_t @ W_ih^T + (b_ih + b_hh)
    # whh*_ref: (H, 4H)     hidden->gates weight (pre-transposed)
    # w1a/w1b:  (H, H)      linear1 weight split over the concat halves
    # b1_ref:   (1, H)
    # w2_ref:   (H, 1), b2_ref: (1, 1)
    # o_ref:    (B, 1)
    T = xw1_ref.shape[0]
    H = h1_sc.shape[1]

    h1_sc[...] = jnp.zeros_like(h1_sc)
    c1_sc[...] = jnp.zeros_like(c1_sc)
    h2_sc[...] = jnp.zeros_like(h2_sc)
    c2_sc[...] = jnp.zeros_like(c2_sc)

    def cell(gates, c):
        # PyTorch gate order [i, f, g, o]; H-aligned slices -> clean vreg tiles.
        i_g = jax.nn.sigmoid(gates[:, 0:H])
        f_g = jax.nn.sigmoid(gates[:, H:2 * H])
        g_g = jnp.tanh(gates[:, 2 * H:3 * H])
        o_g = jax.nn.sigmoid(gates[:, 3 * H:4 * H])
        c_new = f_g * c + i_g * g_g
        h_new = o_g * jnp.tanh(c_new)
        return h_new, c_new

    def step(t, carry):
        # The two recurrences are independent -> their MXU pushes can overlap.
        gates1 = xw1_ref[t] + jnp.dot(h1_sc[...], whh1_ref[...],
                                      preferred_element_type=jnp.float32)
        gates2 = xw2_ref[t] + jnp.dot(h2_sc[...], whh2_ref[...],
                                      preferred_element_type=jnp.float32)
        h1n, c1n = cell(gates1, c1_sc[...])
        h2n, c2n = cell(gates2, c2_sc[...])
        h1_sc[...] = h1n
        c1_sc[...] = c1n
        h2_sc[...] = h2n
        c2_sc[...] = c2n
        return carry

    # T is static and tiny -> fully unroll for cross-iteration scheduling.
    lax.fori_loop(0, T, step, 0, unroll=True)

    # Head: leaky_relu(concat(h1,h2) @ W1^T + b1) @ W2^T + b2, with W1 split so
    # no in-kernel concat is needed.
    z = (jnp.dot(h1_sc[...], w1a_ref[...], preferred_element_type=jnp.float32)
         + jnp.dot(h2_sc[...], w1b_ref[...], preferred_element_type=jnp.float32)
         + b1_ref[...])
    z = jnp.where(z >= 0, z, 0.01 * z)          # F.leaky_relu default slope
    o_ref[...] = (jnp.dot(z, w2_ref[...], preferred_element_type=jnp.float32)
                  + b2_ref[...])


# ------------------------------ Wrapper -------------------------------------

def _precompute_xw(x_bti, w_ih, b_ih, b_hh):
    """(B,T,I) batch_first -> (T,B,4H) = x_t @ W_ih^T + (b_ih+b_hh)."""
    x_tbi = jnp.transpose(x_bti, (1, 0, 2)).astype(jnp.float32)   # (T, B, I)
    w = jnp.asarray(w_ih, jnp.float32).T                          # (I, 4H)
    b = (b_ih + b_hh).astype(jnp.float32)                         # (4H,)
    return jnp.einsum('tbi,ig->tbg', x_tbi, w) + b                # (T, B, 4H)


@jax.jit
def lstm2_forward(params, input_seq1, input_seq2):
    B, T, _ = input_seq1.shape
    H = params["w_hh1"].shape[1]

    xw1 = _precompute_xw(input_seq1, params["w_ih1"],
                         params["b_ih1"], params["b_hh1"])
    xw2 = _precompute_xw(input_seq2, params["w_ih2"],
                         params["b_ih2"], params["b_hh2"])

    whh1 = jnp.asarray(params["w_hh1"], jnp.float32).T            # (H, 4H)
    whh2 = jnp.asarray(params["w_hh2"], jnp.float32).T            # (H, 4H)

    w1 = jnp.asarray(params["w1"], jnp.float32)                   # (H, 2H)
    w1a = w1[:, :H].T                                             # (H, H)
    w1b = w1[:, H:].T                                             # (H, H)
    b1r = jnp.asarray(params["b1"], jnp.float32).reshape(1, H)
    w2t = jnp.asarray(params["w2"], jnp.float32).T                # (H, 1)
    b2r = jnp.asarray(params["b2"], jnp.float32).reshape(1, 1)

    return pl.pallas_call(
        _lstm2_fused_kernel,
        out_shape=jax.ShapeDtypeStruct((B, 1), jnp.float32),
        scratch_shapes=[pltpu.VMEM((B, H), jnp.float32),   # h1
                        pltpu.VMEM((B, H), jnp.float32),   # c1
                        pltpu.VMEM((B, H), jnp.float32),   # h2
                        pltpu.VMEM((B, H), jnp.float32)],  # c2
    )(xw1, xw2, whh1, whh2, w1a, w1b, b1r, w2t, b2r)


# --------------------------- Pure-JAX reference ----------------------------

def _lstm_ref(x, w_ih, w_hh, b_ih, b_hh):
    B, T, I = x.shape
    H = w_hh.shape[1]

    def step(carry, x_t):
        h, c = carry
        gates = x_t @ w_ih.T + h @ w_hh.T + b_ih + b_hh
        i, f, g, o = jnp.split(gates, 4, axis=1)
        i, f, o = jax.nn.sigmoid(i), jax.nn.sigmoid(f), jax.nn.sigmoid(o)
        g = jnp.tanh(g)
        c = f * c + i * g
        h = o * jnp.tanh(c)
        return (h, c), None

    init = (jnp.zeros((B, H), jnp.float32), jnp.zeros((B, H), jnp.float32))
    (h, _), _ = lax.scan(step, init, jnp.transpose(x, (1, 0, 2)))
    return h


def _forward_ref(params, x1, x2):
    h1 = _lstm_ref(x1, params["w_ih1"], params["w_hh1"],
                   params["b_ih1"], params["b_hh1"])
    h2 = _lstm_ref(x2, params["w_ih2"], params["w_hh2"],
                   params["b_ih2"], params["b_hh2"])
    h = jnp.concatenate([h1, h2], axis=1)
    z = h @ params["w1"].T + params["b1"]
    z = jnp.where(z >= 0, z, 0.01 * z)
    return z @ params["w2"].T + params["b2"]


# --------------------------------- Main -------------------------------------

if __name__ == "__main__":
    B, T, I, H = 8, 8, 1, 128

    key = jax.random.PRNGKey(0)
    ks = jax.random.split(key, 13)
    s = 1.0 / jnp.sqrt(H)   # PyTorch-style uniform(-1/sqrt(H), 1/sqrt(H))

    def u(k, shape):
        return jax.random.uniform(k, shape, jnp.float32, -s, s)

    params = {
        # lstm1 (PyTorch shapes: w_ih (4H, I), w_hh (4H, H), biases (4H,))
        "w_ih1": u(ks[0], (4 * H, I)), "w_hh1": u(ks[1], (4 * H, H)),
        "b_ih1": u(ks[2], (4 * H,)),   "b_hh1": u(ks[3], (4 * H,)),
        # lstm2
        "w_ih2": u(ks[4], (4 * H, I)), "w_hh2": u(ks[5], (4 * H, H)),
        "b_ih2": u(ks[6], (4 * H,)),   "b_hh2": u(ks[7], (4 * H,)),
        # linear1: (H, 2H), linear2: (1, H)
        "w1": u(ks[8], (H, 2 * H)), "b1": u(ks[9], (H,)),
        "w2": u(ks[10], (1, H)),    "b2": u(ks[11], (1,)),
    }

    x1 = jax.random.normal(jax.random.fold_in(key, 100), (B, T, I), jnp.float32)
    x2 = jax.random.normal(jax.random.fold_in(key, 200), (B, T, I), jnp.float32)

    out = jax.block_until_ready(lstm2_forward(params, x1, x2))
    ref = jax.block_until_ready(_forward_ref(params, x1, x2))

    assert out.shape == (B, 1), out.shape
    np.testing.assert_allclose(np.asarray(out), np.asarray(ref),
                               rtol=1e-4, atol=1e-4)
    print("KERNEL_OK")
</pallas_src>

<mosaic_0001>
module attributes {stable_mosaic.version = 11 : i64} {
  func.func @_lstm2_fused_kernel(%arg0: memref<8x8x512xf32, #tpu.memory_space<vmem>>, %arg1: memref<8x8x512xf32, #tpu.memory_space<vmem>>, %arg2: memref<128x512xf32, #tpu.memory_space<vmem>>, %arg3: memref<128x512xf32, #tpu.memory_space<vmem>>, %arg4: memref<128x128xf32, #tpu.memory_space<vmem>>, %arg5: memref<128x128xf32, #tpu.memory_space<vmem>>, %arg6: memref<1x128xf32, #tpu.memory_space<vmem>>, %arg7: memref<128x1xf32, #tpu.memory_space<vmem>>, %arg8: memref<1x1xf32, #tpu.memory_space<vmem>>, %arg9: memref<8x1xf32, #tpu.memory_space<vmem>>, %arg10: memref<8x128xf32, #tpu.memory_space<vmem>>, %arg11: memref<8x128xf32, #tpu.memory_space<vmem>>, %arg12: memref<8x128xf32, #tpu.memory_space<vmem>>, %arg13: memref<8x128xf32, #tpu.memory_space<vmem>>) attributes {dimension_semantics = [], scalar_prefetch = 0 : i64, scratch_operands = 4 : i64, tpu.core_type = #tpu.core_type<tc>} {
    %cst = arith.constant 0.000000e+00 : f32
    %0 = vector.broadcast %cst : f32 to vector<8x128xf32>
    %c0 = arith.constant 0 : index
    %c0_0 = arith.constant 0 : index
    %1 = vector.load %arg10[%c0, %c0_0] : memref<8x128xf32, #tpu.memory_space<vmem>>, vector<8x128xf32>
    tpu.vector_store %arg10[%c0, %c0_0], %0 {strides = array<i32>} : memref<8x128xf32, #tpu.memory_space<vmem>>, vector<8x128xf32>,
    %cst_1 = arith.constant 0.000000e+00 : f32
    %2 = vector.broadcast %cst_1 : f32 to vector<8x128xf32>
    %c0_2 = arith.constant 0 : index
    %c0_3 = arith.constant 0 : index
    %3 = vector.load %arg11[%c0_2, %c0_3] : memref<8x128xf32, #tpu.memory_space<vmem>>, vector<8x128xf32>
    tpu.vector_store %arg11[%c0_2, %c0_3], %2 {strides = array<i32>} : memref<8x128xf32, #tpu.memory_space<vmem>>, vector<8x128xf32>,
    %cst_4 = arith.constant 0.000000e+00 : f32
    %4 = vector.broadcast %cst_4 : f32 to vector<8x128xf32>
    %c0_5 = arith.constant 0 : index
    %c0_6 = arith.constant 0 : index
    %5 = vector.load %arg12[%c0_5, %c0_6] : memref<8x128xf32, #tpu.memory_space<vmem>>, vector<8x128xf32>
    tpu.vector_store %arg12[%c0_5, %c0_6], %4 {strides = array<i32>} : memref<8x128xf32, #tpu.memory_space<vmem>>, vector<8x128xf32>,
    %cst_7 = arith.constant 0.000000e+00 : f32
    %6 = vector.broadcast %cst_7 : f32 to vector<8x128xf32>
    %c0_8 = arith.constant 0 : index
    %c0_9 = arith.constant 0 : index
    %7 = vector.load %arg13[%c0_8, %c0_9] : memref<8x128xf32, #tpu.memory_space<vmem>>, vector<8x128xf32>
    tpu.vector_store %arg13[%c0_8, %c0_9], %6 {strides = array<i32>} : memref<8x128xf32, #tpu.memory_space<vmem>>, vector<8x128xf32>,
    %c0_i32 = arith.constant 0 : i32
    %8 = arith.index_cast %c0_i32 : i32 to index
    %c0_10 = arith.constant 0 : index
    %c0_11 = arith.constant 0 : index
    %9 = vector.load %arg0[%8, %c0_10, %c0_11] : memref<8x8x512xf32, #tpu.memory_space<vmem>>, vector<1x8x512xf32>
    %10 = vector.shape_cast %9 : vector<1x8x512xf32> to vector<8x512xf32>
    %c0_12 = arith.constant 0 : index
    %c0_13 = arith.constant 0 : index
    %11 = vector.load %arg10[%c0_12, %c0_13] : memref<8x128xf32, #tpu.memory_space<vmem>>, vector<8x128xf32>
    %c0_14 = arith.constant 0 : index
    %c0_15 = arith.constant 0 : index
    %12 = vector.load %arg2[%c0_14, %c0_15] : memref<128x512xf32, #tpu.memory_space<vmem>>, vector<128x512xf32>
    %cst_16 = arith.constant dense<0.000000e+00> : vector<8x512xf32>
    %13 = tpu.matmul %11, %12, %cst_16 {dimension_numbers = #tpu.dot_dimension_numbers<[1], [0], [0], [1], [0, 0, 1, 1], [], []>} : vector<8x128xf32>, vector<128x512xf32>, vector<8x512xf32> -> vector<8x512xf32>
    %14 = arith.addf %10, %13 : vector<8x512xf32>
    %15 = arith.index_cast %c0_i32 : i32 to index
    %c0_17 = arith.constant 0 : index
    %c0_18 = arith.constant 0 : index
    %16 = vector.load %arg1[%15, %c0_17, %c0_18] : memref<8x8x512xf32, #tpu.memory_space<vmem>>, vector<1x8x512xf32>
    %17 = vector.shape_cast %16 : vector<1x8x512xf32> to vector<8x512xf32>
    %c0_19 = arith.constant 0 : index
    %c0_20 = arith.constant 0 : index
    %18 = vector.load %arg12[%c0_19, %c0_20] : memref<8x128xf32, #tpu.memory_space<vmem>>, vector<8x128xf32>
    %c0_21 = arith.constant 0 : index
    %c0_22 = arith.constant 0 : index
    %19 = vector.load %arg3[%c0_21, %c0_22] : memref<128x512xf32, #tpu.memory_space<vmem>>, vector<128x512xf32>
    %cst_23 = arith.constant dense<0.000000e+00> : vector<8x512xf32>
    %20 = tpu.matmul %18, %19, %cst_23 {dimension_numbers = #tpu.dot_dimension_numbers<[1], [0], [0], [1], [0, 0, 1, 1], [], []>} : vector<8x128xf32>, vector<128x512xf32>, vector<8x512xf32> -> vector<8x512xf32>
    %21 = arith.addf %17, %20 : vector<8x512xf32>
    %c0_24 = arith.constant 0 : index
    %c0_25 = arith.constant 0 : index
    %22 = vector.load %arg11[%c0_24, %c0_25] : memref<8x128xf32, #tpu.memory_space<vmem>>, vector<8x128xf32>
    %23 = vector.extract_strided_slice %14 {offsets = [0, 0], sizes = [8, 128], strides = [1, 1]} : vector<8x512xf32> to vector<8x128xf32>
    %24 = arith.negf %23 : vector<8x128xf32>
    %25 = math.exp %24 : vector<8x128xf32>
    %cst_26 = arith.constant 1.000000e+00 : f32
    %26 = vector.broadcast %cst_26 : f32 to vector<8x128xf32>
    %27 = arith.addf %26, %25 : vector<8x128xf32>
    %28 = arith.divf %26, %27 : vector<8x128xf32>
    %29 = vector.extract_strided_slice %14 {offsets = [0, 128], sizes = [8, 128], strides = [1, 1]} : vector<8x512xf32> to vector<8x128xf32>
    %30 = arith.negf %29 : vector<8x128xf32>
    %31 = math.exp %30 : vector<8x128xf32>
    %cst_27 = arith.constant 1.000000e+00 : f32
    %32 = vector.broadcast %cst_27 : f32 to vector<8x128xf32>
    %33 = arith.addf %32, %31 : vector<8x128xf32>
    %34 = arith.divf %32, %33 : vector<8x128xf32>
    %35 = vector.extract_strided_slice %14 {offsets = [0, 256], sizes = [8, 128], strides = [1, 1]} : vector<8x512xf32> to vector<8x128xf32>
    %36 = math.tanh %35 : vector<8x128xf32>
    %37 = vector.extract_strided_slice %14 {offsets = [0, 384], sizes = [8, 128], strides = [1, 1]} : vector<8x512xf32> to vector<8x128xf32>
    %38 = arith.negf %37 : vector<8x128xf32>
    %39 = math.exp %38 : vector<8x128xf32>
    %cst_28 = arith.constant 1.000000e+00 : f32
    %40 = vector.broadcast %cst_28 : f32 to vector<8x128xf32>
    %41 = arith.addf %40, %39 : vector<8x128xf32>
    %42 = arith.divf %40, %41 : vector<8x128xf32>
    %43 = arith.mulf %34, %22 : vector<8x128xf32>
    %44 = arith.mulf %28, %36 : vector<8x128xf32>
    %45 = arith.addf %43, %44 : vector<8x128xf32>
    %46 = math.tanh %45 : vector<8x128xf32>
    %47 = arith.mulf %42, %46 : vector<8x128xf32>
    %c0_29 = arith.constant 0 : index
    %c0_30 = arith.constant 0 : index
    %48 = vector.load %arg13[%c0_29, %c0_30] : memref<8x128xf32, #tpu.memory_space<vmem>>, vector<8x128xf32>
    %49 = vector.extract_strided_slice %21 {offsets = [0, 0], sizes = [8, 128], strides = [1, 1]} : vector<8x512xf32> to vector<8x128xf32>
    %50 = arith.negf %49 : vector<8x128xf32>
    %51 = math.exp %50 : vector<8x128xf32>
    %cst_31 = arith.constant 1.000000e+00 : f32
    %52 = vector.broadcast %cst_31 : f32 to vector<8x128xf32>
    %53 = arith.addf %52, %51 : vector<8x128xf32>
    %54 = arith.divf %52, %53 : vector<8x128xf32>
    %55 = vector.extract_strided_slice %21 {offsets = [0, 128], sizes = [8, 128], strides = [1, 1]} : vector<8x512xf32> to vector<8x128xf32>
    %56 = arith.negf %55 : vector<8x128xf32>
    %57 = math.exp %56 : vector<8x128xf32>
    %cst_32 = arith.constant 1.000000e+00 : f32
    %58 = vector.broadcast %cst_32 : f32 to vector<8x128xf32>
    %59 = arith.addf %58, %57 : vector<8x128xf32>
    %60 = arith.divf %58, %59 : vector<8x128xf32>
    %61 = vector.extract_strided_slice %21 {offsets = [0, 256], sizes = [8, 128], strides = [1, 1]} : vector<8x512xf32> to vector<8x128xf32>
    %62 = math.tanh %61 : vector<8x128xf32>
    %63 = vector.extract_strided_slice %21 {offsets = [0, 384], sizes = [8, 128], strides = [1, 1]} : vector<8x512xf32> to vector<8x128xf32>
    %64 = arith.negf %63 : vector<8x128xf32>
    %65 = math.exp %64 : vector<8x128xf32>
    %cst_33 = arith.constant 1.000000e+00 : f32
    %66 = vector.broadcast %cst_33 : f32 to vector<8x128xf32>
    %67 = arith.addf %66, %65 : vector<8x128xf32>
    %68 = arith.divf %66, %67 : vector<8x128xf32>
    %69 = arith.mulf %60, %48 : vector<8x128xf32>
    %70 = arith.mulf %54, %62 : vector<8x128xf32>
    %71 = arith.addf %69, %70 : vector<8x128xf32>
    %72 = math.tanh %71 : vector<8x128xf32>
    %73 = arith.mulf %68, %72 : vector<8x128xf32>
    %c0_34 = arith.constant 0 : index
    %c0_35 = arith.constant 0 : index
    %74 = vector.load %arg10[%c0_34, %c0_35] : memref<8x128xf32, #tpu.memory_space<vmem>>, vector<8x128xf32>
    tpu.vector_store %arg10[%c0_34, %c0_35], %47 {strides = array<i32>} : memref<8x128xf32, #tpu.memory_space<vmem>>, vector<8x128xf32>,
    %c0_36 = arith.constant 0 : index
    %c0_37 = arith.constant 0 : index
    %75 = vector.load %arg11[%c0_36, %c0_37] : memref<8x128xf32, #tpu.memory_space<vmem>>, vector<8x128xf32>
    tpu.vector_store %arg11[%c0_36, %c0_37], %45 {strides = array<i32>} : memref<8x128xf32, #tpu.memory_space<vmem>>, vector<8x128xf32>,
    %c0_38 = arith.constant 0 : index
    %c0_39 = arith.constant 0 : index
    %76 = vector.load %arg12[%c0_38, %c0_39] : memref<8x128xf32, #tpu.memory_space<vmem>>, vector<8x128xf32>
    tpu.vector_store %arg12[%c0_38, %c0_39], %73 {strides = array<i32>} : memref<8x128xf32, #tpu.memory_space<vmem>>, vector<8x128xf32>,
    %c0_40 = arith.constant 0 : index
    %c0_41 = arith.constant 0 : index
    %77 = vector.load %arg13[%c0_40, %c0_41] : memref<8x128xf32, #tpu.memory_space<vmem>>, vector<8x128xf32>
    tpu.vector_store %arg13[%c0_40, %c0_41], %71 {strides = array<i32>} : memref<8x128xf32, #tpu.memory_space<vmem>>, vector<8x128xf32>,
    %c1_i32 = arith.constant 1 : i32
    %78 = arith.index_cast %c1_i32 : i32 to index
    %c0_42 = arith.constant 0 : index
    %c0_43 = arith.constant 0 : index
    %79 = vector.load %arg0[%78, %c0_42, %c0_43] : memref<8x8x512xf32, #tpu.memory_space<vmem>>, vector<1x8x512xf32>
    %80 = vector.shape_cast %79 : vector<1x8x512xf32> to vector<8x512xf32>
    %c0_44 = arith.constant 0 : index
    %c0_45 = arith.constant 0 : index
    %81 = vector.load %arg10[%c0_44, %c0_45] : memref<8x128xf32, #tpu.memory_space<vmem>>, vector<8x128xf32>
    %c0_46 = arith.constant 0 : index
    %c0_47 = arith.constant 0 : index
    %82 = vector.load %arg2[%c0_46, %c0_47] : memref<128x512xf32, #tpu.memory_space<vmem>>, vector<128x512xf32>
    %cst_48 = arith.constant dense<0.000000e+00> : vector<8x512xf32>
    %83 = tpu.matmul %81, %82, %cst_48 {dimension_numbers = #tpu.dot_dimension_numbers<[1], [0], [0], [1], [0, 0, 1, 1], [], []>} : vector<8x128xf32>, vector<128x512xf32>, vector<8x512xf32> -> vector<8x512xf32>
    %84 = arith.addf %80, %83 : vector<8x512xf32>
    %85 = arith.index_cast %c1_i32 : i32 to index
    %c0_49 = arith.constant 0 : index
    %c0_50 = arith.constant 0 : index
    %86 = vector.load %arg1[%85, %c0_49, %c0_50] : memref<8x8x512xf32, #tpu.memory_space<vmem>>, vector<1x8x512xf32>
    %87 = vector.shape_cast %86 : vector<1x8x512xf32> to vector<8x512xf32>
    %c0_51 = arith.constant 0 : index
    %c0_52 = arith.constant 0 : index
    %88 = vector.load %arg12[%c0_51, %c0_52] : memref<8x128xf32, #tpu.memory_space<vmem>>, vector<8x128xf32>
    %c0_53 = arith.constant 0 : index
    %c0_54 = arith.constant 0 : index
    %89 = vector.load %arg3[%c0_53, %c0_54] : memref<128x512xf32, #tpu.memory_space<vmem>>, vector<128x512xf32>
    %cst_55 = arith.constant dense<0.000000e+00> : vector<8x512xf32>
    %90 = tpu.matmul %88, %89, %cst_55 {dimension_numbers = #tpu.dot_dimension_numbers<[1], [0], [0], [1], [0, 0, 1, 1], [], []>} : vector<8x128xf32>, vector<128x512xf32>, vector<8x512xf32> -> vector<8x512xf32>
    %91 = arith.addf %87, %90 : vector<8x512xf32>
    %c0_56 = arith.constant 0 : index
    %c0_57 = arith.constant 0 : index
    %92 = vector.load %arg11[%c0_56, %c0_57] : memref<8x128xf32, #tpu.memory_space<vmem>>, vector<8x128xf32>
    %93 = vector.extract_strided_slice %84 {offsets = [0, 0], sizes = [8, 128], strides = [1, 1]} : vector<8x512xf32> to vector<8x128xf32>
    %94 = arith.negf %93 : vector<8x128xf32>
    %95 = math.exp %94 : vector<8x128xf32>
    %cst_58 = arith.constant 1.000000e+00 : f32
    %96 = vector.broadcast %cst_58 : f32 to vector<8x128xf32>
    %97 = arith.addf %96, %95 : vector<8x128xf32>
    %98 = arith.divf %96, %97 : vector<8x128xf32>
    %99 = vector.extract_strided_slice %84 {offsets = [0, 128], sizes = [8, 128], strides = [1, 1]} : vector<8x512xf32> to vector<8x128xf32>
    %100 = arith.negf %99 : vector<8x128xf32>
    %101 = math.exp %100 : vector<8x128xf32>
    %cst_59 = arith.constant 1.000000e+00 : f32
    %102 = vector.broadcast %cst_59 : f32 to vector<8x128xf32>
    %103 = arith.addf %102, %101 : vector<8x128xf32>
    %104 = arith.divf %102, %103 : vector<8x128xf32>
    %105 = vector.extract_strided_slice %84 {offsets = [0, 256], sizes = [8, 128], strides = [1, 1]} : vector<8x512xf32> to vector<8x128xf32>
    %106 = math.tanh %105 : vector<8x128xf32>
    %107 = vector.extract_strided_slice %84 {offsets = [0, 384], sizes = [8, 128], strides = [1, 1]} : vector<8x512xf32> to vector<8x128xf32>
    %108 = arith.negf %107 : vector<8x128xf32>
    %109 = math.exp %108 : vector<8x128xf32>
    %cst_60 = arith.constant 1.000000e+00 : f32
    %110 = vector.broadcast %cst_60 : f32 to vector<8x128xf32>
    %111 = arith.addf %110, %109 : vector<8x128xf32>
    %112 = arith.divf %110, %111 : vector<8x128xf32>
    %113 = arith.mulf %104, %92 : vector<8x128xf32>
    %114 = arith.mulf %98, %106 : vector<8x128xf32>
    %115 = arith.addf %113, %114 : vector<8x128xf32>
    %116 = math.tanh %115 : vector<8x128xf32>
    %117 = arith.mulf %112, %116 : vector<8x128xf32>
    %c0_61 = arith.constant 0 : index
    %c0_62 = arith.constant 0 : index
    %118 = vector.load %arg13[%c0_61, %c0_62] : memref<8x128xf32, #tpu.memory_space<vmem>>, vector<8x128xf32>
    %119 = vector.extract_strided_slice %91 {offsets = [0, 0], sizes = [8, 128], strides = [1, 1]} : vector<8x512xf32> to vector<8x128xf32>
    %120 = arith.negf %119 : vector<8x128xf32>
    %121 = math.exp %120 : vector<8x128xf32>
    %cst_63 = arith.constant 1.000000e+00 : f32
    %122 = vector.broadcast %cst_63 : f32 to vector<8x128xf32>
    %123 = arith.addf %122, %121 : vector<8x128xf32>
    %124 = arith.divf %122, %123 : vector<8x128xf32>
    %125 = vector.extract_strided_slice %91 {offsets = [0, 128], sizes = [8, 128], strides = [1, 1]} : vector<8x512xf32> to vector<8x128xf32>
    %126 = arith.negf %125 : vector<8x128xf32>
    %127 = math.exp %126 : vector<8x128xf32>
    %cst_64 = arith.constant 1.000000e+00 : f32
    %128 = vector.broadcast %cst_64 : f32 to vector<8x128xf32>
    %129 = arith.addf %128, %127 : vector<8x128xf32>
    %130 = arith.divf %128, %129 : vector<8x128xf32>
    %131 = vector.extract_strided_slice %91 {offsets = [0, 256], sizes = [8, 128], strides = [1, 1]} : vector<8x512xf32> to vector<8x128xf32>
    %132 = math.tanh %131 : vector<8x128xf32>
    %133 = vector.extract_strided_slice %91 {offsets = [0, 384], sizes = [8, 128], strides = [1, 1]} : vector<8x512xf32> to vector<8x128xf32>
    %134 = arith.negf %133 : vector<8x128xf32>
    %135 = math.exp %134 : vector<8x128xf32>
    %cst_65 = arith.constant 1.000000e+00 : f32
    %136 = vector.broadcast %cst_65 : f32 to vector<8x128xf32>
    %137 = arith.addf %136, %135 : vector<8x128xf32>
    %138 = arith.divf %136, %137 : vector<8x128xf32>
    %139 = arith.mulf %130, %118 : vector<8x128xf32>
    %140 = arith.mulf %124, %132 : vector<8x128xf32>
    %141 = arith.addf %139, %140 : vector<8x128xf32>
    %142 = math.tanh %141 : vector<8x128xf32>
    %143 = arith.mulf %138, %142 : vector<8x128xf32>
    %c0_66 = arith.constant 0 : index
    %c0_67 = arith.constant 0 : index
    %144 = vector.load %arg10[%c0_66, %c0_67] : memref<8x128xf32, #tpu.memory_space<vmem>>, vector<8x128xf32>
    tpu.vector_store %arg10[%c0_66, %c0_67], %117 {strides = array<i32>} : memref<8x128xf32, #tpu.memory_space<vmem>>, vector<8x128xf32>,
    %c0_68 = arith.constant 0 : index
    %c0_69 = arith.constant 0 : index
    %145 = vector.load %arg11[%c0_68, %c0_69] : memref<8x128xf32, #tpu.memory_space<vmem>>, vector<8x128xf32>
    tpu.vector_store %arg11[%c0_68, %c0_69], %115 {strides = array<i32>} : memref<8x128xf32, #tpu.memory_space<vmem>>, vector<8x128xf32>,
    %c0_70 = arith.constant 0 : index
    %c0_71 = arith.constant 0 : index
    %146 = vector.load %arg12[%c0_70, %c0_71] : memref<8x128xf32, #tpu.memory_space<vmem>>, vector<8x128xf32>
    tpu.vector_store %arg12[%c0_70, %c0_71], %143 {strides = array<i32>} : memref<8x128xf32, #tpu.memory_space<vmem>>, vector<8x128xf32>,
    %c0_72 = arith.constant 0 : index
    %c0_73 = arith.constant 0 : index
    %147 = vector.load %arg13[%c0_72, %c0_73] : memref<8x128xf32, #tpu.memory_space<vmem>>, vector<8x128xf32>
    tpu.vector_store %arg13[%c0_72, %c0_73], %141 {strides = array<i32>} : memref<8x128xf32, #tpu.memory_space<vmem>>, vector<8x128xf32>,
    %c2_i32 = arith.constant 2 : i32
    %148 = arith.index_cast %c2_i32 : i32 to index
    %c0_74 = arith.constant 0 : index
    %c0_75 = arith.constant 0 : index
    %149 = vector.load %arg0[%148, %c0_74, %c0_75] : memref<8x8x512xf32, #tpu.memory_space<vmem>>, vector<1x8x512xf32>
    %150 = vector.shape_cast %149 : vector<1x8x512xf32> to vector<8x512xf32>
    %c0_76 = arith.constant 0 : index
    %c0_77 = arith.constant 0 : index
    %151 = vector.load %arg10[%c0_76, %c0_77] : memref<8x128xf32, #tpu.memory_space<vmem>>, vector<8x128xf32>
    %c0_78 = arith.constant 0 : index
    %c0_79 = arith.constant 0 : index
    %152 = vector.load %arg2[%c0_78, %c0_79] : memref<128x512xf32, #tpu.memory_space<vmem>>, vector<128x512xf32>
    %cst_80 = arith.constant dense<0.000000e+00> : vector<8x512xf32>
    %153 = tpu.matmul %151, %152, %cst_80 {dimension_numbers = #tpu.dot_dimension_numbers<[1], [0], [0], [1], [0, 0, 1, 1], [], []>} : vector<8x128xf32>, vector<128x512xf32>, vector<8x512xf32> -> vector<8x512xf32>
    %154 = arith.addf %150, %153 : vector<8x512xf32>
    %155 = arith.index_cast %c2_i32 : i32 to index
    %c0_81 = arith.constant 0 : index
    %c0_82 = arith.constant 0 : index
    %156 = vector.load %arg1[%155, %c0_81, %c0_82] : memref<8x8x512xf32, #tpu.memory_space<vmem>>, vector<1x8x512xf32>
    %157 = vector.shape_cast %156 : vector<1x8x512xf32> to vector<8x512xf32>
    %c0_83 = arith.constant 0 : index
    %c0_84 = arith.constant 0 : index
    %158 = vector.load %arg12[%c0_83, %c0_84] : memref<8x128xf32, #tpu.memory_space<vmem>>, vector<8x128xf32>
    %c0_85 = arith.constant 0 : index
    %c0_86 = arith.constant 0 : index
    %159 = vector.load %arg3[%c0_85, %c0_86] : memref<128x512xf32, #tpu.memory_space<vmem>>, vector<128x512xf32>
    %cst_87 = arith.constant dense<0.000000e+00> : vector<8x512xf32>
    %160 = tpu.matmul %158, %159, %cst_87 {dimension_numbers = #tpu.dot_dimension_numbers<[1], [0], [0], [1], [0, 0, 1, 1], [], []>} : vector<8x128xf32>, vector<128x512xf32>, vector<8x512xf32> -> vector<8x512xf32>
    %161 = arith.addf %157, %160 : vector<8x512xf32>
    %c0_88 = arith.constant 0 : index
    %c0_89 = arith.constant 0 : index
    %162 = vector.load %arg11[%c0_88, %c0_89] : memref<8x128xf32, #tpu.memory_space<vmem>>, vector<8x128xf32>
    %163 = vector.extract_strided_slice %154 {offsets = [0, 0], sizes = [8, 128], strides = [1, 1]} : vector<8x512xf32> to vector<8x128xf32>
    %164 = arith.negf %163 : vector<8x128xf32>
    %165 = math.exp %164 : vector<8x128xf32>
    %cst_90 = arith.constant 1.000000e+00 : f32
    %166 = vector.broadcast %cst_90 : f32 to vector<8x128xf32>
    %167 = arith.addf %166, %165 : vector<8x128xf32>
    %168 = arith.divf %166, %167 : vector<8x128xf32>
    %169 = vector.extract_strided_slice %154 {offsets = [0, 128], sizes = [8, 128], strides = [1, 1]} : vector<8x512xf32> to vector<8x128xf32>
    %170 = arith.negf %169 : vector<8x128xf32>
    %171 = math.exp %170 : vector<8x128xf32>
    %cst_91 = arith.constant 1.000000e+00 : f32
    %172 = vector.broadcast %cst_91 : f32 to vector<8x128xf32>
    %173 = arith.addf %172, %171 : vector<8x128xf32>
    %174 = arith.divf %172, %173 : vector<8x128xf32>
    %175 = vector.extract_strided_slice %154 {offsets = [0, 256], sizes = [8, 128], strides = [1, 1]} : vector<8x512xf32> to vector<8x128xf32>
    %176 = math.tanh %175 : vector<8x128xf32>
    %177 = vector.extract_strided_slice %154 {offsets = [0, 384], sizes = [8, 128], strides = [1, 1]} : vector<8x512xf32> to vector<8x128xf32>
    %178 = arith.negf %177 : vector<8x128xf32>
    %179 = math.exp %178 : vector<8x128xf32>
    %cst_92 = arith.constant 1.000000e+00 : f32
    %180 = vector.broadcast %cst_92 : f32 to vector<8x128xf32>
    %181 = arith.addf %180, %179 : vector<8x128xf32>
    %182 = arith.divf %180, %181 : vector<8x128xf32>
    %183 = arith.mulf %174, %162 : vector<8x128xf32>
    %184 = arith.mulf %168, %176 : vector<8x128xf32>
    %185 = arith.addf %183, %184 : vector<8x128xf32>
    %186 = math.tanh %185 : vector<8x128xf32>
    %187 = arith.mulf %182, %186 : vector<8x128xf32>
    %c0_93 = arith.constant 0 : index
    %c0_94 = arith.constant 0 : index
    %188 = vector.load %arg13[%c0_93, %c0_94] : memref<8x128xf32, #tpu.memory_space<vmem>>, vector<8x128xf32>
    %189 = vector.extract_strided_slice %161 {offsets = [0, 0], sizes = [8, 128], strides = [1, 1]} : vector<8x512xf32> to vector<8x128xf32>
    %190 = arith.negf %189 : vector<8x128xf32>
    %191 = math.exp %190 : vector<8x128xf32>
    %cst_95 = arith.constant 1.000000e+00 : f32
    %192 = vector.broadcast %cst_95 : f32 to vector<8x128xf32>
    %193 = arith.addf %192, %191 : vector<8x128xf32>
    %194 = arith.divf %192, %193 : vector<8x128xf32>
    %195 = vector.extract_strided_slice %161 {offsets = [0, 128], sizes = [8, 128], strides = [1, 1]} : vector<8x512xf32> to vector<8x128xf32>
    %196 = arith.negf %195 : vector<8x128xf32>
    %197 = math.exp %196 : vector<8x128xf32>
    %cst_96 = arith.constant 1.000000e+00 : f32
    %198 = vector.broadcast %cst_96 : f32 to vector<8x128xf32>
    %199 = arith.addf %198, %197 : vector<8x128xf32>
    %200 = arith.divf %198, %199 : vector<8x128xf32>
    %201 = vector.extract_strided_slice %161 {offsets = [0, 256], sizes = [8, 128], strides = [1, 1]} : vector<8x512xf32> to vector<8x128xf32>
    %202 = math.tanh %201 : vector<8x128xf32>
    %203 = vector.extract_strided_slice %161 {offsets = [0, 384], sizes = [8, 128], strides = [1, 1]} : vector<8x512xf32> to vector<8x128xf32>
    %204 = arith.negf %203 : vector<8x128xf32>
    %205 = math.exp %204 : vector<8x128xf32>
    %cst_97 = arith.constant 1.000000e+00 : f32
    %206 = vector.broadcast %cst_97 : f32 to vector<8x128xf32>
    %207 = arith.addf %206, %205 : vector<8x128xf32>
    %208 = arith.divf %206, %207 : vector<8x128xf32>
    %209 = arith.mulf %200, %188 : vector<8x128xf32>
    %210 = arith.mulf %194, %202 : vector<8x128xf32>
    %211 = arith.addf %209, %210 : vector<8x128xf32>
    %212 = math.tanh %211 : vector<8x128xf32>
    %213 = arith.mulf %208, %212 : vector<8x128xf32>
    %c0_98 = arith.constant 0 : index
    %c0_99 = arith.constant 0 : index
    %214 = vector.load %arg10[%c0_98, %c0_99] : memref<8x128xf32, #tpu.memory_space<vmem>>, vector<8x128xf32>
    tpu.vector_store %arg10[%c0_98, %c0_99], %187 {strides = array<i32>} : memref<8x128xf32, #tpu.memory_space<vmem>>, vector<8x128xf32>,
    %c0_100 = arith.constant 0 : index
    %c0_101 = arith.constant 0 : index
    %215 = vector.load %arg11[%c0_100, %c0_101] : memref<8x128xf32, #tpu.memory_space<vmem>>, vector<8x128xf32>
    tpu.vector_store %arg11[%c0_100, %c0_101], %185 {strides = array<i32>} : memref<8x128xf32, #tpu.memory_space<vmem>>, vector<8x128xf32>,
    %c0_102 = arith.constant 0 : index
    %c0_103 = arith.constant 0 : index
    %216 = vector.load %arg12[%c0_102, %c0_103] : memref<8x128xf32, #tpu.memory_space<vmem>>, vector<8x128xf32>
    tpu.vector_store %arg12[%c0_102, %c0_103], %213 {strides = array<i32>} : memref<8x128xf32, #tpu.memory_space<vmem>>, vector<8x128xf32>,
    %c0_104 = arith.constant 0 : index
    %c0_105 = arith.constant 0 : index
    %217 = vector.load %arg13[%c0_104, %c0_105] : memref<8x128xf32, #tpu.memory_space<vmem>>, vector<8x128xf32>
    tpu.vector_store %arg13[%c0_104, %c0_105], %211 {strides = array<i32>} : memref<8x128xf32, #tpu.memory_space<vmem>>, vector<8x128xf32>,
    %c3_i32 = arith.constant 3 : i32
    %218 = arith.index_cast %c3_i32 : i32 to index
    %c0_106 = arith.constant 0 : index
    %c0_107 = arith.constant 0 : index
    %219 = vector.load %arg0[%218, %c0_106, %c0_107] : memref<8x8x512xf32, #tpu.memory_space<vmem>>, vector<1x8x512xf32>
    %220 = vector.shape_cast %219 : vector<1x8x512xf32> to vector<8x512xf32>
    %c0_108 = arith.constant 0 : index
    %c0_109 = arith.constant 0 : index
    %221 = vector.load %arg10[%c0_108, %c0_109] : memref<8x128xf32, #tpu.memory_space<vmem>>, vector<8x128xf32>
    %c0_110 = arith.constant 0 : index
    %c0_111 = arith.constant 0 : index
    %222 = vector.load %arg2[%c0_110, %c0_111] : memref<128x512xf32, #tpu.memory_space<vmem>>, vector<128x512xf32>
    %cst_112 = arith.constant dense<0.000000e+00> : vector<8x512xf32>
    %223 = tpu.matmul %221, %222, %cst_112 {dimension_numbers = #tpu.dot_dimension_numbers<[1], [0], [0], [1], [0, 0, 1, 1], [], []>} : vector<8x128xf32>, vector<128x512xf32>, vector<8x512xf32> -> vector<8x512xf32>
    %224 = arith.addf %220, %223 : vector<8x512xf32>
    %225 = arith.index_cast %c3_i32 : i32 to index
    %c0_113 = arith.constant 0 : index
    %c0_114 = arith.constant 0 : index
    %226 = vector.load %arg1[%225, %c0_113, %c0_114] : memref<8x8x512xf32, #tpu.memory_space<vmem>>, vector<1x8x512xf32>
    %227 = vector.shape_cast %226 : vector<1x8x512xf32> to vector<8x512xf32>
    %c0_115 = arith.constant 0 : index
    %c0_116 = arith.constant 0 : index
    %228 = vector.load %arg12[%c0_115, %c0_116] : memref<8x128xf32, #tpu.memory_space<vmem>>, vector<8x128xf32>
    %c0_117 = arith.constant 0 : index
    %c0_118 = arith.constant 0 : index
    %229 = vector.load %arg3[%c0_117, %c0_118] : memref<128x512xf32, #tpu.memory_space<vmem>>, vector<128x512xf32>
    %cst_119 = arith.constant dense<0.000000e+00> : vector<8x512xf32>
    %230 = tpu.matmul %228, %229, %cst_119 {dimension_numbers = #tpu.dot_dimension_numbers<[1], [0], [0], [1], [0, 0, 1, 1], [], []>} : vector<8x128xf32>, vector<128x512xf32>, vector<8x512xf32> -> vector<8x512xf32>
    %231 = arith.addf %227, %230 : vector<8x512xf32>
    %c0_120 = arith.constant 0 : index
    %c0_121 = arith.constant 0 : index
    %232 = vector.load %arg11[%c0_120, %c0_121] : memref<8x128xf32, #tpu.memory_space<vmem>>, vector<8x128xf32>
    %233 = vector.extract_strided_slice %224 {offsets = [0, 0], sizes = [8, 128], strides = [1, 1]} : vector<8x512xf32> to vector<8x128xf32>
    %234 = arith.negf %233 : vector<8x128xf32>
    %235 = math.exp %234 : vector<8x128xf32>
    %cst_122 = arith.constant 1.000000e+00 : f32
    %236 = vector.broadcast %cst_122 : f32 to vector<8x128xf32>
    %237 = arith.addf %236, %235 : vector<8x128xf32>
    %238 = arith.divf %236, %237 : vector<8x128xf32>
    %239 = vector.extract_strided_slice %224 {offsets = [0, 128], sizes = [8, 128], strides = [1, 1]} : vector<8x512xf32> to vector<8x128xf32>
    %240 = arith.negf %239 : vector<8x128xf32>
    %241 = math.exp %240 : vector<8x128xf32>
    %cst_123 = arith.constant 1.000000e+00 : f32
    %242 = vector.broadcast %cst_123 : f32 to vector<8x128xf32>
    %243 = arith.addf %242, %241 : vector<8x128xf32>
    %244 = arith.divf %242, %243 : vector<8x128xf32>
    %245 = vector.extract_strided_slice %224 {offsets = [0, 256], sizes = [8, 128], strides = [1, 1]} : vector<8x512xf32> to vector<8x128xf32>
    %246 = math.tanh %245 : vector<8x128xf32>
    %247 = vector.extract_strided_slice %224 {offsets = [0, 384], sizes = [8, 128], strides = [1, 1]} : vector<8x512xf32> to vector<8x128xf32>
    %248 = arith.negf %247 : vector<8x128xf32>
    %249 = math.exp %248 : vector<8x128xf32>
    %cst_124 = arith.constant 1.000000e+00 : f32
    %250 = vector.broadcast %cst_124 : f32 to vector<8x128xf32>
    %251 = arith.addf %250, %249 : vector<8x128xf32>
    %252 = arith.divf %250, %251 : vector<8x128xf32>
    %253 = arith.mulf %244, %232 : vector<8x128xf32>
    %254 = arith.mulf %238, %246 : vector<8x128xf32>
    %255 = arith.addf %253, %254 : vector<8x128xf32>
    %256 = math.tanh %255 : vector<8x128xf32>
    %257 = arith.mulf %252, %256 : vector<8x128xf32>
    %c0_125 = arith.constant 0 : index
    %c0_126 = arith.constant 0 : index
    %258 = vector.load %arg13[%c0_125, %c0_126] : memref<8x128xf32, #tpu.memory_space<vmem>>, vector<8x128xf32>
    %259 = vector.extract_strided_slice %231 {offsets = [0, 0], sizes = [8, 128], strides = [1, 1]} : vector<8x512xf32> to vector<8x128xf32>
    %260 = arith.negf %259 : vector<8x128xf32>
    %261 = math.exp %260 : vector<8x128xf32>
    %cst_127 = arith.constant 1.000000e+00 : f32
    %262 = vector.broadcast %cst_127 : f32 to vector<8x128xf32>
    %263 = arith.addf %262, %261 : vector<8x128xf32>
    %264 = arith.divf %262, %263 : vector<8x128xf32>
    %265 = vector.extract_strided_slice %231 {offsets = [0, 128], sizes = [8, 128], strides = [1, 1]} : vector<8x512xf32> to vector<8x128xf32>
    %266 = arith.negf %265 : vector<8x128xf32>
    %267 = math.exp %266 : vector<8x128xf32>
    %cst_128 = arith.constant 1.000000e+00 : f32
    %268 = vector.broadcast %cst_128 : f32 to vector<8x128xf32>
    %269 = arith.addf %268, %267 : vector<8x128xf32>
    %270 = arith.divf %268, %269 : vector<8x128xf32>
    %271 = vector.extract_strided_slice %231 {offsets = [0, 256], sizes = [8, 128], strides = [1, 1]} : vector<8x512xf32> to vector<8x128xf32>
    %272 = math.tanh %271 : vector<8x128xf32>
    %273 = vector.extract_strided_slice %231 {offsets = [0, 384], sizes = [8, 128], strides = [1, 1]} : vector<8x512xf32> to vector<8x128xf32>
    %274 = arith.negf %273 : vector<8x128xf32>
    %275 = math.exp %274 : vector<8x128xf32>
    %cst_129 = arith.constant 1.000000e+00 : f32
    %276 = vector.broadcast %cst_129 : f32 to vector<8x128xf32>
    %277 = arith.addf %276, %275 : vector<8x128xf32>
    %278 = arith.divf %276, %277 : vector<8x128xf32>
    %279 = arith.mulf %270, %258 : vector<8x128xf32>
    %280 = arith.mulf %264, %272 : vector<8x128xf32>
    %281 = arith.addf %279, %280 : vector<8x128xf32>
    %282 = math.tanh %281 : vector<8x128xf32>
    %283 = arith.mulf %278, %282 : vector<8x128xf32>
    %c0_130 = arith.constant 0 : index
    %c0_131 = arith.constant 0 : index
    %284 = vector.load %arg10[%c0_130, %c0_131] : memref<8x128xf32, #tpu.memory_space<vmem>>, vector<8x128xf32>
    tpu.vector_store %arg10[%c0_130, %c0_131], %257 {strides = array<i32>} : memref<8x128xf32, #tpu.memory_space<vmem>>, vector<8x128xf32>,
    %c0_132 = arith.constant 0 : index
    %c0_133 = arith.constant 0 : index
    %285 = vector.load %arg11[%c0_132, %c0_133] : memref<8x128xf32, #tpu.memory_space<vmem>>, vector<8x128xf32>
    tpu.vector_store %arg11[%c0_132, %c0_133], %255 {strides = array<i32>} : memref<8x128xf32, #tpu.memory_space<vmem>>, vector<8x128xf32>,
    %c0_134 = arith.constant 0 : index
    %c0_135 = arith.constant 0 : index
    %286 = vector.load %arg12[%c0_134, %c0_135] : memref<8x128xf32, #tpu.memory_space<vmem>>, vector<8x128xf32>
    tpu.vector_store %arg12[%c0_134, %c0_135], %283 {strides = array<i32>} : memref<8x128xf32, #tpu.memory_space<vmem>>, vector<8x128xf32>,
    %c0_136 = arith.constant 0 : index
    %c0_137 = arith.constant 0 : index
    %287 = vector.load %arg13[%c0_136, %c0_137] : memref<8x128xf32, #tpu.memory_space<vmem>>, vector<8x128xf32>
    tpu.vector_store %arg13[%c0_136, %c0_137], %281 {strides = array<i32>} : memref<8x128xf32, #tpu.memory_space<vmem>>, vector<8x128xf32>,
    %c4_i32 = arith.constant 4 : i32
    %288 = arith.index_cast %c4_i32 : i32 to index
    %c0_138 = arith.constant 0 : index
    %c0_139 = arith.constant 0 : index
    %289 = vector.load %arg0[%288, %c0_138, %c0_139] : memref<8x8x512xf32, #tpu.memory_space<vmem>>, vector<1x8x512xf32>
    %290 = vector.shape_cast %289 : vector<1x8x512xf32> to vector<8x512xf32>
    %c0_140 = arith.constant 0 : index
    %c0_141 = arith.constant 0 : index
    %291 = vector.load %arg10[%c0_140, %c0_141] : memref<8x128xf32, #tpu.memory_space<vmem>>, vector<8x128xf32>
    %c0_142 = arith.constant 0 : index
    %c0_143 = arith.constant 0 : index
    %292 = vector.load %arg2[%c0_142, %c0_143] : memref<128x512xf32, #tpu.memory_space<vmem>>, vector<128x512xf32>
    %cst_144 = arith.constant dense<0.000000e+00> : vector<8x512xf32>
    %293 = tpu.matmul %291, %292, %cst_144 {dimension_numbers = #tpu.dot_dimension_numbers<[1], [0], [0], [1], [0, 0, 1, 1], [], []>} : vector<8x128xf32>, vector<128x512xf32>, vector<8x512xf32> -> vector<8x512xf32>
    %294 = arith.addf %290, %293 : vector<8x512xf32>
    %295 = arith.index_cast %c4_i32 : i32 to index
    %c0_145 = arith.constant 0 : index
    %c0_146 = arith.constant 0 : index
    %296 = vector.load %arg1[%295, %c0_145, %c0_146] : memref<8x8x512xf32, #tpu.memory_space<vmem>>, vector<1x8x512xf32>
    %297 = vector.shape_cast %296 : vector<1x8x512xf32> to vector<8x512xf32>
    %c0_147 = arith.constant 0 : index
    %c0_148 = arith.constant 0 : index
    %298 = vector.load %arg12[%c0_147, %c0_148] : memref<8x128xf32, #tpu.memory_space<vmem>>, vector<8x128xf32>
    %c0_149 = arith.constant 0 : index
    %c0_150 = arith.constant 0 : index
    %299 = vector.load %arg3[%c0_149, %c0_150] : memref<128x512xf32, #tpu.memory_space<vmem>>, vector<128x512xf32>
    %cst_151 = arith.constant dense<0.000000e+00> : vector<8x512xf32>
    %300 = tpu.matmul %298, %299, %cst_151 {dimension_numbers = #tpu.dot_dimension_numbers<[1], [0], [0], [1], [0, 0, 1, 1], [], []>} : vector<8x128xf32>, vector<128x512xf32>, vector<8x512xf32> -> vector<8x512xf32>
    %301 = arith.addf %297, %300 : vector<8x512xf32>
    %c0_152 = arith.constant 0 : index
    %c0_153 = arith.constant 0 : index
    %302 = vector.load %arg11[%c0_152, %c0_153] : memref<8x128xf32, #tpu.memory_space<vmem>>, vector<8x128xf32>
    %303 = vector.extract_strided_slice %294 {offsets = [0, 0], sizes = [8, 128], strides = [1, 1]} : vector<8x512xf32> to vector<8x128xf32>
    %304 = arith.negf %303 : vector<8x128xf32>
    %305 = math.exp %304 : vector<8x128xf32>
    %cst_154 = arith.constant 1.000000e+00 : f32
    %306 = vector.broadcast %cst_154 : f32 to vector<8x128xf32>
    %307 = arith.addf %306, %305 : vector<8x128xf32>
    %308 = arith.divf %306, %307 : vector<8x128xf32>
    %309 = vector.extract_strided_slice %294 {offsets = [0, 128], sizes = [8, 128], strides = [1, 1]} : vector<8x512xf32> to vector<8x128xf32>
    %310 = arith.negf %309 : vector<8x128xf32>
    %311 = math.exp %310 : vector<8x128xf32>
    %cst_155 = arith.constant 1.000000e+00 : f32
    %312 = vector.broadcast %cst_155 : f32 to vector<8x128xf32>
    %313 = arith.addf %312, %311 : vector<8x128xf32>
    %314 = arith.divf %312, %313 : vector<8x128xf32>
    %315 = vector.extract_strided_slice %294 {offsets = [0, 256], sizes = [8, 128], strides = [1, 1]} : vector<8x512xf32> to vector<8x128xf32>
    %316 = math.tanh %315 : vector<8x128xf32>
    %317 = vector.extract_strided_slice %294 {offsets = [0, 384], sizes = [8, 128], strides = [1, 1]} : vector<8x512xf32> to vector<8x128xf32>
    %318 = arith.negf %317 : vector<8x128xf32>
    %319 = math.exp %318 : vector<8x128xf32>
    %cst_156 = arith.constant 1.000000e+00 : f32
    %320 = vector.broadcast %cst_156 : f32 to vector<8x128xf32>
    %321 = arith.addf %320, %319 : vector<8x128xf32>
    %322 = arith.divf %320, %321 : vector<8x128xf32>
    %323 = arith.mulf %314, %302 : vector<8x128xf32>
    %324 = arith.mulf %308, %316 : vector<8x128xf32>
    %325 = arith.addf %323, %324 : vector<8x128xf32>
    %326 = math.tanh %325 : vector<8x128xf32>
    %327 = arith.mulf %322, %326 : vector<8x128xf32>
    %c0_157 = arith.constant 0 : index
    %c0_158 = arith.constant 0 : index
    %328 = vector.load %arg13[%c0_157, %c0_158] : memref<8x128xf32, #tpu.memory_space<vmem>>, vector<8x128xf32>
    %329 = vector.extract_strided_slice %301 {offsets = [0, 0], sizes = [8, 128], strides = [1, 1]} : vector<8x512xf32> to vector<8x128xf32>
    %330 = arith.negf %329 : vector<8x128xf32>
    %331 = math.exp %330 : vector<8x128xf32>
    %cst_159 = arith.constant 1.000000e+00 : f32
    %332 = vector.broadcast %cst_159 : f32 to vector<8x128xf32>
    %333 = arith.addf %332, %331 : vector<8x128xf32>
    %334 = arith.divf %332, %333 : vector<8x128xf32>
    %335 = vector.extract_strided_slice %301 {offsets = [0, 128], sizes = [8, 128], strides = [1, 1]} : vector<8x512xf32> to vector<8x128xf32>
    %336 = arith.negf %335 : vector<8x128xf32>
    %337 = math.exp %336 : vector<8x128xf32>
    %cst_160 = arith.constant 1.000000e+00 : f32
    %338 = vector.broadcast %cst_160 : f32 to vector<8x128xf32>
    %339 = arith.addf %338, %337 : vector<8x128xf32>
    %340 = arith.divf %338, %339 : vector<8x128xf32>
    %341 = vector.extract_strided_slice %301 {offsets = [0, 256], sizes = [8, 128], strides = [1, 1]} : vector<8x512xf32> to vector<8x128xf32>
    %342 = math.tanh %341 : vector<8x128xf32>
    %343 = vector.extract_strided_slice %301 {offsets = [0, 384], sizes = [8, 128], strides = [1, 1]} : vector<8x512xf32> to vector<8x128xf32>
    %344 = arith.negf %343 : vector<8x128xf32>
    %345 = math.exp %344 : vector<8x128xf32>
    %cst_161 = arith.constant 1.000000e+00 : f32
    %346 = vector.broadcast %cst_161 : f32 to vector<8x128xf32>
    %347 = arith.addf %346, %345 : vector<8x128xf32>
    %348 = arith.divf %346, %347 : vector<8x128xf32>
    %349 = arith.mulf %340, %328 : vector<8x128xf32>
    %350 = arith.mulf %334, %342 : vector<8x128xf32>
    %351 = arith.addf %349, %350 : vector<8x128xf32>
    %352 = math.tanh %351 : vector<8x128xf32>
    %353 = arith.mulf %348, %352 : vector<8x128xf32>
    %c0_162 = arith.constant 0 : index
    %c0_163 = arith.constant 0 : index
    %354 = vector.load %arg10[%c0_162, %c0_163] : memref<8x128xf32, #tpu.memory_space<vmem>>, vector<8x128xf32>
    tpu.vector_store %arg10[%c0_162, %c0_163], %327 {strides = array<i32>} : memref<8x128xf32, #tpu.memory_space<vmem>>, vector<8x128xf32>,
    %c0_164 = arith.constant 0 : index
    %c0_165 = arith.constant 0 : index
    %355 = vector.load %arg11[%c0_164, %c0_165] : memref<8x128xf32, #tpu.memory_space<vmem>>, vector<8x128xf32>
    tpu.vector_store %arg11[%c0_164, %c0_165], %325 {strides = array<i32>} : memref<8x128xf32, #tpu.memory_space<vmem>>, vector<8x128xf32>,
    %c0_166 = arith.constant 0 : index
    %c0_167 = arith.constant 0 : index
    %356 = vector.load %arg12[%c0_166, %c0_167] : memref<8x128xf32, #tpu.memory_space<vmem>>, vector<8x128xf32>
    tpu.vector_store %arg12[%c0_166, %c0_167], %353 {strides = array<i32>} : memref<8x128xf32, #tpu.memory_space<vmem>>, vector<8x128xf32>,
    %c0_168 = arith.constant 0 : index
    %c0_169 = arith.constant 0 : index
    %357 = vector.load %arg13[%c0_168, %c0_169] : memref<8x128xf32, #tpu.memory_space<vmem>>, vector<8x128xf32>
    tpu.vector_store %arg13[%c0_168, %c0_169], %351 {strides = array<i32>} : memref<8x128xf32, #tpu.memory_space<vmem>>, vector<8x128xf32>,
    %c5_i32 = arith.constant 5 : i32
    %358 = arith.index_cast %c5_i32 : i32 to index
    %c0_170 = arith.constant 0 : index
    %c0_171 = arith.constant 0 : index
    %359 = vector.load %arg0[%358, %c0_170, %c0_171] : memref<8x8x512xf32, #tpu.memory_space<vmem>>, vector<1x8x512xf32>
    %360 = vector.shape_cast %359 : vector<1x8x512xf32> to vector<8x512xf32>
    %c0_172 = arith.constant 0 : index
    %c0_173 = arith.constant 0 : index
    %361 = vector.load %arg10[%c0_172, %c0_173] : memref<8x128xf32, #tpu.memory_space<vmem>>, vector<8x128xf32>
    %c0_174 = arith.constant 0 : index
    %c0_175 = arith.constant 0 : index
    %362 = vector.load %arg2[%c0_174, %c0_175] : memref<128x512xf32, #tpu.memory_space<vmem>>, vector<128x512xf32>
    %cst_176 = arith.constant dense<0.000000e+00> : vector<8x512xf32>
    %363 = tpu.matmul %361, %362, %cst_176 {dimension_numbers = #tpu.dot_dimension_numbers<[1], [0], [0], [1], [0, 0, 1, 1], [], []>} : vector<8x128xf32>, vector<128x512xf32>, vector<8x512xf32> -> vector<8x512xf32>
    %364 = arith.addf %360, %363 : vector<8x512xf32>
    %365 = arith.index_cast %c5_i32 : i32 to index
    %c0_177 = arith.constant 0 : index
    %c0_178 = arith.constant 0 : index
    %366 = vector.load %arg1[%365, %c0_177, %c0_178] : memref<8x8x512xf32, #tpu.memory_space<vmem>>, vector<1x8x512xf32>
    %367 = vector.shape_cast %366 : vector<1x8x512xf32> to vector<8x512xf32>
    %c0_179 = arith.constant 0 : index
    %c0_180 = arith.constant 0 : index
    %368 = vector.load %arg12[%c0_179, %c0_180] : memref<8x128xf32, #tpu.memory_space<vmem>>, vector<8x128xf32>
    %c0_181 = arith.constant 0 : index
    %c0_182 = arith.constant 0 : index
    %369 = vector.load %arg3[%c0_181, %c0_182] : memref<128x512xf32, #tpu.memory_space<vmem>>, vector<128x512xf32>
    %cst_183 = arith.constant dense<0.000000e+00> : vector<8x512xf32>
    %370 = tpu.matmul %368, %369, %cst_183 {dimension_numbers = #tpu.dot_dimension_numbers<[1], [0], [0], [1], [0, 0, 1, 1], [], []>} : vector<8x128xf32>, vector<128x512xf32>, vector<8x512xf32> -> vector<8x512xf32>
    %371 = arith.addf %367, %370 : vector<8x512xf32>
    %c0_184 = arith.constant 0 : index
    %c0_185 = arith.constant 0 : index
    %372 = vector.load %arg11[%c0_184, %c0_185] : memref<8x128xf32, #tpu.memory_space<vmem>>, vector<8x128xf32>
    %373 = vector.extract_strided_slice %364 {offsets = [0, 0], sizes = [8, 128], strides = [1, 1]} : vector<8x512xf32> to vector<8x128xf32>
    %374 = arith.negf %373 : vector<8x128xf32>
    %375 = math.exp %374 : vector<8x128xf32>
    %cst_186 = arith.constant 1.000000e+00 : f32
    %376 = vector.broadcast %cst_186 : f32 to vector<8x128xf32>
    %377 = arith.addf %376, %375 : vector<8x128xf32>
    %378 = arith.divf %376, %377 : vector<8x128xf32>
    %379 = vector.extract_strided_slice %364 {offsets = [0, 128], sizes = [8, 128], strides = [1, 1]} : vector<8x512xf32> to vector<8x128xf32>
    %380 = arith.negf %379 : vector<8x128xf32>
    %381 = math.exp %380 : vector<8x128xf32>
    %cst_187 = arith.constant 1.000000e+00 : f32
    %382 = vector.broadcast %cst_187 : f32 to vector<8x128xf32>
    %383 = arith.addf %382, %381 : vector<8x128xf32>
    %384 = arith.divf %382, %383 : vector<8x128xf32>
    %385 = vector.extract_strided_slice %364 {offsets = [0, 256], sizes = [8, 128], strides = [1, 1]} : vector<8x512xf32> to vector<8x128xf32>
    %386 = math.tanh %385 : vector<8x128xf32>
    %387 = vector.extract_strided_slice %364 {offsets = [0, 384], sizes = [8, 128], strides = [1, 1]} : vector<8x512xf32> to vector<8x128xf32>
    %388 = arith.negf %387 : vector<8x128xf32>
    %389 = math.exp %388 : vector<8x128xf32>
    %cst_188 = arith.constant 1.000000e+00 : f32
    %390 = vector.broadcast %cst_188 : f32 to vector<8x128xf32>
    %391 = arith.addf %390, %389 : vector<8x128xf32>
    %392 = arith.divf %390, %391 : vector<8x128xf32>
    %393 = arith.mulf %384, %372 : vector<8x128xf32>
    %394 = arith.mulf %378, %386 : vector<8x128xf32>
    %395 = arith.addf %393, %394 : vector<8x128xf32>
    %396 = math.tanh %395 : vector<8x128xf32>
    %397 = arith.mulf %392, %396 : vector<8x128xf32>
    %c0_189 = arith.constant 0 : index
    %c0_190 = arith.constant 0 : index
    %398 = vector.load %arg13[%c0_189, %c0_190] : memref<8x128xf32, #tpu.memory_space<vmem>>, vector<8x128xf32>
    %399 = vector.extract_strided_slice %371 {offsets = [0, 0], sizes = [8, 128], strides = [1, 1]} : vector<8x512xf32> to vector<8x128xf32>
    %400 = arith.negf %399 : vector<8x128xf32>
    %401 = math.exp %400 : vector<8x128xf32>
    %cst_191 = arith.constant 1.000000e+00 : f32
    %402 = vector.broadcast %cst_191 : f32 to vector<8x128xf32>
    %403 = arith.addf %402, %401 : vector<8x128xf32>
    %404 = arith.divf %402, %403 : vector<8x128xf32>
    %405 = vector.extract_strided_slice %371 {offsets = [0, 128], sizes = [8, 128], strides = [1, 1]} : vector<8x512xf32> to vector<8x128xf32>
    %406 = arith.negf %405 : vector<8x128xf32>
    %407 = math.exp %406 : vector<8x128xf32>
    %cst_192 = arith.constant 1.000000e+00 : f32
    %408 = vector.broadcast %cst_192 : f32 to vector<8x128xf32>
    %409 = arith.addf %408, %407 : vector<8x128xf32>
    %410 = arith.divf %408, %409 : vector<8x128xf32>
    %411 = vector.extract_strided_slice %371 {offsets = [0, 256], sizes = [8, 128], strides = [1, 1]} : vector<8x512xf32> to vector<8x128xf32>
    %412 = math.tanh %411 : vector<8x128xf32>
    %413 = vector.extract_strided_slice %371 {offsets = [0, 384], sizes = [8, 128], strides = [1, 1]} : vector<8x512xf32> to vector<8x128xf32>
    %414 = arith.negf %413 : vector<8x128xf32>
    %415 = math.exp %414 : vector<8x128xf32>
    %cst_193 = arith.constant 1.000000e+00 : f32
    %416 = vector.broadcast %cst_193 : f32 to vector<8x128xf32>
    %417 = arith.addf %416, %415 : vector<8x128xf32>
    %418 = arith.divf %416, %417 : vector<8x128xf32>
    %419 = arith.mulf %410, %398 : vector<8x128xf32>
    %420 = arith.mulf %404, %412 : vector<8x128xf32>
    %421 = arith.addf %419, %420 : vector<8x128xf32>
    %422 = math.tanh %421 : vector<8x128xf32>
    %423 = arith.mulf %418, %422 : vector<8x128xf32>
    %c0_194 = arith.constant 0 : index
    %c0_195 = arith.constant 0 : index
    %424 = vector.load %arg10[%c0_194, %c0_195] : memref<8x128xf32, #tpu.memory_space<vmem>>, vector<8x128xf32>
    tpu.vector_store %arg10[%c0_194, %c0_195], %397 {strides = array<i32>} : memref<8x128xf32, #tpu.memory_space<vmem>>, vector<8x128xf32>,
    %c0_196 = arith.constant 0 : index
    %c0_197 = arith.constant 0 : index
    %425 = vector.load %arg11[%c0_196, %c0_197] : memref<8x128xf32, #tpu.memory_space<vmem>>, vector<8x128xf32>
    tpu.vector_store %arg11[%c0_196, %c0_197], %395 {strides = array<i32>} : memref<8x128xf32, #tpu.memory_space<vmem>>, vector<8x128xf32>,
    %c0_198 = arith.constant 0 : index
    %c0_199 = arith.constant 0 : index
    %426 = vector.load %arg12[%c0_198, %c0_199] : memref<8x128xf32, #tpu.memory_space<vmem>>, vector<8x128xf32>
    tpu.vector_store %arg12[%c0_198, %c0_199], %423 {strides = array<i32>} : memref<8x128xf32, #tpu.memory_space<vmem>>, vector<8x128xf32>,
    %c0_200 = arith.constant 0 : index
    %c0_201 = arith.constant 0 : index
    %427 = vector.load %arg13[%c0_200, %c0_201] : memref<8x128xf32, #tpu.memory_space<vmem>>, vector<8x128xf32>
    tpu.vector_store %arg13[%c0_200, %c0_201], %421 {strides = array<i32>} : memref<8x128xf32, #tpu.memory_space<vmem>>, vector<8x128xf32>,
    %c6_i32 = arith.constant 6 : i32
    %428 = arith.index_cast %c6_i32 : i32 to index
    %c0_202 = arith.constant 0 : index
    %c0_203 = arith.constant 0 : index
    %429 = vector.load %arg0[%428, %c0_202, %c0_203] : memref<8x8x512xf32, #tpu.memory_space<vmem>>, vector<1x8x512xf32>
    %430 = vector.shape_cast %429 : vector<1x8x512xf32> to vector<8x512xf32>
    %c0_204 = arith.constant 0 : index
    %c0_205 = arith.constant 0 : index
    %431 = vector.load %arg10[%c0_204, %c0_205] : memref<8x128xf32, #tpu.memory_space<vmem>>, vector<8x128xf32>
    %c0_206 = arith.constant 0 : index
    %c0_207 = arith.constant 0 : index
    %432 = vector.load %arg2[%c0_206, %c0_207] : memref<128x512xf32, #tpu.memory_space<vmem>>, vector<128x512xf32>
    %cst_208 = arith.constant dense<0.000000e+00> : vector<8x512xf32>
    %433 = tpu.matmul %431, %432, %cst_208 {dimension_numbers = #tpu.dot_dimension_numbers<[1], [0], [0], [1], [0, 0, 1, 1], [], []>} : vector<8x128xf32>, vector<128x512xf32>, vector<8x512xf32> -> vector<8x512xf32>
    %434 = arith.addf %430, %433 : vector<8x512xf32>
    %435 = arith.index_cast %c6_i32 : i32 to index
    %c0_209 = arith.constant 0 : index
    %c0_210 = arith.constant 0 : index
    %436 = vector.load %arg1[%435, %c0_209, %c0_210] : memref<8x8x512xf32, #tpu.memory_space<vmem>>, vector<1x8x512xf32>
    %437 = vector.shape_cast %436 : vector<1x8x512xf32> to vector<8x512xf32>
    %c0_211 = arith.constant 0 : index
    %c0_212 = arith.constant 0 : index
    %438 = vector.load %arg12[%c0_211, %c0_212] : memref<8x128xf32, #tpu.memory_space<vmem>>, vector<8x128xf32>
    %c0_213 = arith.constant 0 : index
    %c0_214 = arith.constant 0 : index
    %439 = vector.load %arg3[%c0_213, %c0_214] : memref<128x512xf32, #tpu.memory_space<vmem>>, vector<128x512xf32>
    %cst_215 = arith.constant dense<0.000000e+00> : vector<8x512xf32>
    %440 = tpu.matmul %438, %439, %cst_215 {dimension_numbers = #tpu.dot_dimension_numbers<[1], [0], [0], [1], [0, 0, 1, 1], [], []>} : vector<8x128xf32>, vector<128x512xf32>, vector<8x512xf32> -> vector<8x512xf32>
    %441 = arith.addf %437, %440 : vector<8x512xf32>
    %c0_216 = arith.constant 0 : index
    %c0_217 = arith.constant 0 : index
    %442 = vector.load %arg11[%c0_216, %c0_217] : memref<8x128xf32, #tpu.memory_space<vmem>>, vector<8x128xf32>
    %443 = vector.extract_strided_slice %434 {offsets = [0, 0], sizes = [8, 128], strides = [1, 1]} : vector<8x512xf32> to vector<8x128xf32>
    %444 = arith.negf %443 : vector<8x128xf32>
    %445 = math.exp %444 : vector<8x128xf32>
    %cst_218 = arith.constant 1.000000e+00 : f32
    %446 = vector.broadcast %cst_218 : f32 to vector<8x128xf32>
    %447 = arith.addf %446, %445 : vector<8x128xf32>
    %448 = arith.divf %446, %447 : vector<8x128xf32>
    %449 = vector.extract_strided_slice %434 {offsets = [0, 128], sizes = [8, 128], strides = [1, 1]} : vector<8x512xf32> to vector<8x128xf32>
    %450 = arith.negf %449 : vector<8x128xf32>
    %451 = math.exp %450 : vector<8x128xf32>
    %cst_219 = arith.constant 1.000000e+00 : f32
    %452 = vector.broadcast %cst_219 : f32 to vector<8x128xf32>
    %453 = arith.addf %452, %451 : vector<8x128xf32>
    %454 = arith.divf %452, %453 : vector<8x128xf32>
    %455 = vector.extract_strided_slice %434 {offsets = [0, 256], sizes = [8, 128], strides = [1, 1]} : vector<8x512xf32> to vector<8x128xf32>
    %456 = math.tanh %455 : vector<8x128xf32>
    %457 = vector.extract_strided_slice %434 {offsets = [0, 384], sizes = [8, 128], strides = [1, 1]} : vector<8x512xf32> to vector<8x128xf32>
    %458 = arith.negf %457 : vector<8x128xf32>
    %459 = math.exp %458 : vector<8x128xf32>
    %cst_220 = arith.constant 1.000000e+00 : f32
    %460 = vector.broadcast %cst_220 : f32 to vector<8x128xf32>
    %461 = arith.addf %460, %459 : vector<8x128xf32>
    %462 = arith.divf %460, %461 : vector<8x128xf32>
    %463 = arith.mulf %454, %442 : vector<8x128xf32>
    %464 = arith.mulf %448, %456 : vector<8x128xf32>
    %465 = arith.addf %463, %464 : vector<8x128xf32>
    %466 = math.tanh %465 : vector<8x128xf32>
    %467 = arith.mulf %462, %466 : vector<8x128xf32>
    %c0_221 = arith.constant 0 : index
    %c0_222 = arith.constant 0 : index
    %468 = vector.load %arg13[%c0_221, %c0_222] : memref<8x128xf32, #tpu.memory_space<vmem>>, vector<8x128xf32>
    %469 = vector.extract_strided_slice %441 {offsets = [0, 0], sizes = [8, 128], strides = [1, 1]} : vector<8x512xf32> to vector<8x128xf32>
    %470 = arith.negf %469 : vector<8x128xf32>
    %471 = math.exp %470 : vector<8x128xf32>
    %cst_223 = arith.constant 1.000000e+00 : f32
    %472 = vector.broadcast %cst_223 : f32 to vector<8x128xf32>
    %473 = arith.addf %472, %471 : vector<8x128xf32>
    %474 = arith.divf %472, %473 : vector<8x128xf32>
    %475 = vector.extract_strided_slice %441 {offsets = [0, 128], sizes = [8, 128], strides = [1, 1]} : vector<8x512xf32> to vector<8x128xf32>
    %476 = arith.negf %475 : vector<8x128xf32>
    %477 = math.exp %476 : vector<8x128xf32>
    %cst_224 = arith.constant 1.000000e+00 : f32
    %478 = vector.broadcast %cst_224 : f32 to vector<8x128xf32>
    %479 = arith.addf %478, %477 : vector<8x128xf32>
    %480 = arith.divf %478, %479 : vector<8x128xf32>
    %481 = vector.extract_strided_slice %441 {offsets = [0, 256], sizes = [8, 128], strides = [1, 1]} : vector<8x512xf32> to vector<8x128xf32>
    %482 = math.tanh %481 : vector<8x128xf32>
    %483 = vector.extract_strided_slice %441 {offsets = [0, 384], sizes = [8, 128], strides = [1, 1]} : vector<8x512xf32> to vector<8x128xf32>
    %484 = arith.negf %483 : vector<8x128xf32>
    %485 = math.exp %484 : vector<8x128xf32>
    %cst_225 = arith.constant 1.000000e+00 : f32
    %486 = vector.broadcast %cst_225 : f32 to vector<8x128xf32>
    %487 = arith.addf %486, %485 : vector<8x128xf32>
    %488 = arith.divf %486, %487 : vector<8x128xf32>
    %489 = arith.mulf %480, %468 : vector<8x128xf32>
    %490 = arith.mulf %474, %482 : vector<8x128xf32>
    %491 = arith.addf %489, %490 : vector<8x128xf32>
    %492 = math.tanh %491 : vector<8x128xf32>
    %493 = arith.mulf %488, %492 : vector<8x128xf32>
    %c0_226 = arith.constant 0 : index
    %c0_227 = arith.constant 0 : index
    %494 = vector.load %arg10[%c0_226, %c0_227] : memref<8x128xf32, #tpu.memory_space<vmem>>, vector<8x128xf32>
    tpu.vector_store %arg10[%c0_226, %c0_227], %467 {strides = array<i32>} : memref<8x128xf32, #tpu.memory_space<vmem>>, vector<8x128xf32>,
    %c0_228 = arith.constant 0 : index
    %c0_229 = arith.constant 0 : index
    %495 = vector.load %arg11[%c0_228, %c0_229] : memref<8x128xf32, #tpu.memory_space<vmem>>, vector<8x128xf32>
    tpu.vector_store %arg11[%c0_228, %c0_229], %465 {strides = array<i32>} : memref<8x128xf32, #tpu.memory_space<vmem>>, vector<8x128xf32>,
    %c0_230 = arith.constant 0 : index
    %c0_231 = arith.constant 0 : index
    %496 = vector.load %arg12[%c0_230, %c0_231] : memref<8x128xf32, #tpu.memory_space<vmem>>, vector<8x128xf32>
    tpu.vector_store %arg12[%c0_230, %c0_231], %493 {strides = array<i32>} : memref<8x128xf32, #tpu.memory_space<vmem>>, vector<8x128xf32>,
    %c0_232 = arith.constant 0 : index
    %c0_233 = arith.constant 0 : index
    %497 = vector.load %arg13[%c0_232, %c0_233] : memref<8x128xf32, #tpu.memory_space<vmem>>, vector<8x128xf32>
    tpu.vector_store %arg13[%c0_232, %c0_233], %491 {strides = array<i32>} : memref<8x128xf32, #tpu.memory_space<vmem>>, vector<8x128xf32>,
    %c7_i32 = arith.constant 7 : i32
    %498 = arith.index_cast %c7_i32 : i32 to index
    %c0_234 = arith.constant 0 : index
    %c0_235 = arith.constant 0 : index
    %499 = vector.load %arg0[%498, %c0_234, %c0_235] : memref<8x8x512xf32, #tpu.memory_space<vmem>>, vector<1x8x512xf32>
    %500 = vector.shape_cast %499 : vector<1x8x512xf32> to vector<8x512xf32>
    %c0_236 = arith.constant 0 : index
    %c0_237 = arith.constant 0 : index
    %501 = vector.load %arg10[%c0_236, %c0_237] : memref<8x128xf32, #tpu.memory_space<vmem>>, vector<8x128xf32>
    %c0_238 = arith.constant 0 : index
    %c0_239 = arith.constant 0 : index
    %502 = vector.load %arg2[%c0_238, %c0_239] : memref<128x512xf32, #tpu.memory_space<vmem>>, vector<128x512xf32>
    %cst_240 = arith.constant dense<0.000000e+00> : vector<8x512xf32>
    %503 = tpu.matmul %501, %502, %cst_240 {dimension_numbers = #tpu.dot_dimension_numbers<[1], [0], [0], [1], [0, 0, 1, 1], [], []>} : vector<8x128xf32>, vector<128x512xf32>, vector<8x512xf32> -> vector<8x512xf32>
    %504 = arith.addf %500, %503 : vector<8x512xf32>
    %505 = arith.index_cast %c7_i32 : i32 to index
    %c0_241 = arith.constant 0 : index
    %c0_242 = arith.constant 0 : index
    %506 = vector.load %arg1[%505, %c0_241, %c0_242] : memref<8x8x512xf32, #tpu.memory_space<vmem>>, vector<1x8x512xf32>
    %507 = vector.shape_cast %506 : vector<1x8x512xf32> to vector<8x512xf32>
    %c0_243 = arith.constant 0 : index
    %c0_244 = arith.constant 0 : index
    %508 = vector.load %arg12[%c0_243, %c0_244] : memref<8x128xf32, #tpu.memory_space<vmem>>, vector<8x128xf32>
    %c0_245 = arith.constant 0 : index
    %c0_246 = arith.constant 0 : index
    %509 = vector.load %arg3[%c0_245, %c0_246] : memref<128x512xf32, #tpu.memory_space<vmem>>, vector<128x512xf32>
    %cst_247 = arith.constant dense<0.000000e+00> : vector<8x512xf32>
    %510 = tpu.matmul %508, %509, %cst_247 {dimension_numbers = #tpu.dot_dimension_numbers<[1], [0], [0], [1], [0, 0, 1, 1], [], []>} : vector<8x128xf32>, vector<128x512xf32>, vector<8x512xf32> -> vector<8x512xf32>
    %511 = arith.addf %507, %510 : vector<8x512xf32>
    %c0_248 = arith.constant 0 : index
    %c0_249 = arith.constant 0 : index
    %512 = vector.load %arg11[%c0_248, %c0_249] : memref<8x128xf32, #tpu.memory_space<vmem>>, vector<8x128xf32>
    %513 = vector.extract_strided_slice %504 {offsets = [0, 0], sizes = [8, 128], strides = [1, 1]} : vector<8x512xf32> to vector<8x128xf32>
    %514 = arith.negf %513 : vector<8x128xf32>
    %515 = math.exp %514 : vector<8x128xf32>
    %cst_250 = arith.constant 1.000000e+00 : f32
    %516 = vector.broadcast %cst_250 : f32 to vector<8x128xf32>
    %517 = arith.addf %516, %515 : vector<8x128xf32>
    %518 = arith.divf %516, %517 : vector<8x128xf32>
    %519 = vector.extract_strided_slice %504 {offsets = [0, 128], sizes = [8, 128], strides = [1, 1]} : vector<8x512xf32> to vector<8x128xf32>
    %520 = arith.negf %519 : vector<8x128xf32>
    %521 = math.exp %520 : vector<8x128xf32>
    %cst_251 = arith.constant 1.000000e+00 : f32
    %522 = vector.broadcast %cst_251 : f32 to vector<8x128xf32>
    %523 = arith.addf %522, %521 : vector<8x128xf32>
    %524 = arith.divf %522, %523 : vector<8x128xf32>
    %525 = vector.extract_strided_slice %504 {offsets = [0, 256], sizes = [8, 128], strides = [1, 1]} : vector<8x512xf32> to vector<8x128xf32>
    %526 = math.tanh %525 : vector<8x128xf32>
    %527 = vector.extract_strided_slice %504 {offsets = [0, 384], sizes = [8, 128], strides = [1, 1]} : vector<8x512xf32> to vector<8x128xf32>
    %528 = arith.negf %527 : vector<8x128xf32>
    %529 = math.exp %528 : vector<8x128xf32>
    %cst_252 = arith.constant 1.000000e+00 : f32
    %530 = vector.broadcast %cst_252 : f32 to vector<8x128xf32>
    %531 = arith.addf %530, %529 : vector<8x128xf32>
    %532 = arith.divf %530, %531 : vector<8x128xf32>
    %533 = arith.mulf %524, %512 : vector<8x128xf32>
    %534 = arith.mulf %518, %526 : vector<8x128xf32>
    %535 = arith.addf %533, %534 : vector<8x128xf32>
    %536 = math.tanh %535 : vector<8x128xf32>
    %537 = arith.mulf %532, %536 : vector<8x128xf32>
    %c0_253 = arith.constant 0 : index
    %c0_254 = arith.constant 0 : index
    %538 = vector.load %arg13[%c0_253, %c0_254] : memref<8x128xf32, #tpu.memory_space<vmem>>, vector<8x128xf32>
    %539 = vector.extract_strided_slice %511 {offsets = [0, 0], sizes = [8, 128], strides = [1, 1]} : vector<8x512xf32> to vector<8x128xf32>
    %540 = arith.negf %539 : vector<8x128xf32>
    %541 = math.exp %540 : vector<8x128xf32>
    %cst_255 = arith.constant 1.000000e+00 : f32
    %542 = vector.broadcast %cst_255 : f32 to vector<8x128xf32>
    %543 = arith.addf %542, %541 : vector<8x128xf32>
    %544 = arith.divf %542, %543 : vector<8x128xf32>
    %545 = vector.extract_strided_slice %511 {offsets = [0, 128], sizes = [8, 128], strides = [1, 1]} : vector<8x512xf32> to vector<8x128xf32>
    %546 = arith.negf %545 : vector<8x128xf32>
    %547 = math.exp %546 : vector<8x128xf32>
    %cst_256 = arith.constant 1.000000e+00 : f32
    %548 = vector.broadcast %cst_256 : f32 to vector<8x128xf32>
    %549 = arith.addf %548, %547 : vector<8x128xf32>
    %550 = arith.divf %548, %549 : vector<8x128xf32>
    %551 = vector.extract_strided_slice %511 {offsets = [0, 256], sizes = [8, 128], strides = [1, 1]} : vector<8x512xf32> to vector<8x128xf32>
    %552 = math.tanh %551 : vector<8x128xf32>
    %553 = vector.extract_strided_slice %511 {offsets = [0, 384], sizes = [8, 128], strides = [1, 1]} : vector<8x512xf32> to vector<8x128xf32>
    %554 = arith.negf %553 : vector<8x128xf32>
    %555 = math.exp %554 : vector<8x128xf32>
    %cst_257 = arith.constant 1.000000e+00 : f32
    %556 = vector.broadcast %cst_257 : f32 to vector<8x128xf32>
    %557 = arith.addf %556, %555 : vector<8x128xf32>
    %558 = arith.divf %556, %557 : vector<8x128xf32>
    %559 = arith.mulf %550, %538 : vector<8x128xf32>
    %560 = arith.mulf %544, %552 : vector<8x128xf32>
    %561 = arith.addf %559, %560 : vector<8x128xf32>
    %562 = math.tanh %561 : vector<8x128xf32>
    %563 = arith.mulf %558, %562 : vector<8x128xf32>
    %c0_258 = arith.constant 0 : index
    %c0_259 = arith.constant 0 : index
    %564 = vector.load %arg10[%c0_258, %c0_259] : memref<8x128xf32, #tpu.memory_space<vmem>>, vector<8x128xf32>
    tpu.vector_store %arg10[%c0_258, %c0_259], %537 {strides = array<i32>} : memref<8x128xf32, #tpu.memory_space<vmem>>, vector<8x128xf32>,
    %c0_260 = arith.constant 0 : index
    %c0_261 = arith.constant 0 : index
    %565 = vector.load %arg11[%c0_260, %c0_261] : memref<8x128xf32, #tpu.memory_space<vmem>>, vector<8x128xf32>
    tpu.vector_store %arg11[%c0_260, %c0_261], %535 {strides = array<i32>} : memref<8x128xf32, #tpu.memory_space<vmem>>, vector<8x128xf32>,
    %c0_262 = arith.constant 0 : index
    %c0_263 = arith.constant 0 : index
    %566 = vector.load %arg12[%c0_262, %c0_263] : memref<8x128xf32, #tpu.memory_space<vmem>>, vector<8x128xf32>
    tpu.vector_store %arg12[%c0_262, %c0_263], %563 {strides = array<i32>} : memref<8x128xf32, #tpu.memory_space<vmem>>, vector<8x128xf32>,
    %c0_264 = arith.constant 0 : index
    %c0_265 = arith.constant 0 : index
    %567 = vector.load %arg13[%c0_264, %c0_265] : memref<8x128xf32, #tpu.memory_space<vmem>>, vector<8x128xf32>
    tpu.vector_store %arg13[%c0_264, %c0_265], %561 {strides = array<i32>} : memref<8x128xf32, #tpu.memory_space<vmem>>, vector<8x128xf32>,
    %c8_i32 = arith.constant 8 : i32
    %c0_266 = arith.constant 0 : index
    %c0_267 = arith.constant 0 : index
    %568 = vector.load %arg10[%c0_266, %c0_267] : memref<8x128xf32, #tpu.memory_space<vmem>>, vector<8x128xf32>
    %c0_268 = arith.constant 0 : index
    %c0_269 = arith.constant 0 : index
    %569 = vector.load %arg4[%c0_268, %c0_269] : memref<128x128xf32, #tpu.memory_space<vmem>>, vector<128x128xf32>
    %cst_270 = arith.constant dense<0.000000e+00> : vector<8x128xf32>
    %570 = tpu.matmul %568, %569, %cst_270 {dimension_numbers = #tpu.dot_dimension_numbers<[1], [0], [0], [1], [0, 0, 1, 1], [], []>} : vector<8x128xf32>, vector<128x128xf32>, vector<8x128xf32> -> vector<8x128xf32>
    %c0_271 = arith.constant 0 : index
    %c0_272 = arith.constant 0 : index
    %571 = vector.load %arg12[%c0_271, %c0_272] : memref<8x128xf32, #tpu.memory_space<vmem>>, vector<8x128xf32>
    %c0_273 = arith.constant 0 : index
    %c0_274 = arith.constant 0 : index
    %572 = vector.load %arg5[%c0_273, %c0_274] : memref<128x128xf32, #tpu.memory_space<vmem>>, vector<128x128xf32>
    %cst_275 = arith.constant dense<0.000000e+00> : vector<8x128xf32>
    %573 = tpu.matmul %571, %572, %cst_275 {dimension_numbers = #tpu.dot_dimension_numbers<[1], [0], [0], [1], [0, 0, 1, 1], [], []>} : vector<8x128xf32>, vector<128x128xf32>, vector<8x128xf32> -> vector<8x128xf32>
    %574 = arith.addf %570, %573 : vector<8x128xf32>
    %c0_276 = arith.constant 0 : index
    %c0_277 = arith.constant 0 : index
    %575 = vector.load %arg6[%c0_276, %c0_277] : memref<1x128xf32, #tpu.memory_space<vmem>>, vector<1x128xf32>
    %576 = vector.broadcast %575 : vector<1x128xf32> to vector<8x128xf32>
    %577 = arith.addf %574, %576 : vector<8x128xf32>
    %cst_278 = arith.constant 0.000000e+00 : f32
    %578 = vector.broadcast %cst_278 : f32 to vector<8x128xf32>
    %579 = arith.cmpf oge, %577, %578 : vector<8x128xf32>
    %cst_279 = arith.constant 0.00999999977 : f32
    %580 = vector.broadcast %cst_279 : f32 to vector<8x128xf32>
    %581 = arith.mulf %580, %577 : vector<8x128xf32>
    %582 = arith.select %579, %577, %581 : vector<8x128xi1>, vector<8x128xf32>
    %c0_280 = arith.constant 0 : index
    %c0_281 = arith.constant 0 : index
    %583 = vector.load %arg7[%c0_280, %c0_281] : memref<128x1xf32, #tpu.memory_space<vmem>>, vector<128x1xf32>
    %cst_282 = arith.constant dense<0.000000e+00> : vector<8x1xf32>
    %584 = tpu.matmul %582, %583, %cst_282 {dimension_numbers = #tpu.dot_dimension_numbers<[1], [0], [0], [1], [0, 0, 1, 1], [], []>} : vector<8x128xf32>, vector<128x1xf32>, vector<8x1xf32> -> vector<8x1xf32>
    %c0_283 = arith.constant 0 : index
    %c0_284 = arith.constant 0 : index
    %585 = vector.load %arg8[%c0_283, %c0_284] : memref<1x1xf32, #tpu.memory_space<vmem>>, vector<1x1xf32>
    %586 = vector.broadcast %585 : vector<1x1xf32> to vector<8x1xf32>
    %587 = arith.addf %584, %586 : vector<8x1xf32>
    %c0_285 = arith.constant 0 : index
    %c0_286 = arith.constant 0 : index
    %588 = vector.load %arg9[%c0_285, %c0_286] : memref<8x1xf32, #tpu.memory_space<vmem>>, vector<8x1xf32>
    tpu.vector_store %arg9[%c0_285, %c0_286], %587 {strides = array<i32>} : memref<8x1xf32, #tpu.memory_space<vmem>>, vector<8x1xf32>,
    return
  }
}

</mosaic_0001>

<bundles_post_ra>
// kernel: lstm2_forward.1
= control target key start
LH: loop header
LB: loop body
LE: loop exit
PB: predicated region body
PF: predicated region fallthrough
CT: control target
= control target key end

     0   :  { %v8915_v3 = vmov 0.0   ;;  %vm5827_vm0 = vmmov 0   ;;  %vm4202_vm2 = vcmask 7168   ;;  %s8905_s2 = inlined_call_operand.vmem [shape: f32[128,512], index: 2, kind: input, shape index: {}]   ;;  %s8906_s3 = inlined_call_operand.vmem [shape: f32[128,512], index: 3, kind: input, shape index: {}]   ;;  %s8907_s0 = inlined_call_operand.vmem [shape: f32[8,8,512], index: 0, kind: input, shape index: {}]   ;;  %s8908_s1 = inlined_call_operand.vmem [shape: f32[8,8,512], index: 1, kind: input, shape index: {}]   ;;  %s8909_s4 = inlined_call_operand.vmem [shape: f32[128,128], index: 4, kind: input, shape index: {}]   ;;  %s8910_s5 = inlined_call_operand.vmem [shape: f32[128,128], index: 5, kind: input, shape index: {}]   ;;  %s8911_s7 = inlined_call_operand.vmem [shape: f32[128,1], index: 7, kind: input, shape index: {}]   ;;  %s8912_s8 = inlined_call_operand.<no memory space> [shape: f32[1,1], index: 8, kind: input, shape index: {}]   ;;  %s8913_s6 = inlined_call_operand.vmem [shape: f32[1,128], index: 6, kind: input, shape index: {}]   ;;  %s8914_s9 = inlined_call_operand.vmem [shape: f32[8,1], index: 9, kind: output, shape index: {}]  }
   0x1   :  { %v44_v0 = vld [vmem:[%s8905_s2 + $0x8] sm:$0xff]  ;;  %v43_v2 = vld [vmem:[%s8905_s2] sm:$0xff]  ;;  %171 = vmatprep.mubr.f32.mxu0 %v8915_v3  ;;  %242 = vmatprep.mubr.f32.mxu1 %v8915_v3  ;;  %v46_v19 = vld [vmem:[%s8905_s2 + $0x18] sm:$0xff] }
   0x2   :  { %v48_v1 = vld [vmem:[%s8905_s2 + $0x28] sm:$0xff]  ;;  %v47_v5 = vld [vmem:[%s8905_s2 + $0x20] sm:$0xff]  ;;  %v50_v20 = vld [vmem:[%s8905_s2 + $0x38] sm:$0xff] }
   0x3   :  { %v5889_v4 = vpack.c.bf16 %v48_v1, %v44_v0  ;;  %v52_v6 = vld [vmem:[%s8905_s2 + $0x48] sm:$0xff]  ;;  %v5900_v8 = vpack.c.bf16 %v47_v5, %v43_v2  ;;  %v51_v10 = vld [vmem:[%s8905_s2 + $0x40] sm:$0xff]  ;;  %v5941_v22 = vpack.c.bf16 %v50_v20, %v46_v19  ;;  %v45_v23 = vld [vmem:[%s8905_s2 + $0x10] sm:$0xff] }
   0x4   :  { %v56_v7 = vld [vmem:[%s8905_s2 + $0x68] sm:$0xff]  ;;  %v55_v11 = vld [vmem:[%s8905_s2 + $0x60] sm:$0xff]  ;;  %v49_v24 = vld [vmem:[%s8905_s2 + $0x30] sm:$0xff] }
   0x5   :  { %v5902_v9 = vpack.c.bf16 %v56_v7, %v52_v6  ;;  %v60_v12 = vld [vmem:[%s8905_s2 + $0x88] sm:$0xff]  ;;  %4471 = vmatprep.subr.bf16.mxu0 %v5889_v4  ;;  %v5918_v14 = vpack.c.bf16 %v55_v11, %v51_v10  ;;  %v59_v15 = vld [vmem:[%s8905_s2 + $0x80] sm:$0xff]  ;;  %v5949_v25 = vpack.c.bf16 %v49_v24, %v45_v23  ;;  %4503 = vmatprep.subr.bf16.mxu1 %v5941_v22  ;;  %v54_v27 = vld [vmem:[%s8905_s2 + $0x58] sm:$0xff] }
   0x6   :  { %v64_v13 = vld [vmem:[%s8905_s2 + $0xa8] sm:$0xff]  ;;  %4473 = vmatpush1.bf16.msra.mxu0 %v5900_v8  ;;  %v63_v16 = vld [vmem:[%s8905_s2 + $0xa0] sm:$0xff]  ;;  %v58_v28 = vld [vmem:[%s8905_s2 + $0x78] sm:$0xff] }
   0x7   :  { %4475 = vmatprep.subr.bf16.mxu0 %v5902_v9  ;;  %v5927_v17 = vpack.c.bf16 %v64_v13, %v60_v12  ;;  %v68_v18 = vld [vmem:[%s8905_s2 + $0xc8] sm:$0xff]  ;;  %v5952_v26 = vpack.c.bf16 %v63_v16, %v59_v15  ;;  %v53_v29 = vld [vmem:[%s8905_s2 + $0x50] sm:$0xff]  ;;  %v67_v31 = vld [vmem:[%s8905_s2 + $0xc0] sm:$0xff]  ;;  %4505 = vmatpush1.bf16.msra.mxu1 %v5949_v25  ;;  %v5974_v33 = vpack.c.bf16 %v58_v28, %v54_v27 }
   0x8   :  { %v72_v21 = vld [vmem:[%s8905_s2 + $0xe8] sm:$0xff]  ;;  %v71_v32 = vld [vmem:[%s8905_s2 + $0xe0] sm:$0xff]  ;;  %v57_v34 = vld [vmem:[%s8905_s2 + $0x70] sm:$0xff] }
   0x9   :  { %v5965_v30 = vpack.c.bf16 %v72_v21, %v68_v18  ;;  %v76_v35 = vld [vmem:[%s8905_s2 + $0x108] sm:$0xff]  ;;  %v5985_v37 = vpack.c.bf16 %v57_v34, %v53_v29  ;;  %v62_v38 = vld [vmem:[%s8905_s2 + $0x98] sm:$0xff]  ;;  %4507 = vmatprep.subr.bf16.mxu1 %v5974_v33  ;;  %v61_v40 = vld [vmem:[%s8905_s2 + $0x90] sm:$0xff]  ;;  %v6001_v42 = vpack.c.bf16 %v71_v32, %v67_v31 }
   0xa   :  { %4477 = vmatpush1.bf16.msra.mxu0 %v5918_v14  ;;  %v80_v36 = vld [vmem:[%s8905_s2 + $0x128] sm:$0xff]  ;;  %v66_v39 = vld [vmem:[%s8905_s2 + $0xb8] sm:$0xff]  ;;  %v65_v41 = vld [vmem:[%s8905_s2 + $0xb0] sm:$0xff] }
   0xb   :  { %4479 = vmatprep.subr.bf16.mxu0 %v5927_v17  ;;  %v75_v43 = vld [vmem:[%s8905_s2 + $0x100] sm:$0xff]  ;;  %v6009_v45 = vpack.c.bf16 %v66_v39, %v62_v38  ;;  %v6012_v46 = vpack.c.bf16 %v80_v36, %v76_v35  ;;  %4509 = vmatpush1.bf16.msra.mxu1 %v5985_v37  ;;  %v84_v47 = vld [vmem:[%s8905_s2 + $0x148] sm:$0xff]  ;;  %v6018_v48 = vpack.c.bf16 %v65_v41, %v61_v40  ;;  %v70_v49 = vld [vmem:[%s8905_s2 + $0xd8] sm:$0xff] }
   0xc   :  { %v79_v44 = vld [vmem:[%s8905_s2 + $0x120] sm:$0xff]  ;;  %v74_v50 = vld [vmem:[%s8905_s2 + $0xf8] sm:$0xff]  ;;  %v88_v51 = vld [vmem:[%s8905_s2 + $0x168] sm:$0xff] }
   0xd   :  { %4511 = vmatprep.subr.bf16.mxu1 %v6009_v45  ;;  %v6030_v52 = vpack.c.bf16 %v74_v50, %v70_v49  ;;  %v69_v53 = vld [vmem:[%s8905_s2 + $0xd0] sm:$0xff]  ;;  %v6039_v55 = vpack.c.bf16 %v79_v44, %v75_v43  ;;  %v78_v56 = vld [vmem:[%s8905_s2 + $0x118] sm:$0xff]  ;;  %v6048_v58 = vpack.c.bf16 %v88_v51, %v84_v47  ;;  %v83_v59 = vld [vmem:[%s8905_s2 + $0x140] sm:$0xff] }
   0xe   :  { %4481 = vmatpush1.bf16.msra.mxu0 %v5952_v26  ;;  %v73_v54 = vld [vmem:[%s8905_s2 + $0xf0] sm:$0xff]  ;;  %v82_v57 = vld [vmem:[%s8905_s2 + $0x138] sm:$0xff]  ;;  %v87_v60 = vld [vmem:[%s8905_s2 + $0x160] sm:$0xff] }
   0xf   :  { %4483 = vmatprep.subr.bf16.mxu0 %v5965_v30  ;;  %4513 = vmatpush1.bf16.msra.mxu1 %v6018_v48  ;;  %v92_v61 = vld [vmem:[%s8905_s2 + $0x188] sm:$0xff]  ;;  %v6060_v62 = vpack.c.bf16 %v73_v54, %v69_v53  ;;  %v6066_v0 = vpack.c.bf16 %v82_v57, %v78_v56  ;;  %v77_v1 = vld [vmem:[%s8905_s2 + $0x110] sm:$0xff]  ;;  %v86_v5 = vld [vmem:[%s8905_s2 + $0x158] sm:$0xff]  ;;  %v6081_v7 = vpack.c.bf16 %v87_v60, %v83_v59 }
  0x10   :  { %v96_v63 = vld [vmem:[%s8905_s2 + $0x1a8] sm:$0xff]  ;;  %4515 = vmatprep.subr.bf16.mxu1 %v6030_v52  ;;  %v81_v2 = vld [vmem:[%s8905_s2 + $0x130] sm:$0xff]  ;;  %v90_v6 = vld [vmem:[%s8905_s2 + $0x178] sm:$0xff] }
  0x11   :  { %v6084_v10 = vpack.c.bf16 %v96_v63, %v92_v61  ;;  %v91_v11 = vld [vmem:[%s8905_s2 + $0x180] sm:$0xff]  ;;  %v100_v13 = vld [vmem:[%s8905_s2 + $0x1c8] sm:$0xff]  ;;  %v6096_v15 = vpack.c.bf16 %v81_v2, %v77_v1  ;;  %v6102_v18 = vpack.c.bf16 %v90_v6, %v86_v5  ;;  %v85_v19 = vld [vmem:[%s8905_s2 + $0x150] sm:$0xff] }
  0x12   :  { %4485 = vmatpush1.bf16.msra.mxu0 %v6001_v42  ;;  %v95_v12 = vld [vmem:[%s8905_s2 + $0x1a0] sm:$0xff]  ;;  %v104_v16 = vld [vmem:[%s8905_s2 + $0x1e8] sm:$0xff]  ;;  %v89_v20 = vld [vmem:[%s8905_s2 + $0x170] sm:$0xff] }
  0x13   :  { %4487 = vmatprep.subr.bf16.mxu0 %v6012_v46  ;;  %4517 = vmatpush1.bf16.msra.mxu1 %v6060_v62  ;;  %v94_v21 = vld [vmem:[%s8905_s2 + $0x198] sm:$0xff]  ;;  %v6117_v24 = vpack.c.bf16 %v95_v12, %v91_v11  ;;  %v6120_v27 = vpack.c.bf16 %v104_v16, %v100_v13  ;;  %v99_v28 = vld [vmem:[%s8905_s2 + $0x1c0] sm:$0xff]  ;;  %v259_v31 = vld [vmem:[%s8906_s3 + $0x8] sm:$0xff]  ;;  %v6132_v32 = vpack.c.bf16 %v89_v20, %v85_v19 }
  0x14   :  { %4519 = vmatprep.subr.bf16.mxu1 %v6066_v0  ;;  %v98_v23 = vld [vmem:[%s8905_s2 + $0x1b8] sm:$0xff]  ;;  %v103_v29 = vld [vmem:[%s8905_s2 + $0x1e0] sm:$0xff]  ;;  %v263_v34 = vld [vmem:[%s8906_s3 + $0x28] sm:$0xff] }
  0x15   :  { %v6138_v35 = vpack.c.bf16 %v98_v23, %v94_v21  ;;  %v93_v36 = vld [vmem:[%s8905_s2 + $0x190] sm:$0xff]  ;;  %v102_v39 = vld [vmem:[%s8905_s2 + $0x1d8] sm:$0xff]  ;;  %v6153_v41 = vpack.c.bf16 %v103_v29, %v99_v28  ;;  %v6156_v43 = vpack.c.bf16 %v263_v34, %v259_v31  ;;  %v258_v44 = vld [vmem:[%s8906_s3] sm:$0xff] }
  0x16   :  { %4489 = vmatpush1.bf16.msra.mxu0 %v6039_v55  ;;  %v97_v38 = vld [vmem:[%s8905_s2 + $0x1b0] sm:$0xff]  ;;  %v106_v40 = vld [vmem:[%s8905_s2 + $0x1f8] sm:$0xff]  ;;  %v262_v47 = vld [vmem:[%s8906_s3 + $0x20] sm:$0xff] }
  0x17   :  { %4491 = vmatprep.subr.bf16.mxu0 %v6048_v58  ;;  %4521 = vmatpush1.bf16.msra.mxu1 %v6096_v15  ;;  %v267_v49 = vld [vmem:[%s8906_s3 + $0x48] sm:$0xff]  ;;  %v6168_v50 = vpack.c.bf16 %v97_v38, %v93_v36  ;;  %v6174_v53 = vpack.c.bf16 %v106_v40, %v102_v39  ;;  %v101_v54 = vld [vmem:[%s8905_s2 + $0x1d0] sm:$0xff]  ;;  %v261_v57 = vld [vmem:[%s8906_s3 + $0x18] sm:$0xff]  ;;  %v6189_v60 = vpack.c.bf16 %v262_v47, %v258_v44 }
  0x18   :  { %4523 = vmatprep.subr.bf16.mxu1 %v6102_v18  ;;  %v271_v51 = vld [vmem:[%s8906_s3 + $0x68] sm:$0xff]  ;;  %v105_v56 = vld [vmem:[%s8905_s2 + $0x1f0] sm:$0xff]  ;;  %v265_v59 = vld [vmem:[%s8906_s3 + $0x38] sm:$0xff] }
  0x19   :  { %v6192_v61 = vpack.c.bf16 %v271_v51, %v267_v49  ;;  %v266_v63 = vld [vmem:[%s8906_s3 + $0x40] sm:$0xff]  ;;  %v275_v2 = vld [vmem:[%s8906_s3 + $0x88] sm:$0xff]  ;;  %v6204_v5 = vpack.c.bf16 %v105_v56, %v101_v54  ;;  %v6210_v11 = vpack.c.bf16 %v265_v59, %v261_v57  ;;  %v260_v12 = vld [vmem:[%s8906_s3 + $0x10] sm:$0xff] }
  0x1a   :  { %4493 = vmatpush1.bf16.msra.mxu0 %v6081_v7  ;;  %v270_v1 = vld [vmem:[%s8906_s3 + $0x60] sm:$0xff]  ;;  %v279_v6 = vld [vmem:[%s8906_s3 + $0xa8] sm:$0xff]  ;;  %v264_v13 = vld [vmem:[%s8906_s3 + $0x30] sm:$0xff] }
  0x1b   :  { %4495 = vmatprep.subr.bf16.mxu0 %v6084_v10  ;;  %4525 = vmatpush1.bf16.msra.mxu1 %v6132_v32  ;;  %v269_v16 = vld [vmem:[%s8906_s3 + $0x58] sm:$0xff]  ;;  %v6226_v20 = vpack.c.bf16 %v270_v1, %v266_v63  ;;  %v6230_v21 = vpack.c.bf16 %v279_v6, %v275_v2  ;;  %v274_v23 = vld [vmem:[%s8906_s3 + $0x80] sm:$0xff]  ;;  %v283_v29 = vld [vmem:[%s8906_s3 + $0xc8] sm:$0xff]  ;;  %v6242_v31 = vpack.c.bf16 %v264_v13, %v260_v12 }
  0x1c   :  { %4527 = vmatprep.subr.bf16.mxu1 %v6138_v35  ;;  %v273_v19 = vld [vmem:[%s8906_s3 + $0x78] sm:$0xff]  ;;  %v278_v28 = vld [vmem:[%s8906_s3 + $0xa0] sm:$0xff]  ;;  %v287_v34 = vld [vmem:[%s8906_s3 + $0xe8] sm:$0xff] }
  0x1d   :  { %v6248_v36 = vpack.c.bf16 %v273_v19, %v269_v16  ;;  %v268_v38 = vld [vmem:[%s8906_s3 + $0x50] sm:$0xff]  ;;  %v277_v40 = vld [vmem:[%s8906_s3 + $0x98] sm:$0xff]  ;;  %v6263_v47 = vpack.c.bf16 %v278_v28, %v274_v23  ;;  %v6267_v49 = vpack.c.bf16 %v287_v34, %v283_v29  ;;  %v282_v51 = vld [vmem:[%s8906_s3 + $0xc0] sm:$0xff] }
  0x1e   :  { %4497 = vmatpush1.bf16.msra.mxu0 %v6117_v24  ;;  %v272_v39 = vld [vmem:[%s8906_s3 + $0x70] sm:$0xff]  ;;  %v281_v44 = vld [vmem:[%s8906_s3 + $0xb8] sm:$0xff]  ;;  %v286_v54 = vld [vmem:[%s8906_s3 + $0xe0] sm:$0xff] }
  0x1f   :  { %4499 = vmatprep.subr.bf16.mxu0 %v6120_v27  ;;  %4529 = vmatpush1.bf16.msra.mxu1 %v6168_v50  ;;  %v291_v56 = vld [vmem:[%s8906_s3 + $0x108] sm:$0xff]  ;;  %v6279_v57 = vpack.c.bf16 %v272_v39, %v268_v38  ;;  %v6285_v63 = vpack.c.bf16 %v281_v44, %v277_v40  ;;  %v276_v1 = vld [vmem:[%s8906_s3 + $0x90] sm:$0xff]  ;;  %v285_v6 = vld [vmem:[%s8906_s3 + $0xd8] sm:$0xff]  ;;  %v6301_v13 = vpack.c.bf16 %v286_v54, %v282_v51 }
  0x20   :  { %4531 = vmatprep.subr.bf16.mxu1 %v6174_v53  ;;  %v295_v59 = vld [vmem:[%s8906_s3 + $0x128] sm:$0xff]  ;;  %v280_v2 = vld [vmem:[%s8906_s3 + $0xb0] sm:$0xff]  ;;  %v289_v12 = vld [vmem:[%s8906_s3 + $0xf8] sm:$0xff] }
  0x21   :  { %v6304_v16 = vpack.c.bf16 %v295_v59, %v291_v56  ;;  %v290_v19 = vld [vmem:[%s8906_s3 + $0x100] sm:$0xff]  ;;  %v299_v28 = vld [vmem:[%s8906_s3 + $0x148] sm:$0xff]  ;;  %v6316_v29 = vpack.c.bf16 %v280_v2, %v276_v1  ;;  %v6322_v38 = vpack.c.bf16 %v289_v12, %v285_v6  ;;  %v284_v39 = vld [vmem:[%s8906_s3 + $0xd0] sm:$0xff] }
  0x22   :  { %4501 = vmatpush1.bf16.msra.mxu0 %v6153_v41  ;;  %v294_v23 = vld [vmem:[%s8906_s3 + $0x120] sm:$0xff]  ;;  %v303_v34 = vld [vmem:[%s8906_s3 + $0x168] sm:$0xff]  ;;  %v288_v40 = vld [vmem:[%s8906_s3 + $0xf0] sm:$0xff] }
  0x23   :  { %4535 = vmatprep.subr.bf16.mxu0 %v6156_v43  ;;  %4533 = vmatpush1.bf16.msra.mxu1 %v6204_v5  ;;  %8957 = vst [vmem:[#allocation7_spill] sm:$0xff] %v6304_v16  ;;  %v293_v44 = vld [vmem:[%s8906_s3 + $0x118] sm:$0xff]  ;;  %v6337_v54 = vpack.c.bf16 %v294_v23, %v290_v19  ;;  %v6340_v56 = vpack.c.bf16 %v303_v34, %v299_v28  ;;  %v298_v59 = vld [vmem:[%s8906_s3 + $0x140] sm:$0xff]  ;;  %v307_v2 = vld [vmem:[%s8906_s3 + $0x188] sm:$0xff] }
  0x24   :  { %4567 = vmatprep.subr.bf16.mxu1 %v6210_v11  ;;  %v297_v51 = vld [vmem:[%s8906_s3 + $0x138] sm:$0xff]  ;;  %v302_v1 = vld [vmem:[%s8906_s3 + $0x160] sm:$0xff]  ;;  %v6352_v6 = vpack.c.bf16 %v288_v40, %v284_v39  ;;  %v311_v12 = vld [vmem:[%s8906_s3 + $0x1a8] sm:$0xff] }
  0x25   :  { %172 = vmatmul.mubr.f32.vlgmr.msra.gmra.mrb[0].mxu0 %v8915_v3  ;;  %8958 = vst [vmem:[#allocation8_spill] sm:$0xff] %v6337_v54  ;;  %8959 = vst [vmem:[#allocation9_spill] sm:$0xff] %v6340_v56  ;;  %v6358_v19 = vpack.c.bf16 %v297_v51, %v293_v44  ;;  %v292_v23 = vld [vmem:[%s8906_s3 + $0x110] sm:$0xff]  ;;  %v301_v34 = vld [vmem:[%s8906_s3 + $0x158] sm:$0xff]  ;;  %v6373_v40 = vpack.c.bf16 %v302_v1, %v298_v59  ;;  %v6376_v44 = vpack.c.bf16 %v311_v12, %v307_v2 }
  0x26   :  { %4537 = vmatpush1.bf16.msra.mxu0 %v6189_v60  ;;  %386 = vmatprep.mubr.f32.mxu0 %v8915_v3  ;;  %8960 = vst [vmem:[#allocation10_spill] sm:$0xff] %v6352_v6  ;;  %v296_v28 = vld [vmem:[%s8906_s3 + $0x130] sm:$0xff]  ;;  %v305_v39 = vld [vmem:[%s8906_s3 + $0x178] sm:$0xff]  ;;  %v306_v51 = vld [vmem:[%s8906_s3 + $0x180] sm:$0xff] }
  0x27   :  { %4539 = vmatprep.subr.bf16.mxu0 %v6192_v61  ;;  %243 = vmatmul.mubr.f32.vlgmr.msra.gmra.mrb[0].mxu1 %v8915_v3  ;;  %8961 = vst [vmem:[#allocation11_spill] sm:$0xff] %v6358_v19  ;;  %8962 = vst [vmem:[#allocation12_spill] sm:$0xff] %v6376_v44  ;;  %v6388_v59 = vpack.c.bf16 %v296_v28, %v292_v23  ;;  %v319_v1 = vld [vmem:[%s8906_s3 + $0x1e8] sm:$0xff]  ;;  %v6394_v2 = vpack.c.bf16 %v305_v39, %v301_v34  ;;  %v300_v12 = vld [vmem:[%s8906_s3 + $0x150] sm:$0xff] }
  0x28   :  { %4569 = vmatpush1.bf16.msra.mxu1 %v6242_v31  ;;  %457 = vmatprep.mubr.f32.mxu1 %v8915_v3  ;;  %v310_v3 = vld [vmem:[%s8906_s3 + $0x1a0] sm:$0xff]  ;;  %v309_v23 = vld [vmem:[%s8906_s3 + $0x198] sm:$0xff] }
  0x29   :  { %4571 = vmatprep.subr.bf16.mxu1 %v6248_v36  ;;  %v313_v28 = vld [vmem:[%s8906_s3 + $0x1b8] sm:$0xff]  ;;  %v6409_v34 = vpack.c.bf16 %v310_v3, %v306_v51  ;;  %v312_v51 = vld [vmem:[%s8906_s3 + $0x1b0] sm:$0xff] }
  0x2a   :  { %4541 = vmatpush1.bf16.msra.mxu0 %v6226_v20  ;;  %v6424_v3 = vpack.c.bf16 %v313_v28, %v309_v23 }
  0x2b   :  { %4543 = vmatprep.subr.bf16.mxu0 %v6230_v21  ;;  %8963 = vst [vmem:[#allocation13_spill] sm:$0xff] %v6409_v34 }
  0x2c   :  { %4573 = vmatpush1.bf16.msra.mxu1 %v6279_v57 }
  0x2d   :  { %4575 = vmatprep.subr.bf16.mxu1 %v6285_v63 }
  0x2e   :  { %4545 = vmatpush1.bf16.msra.mxu0 %v6263_v47 }
  0x2f   :  { %4547 = vmatprep.subr.bf16.mxu0 %v6267_v49 }
  0x30   :  { %4577 = vmatpush1.bf16.msra.mxu1 %v6316_v29 }
  0x31   :  { %4579 = vmatprep.subr.bf16.mxu1 %v6322_v38 }
  0x32   :  { %4549 = vmatpush1.bf16.msra.mxu0 %v6301_v13 }
  0x33   :  { %4551 = vmatprep.subr.bf16.mxu0 %v6304_v16  ;;  %v318_v16 = vld [vmem:[%s8906_s3 + $0x1e0] sm:$0xff] }
  0x34   :  { %4581 = vmatpush1.bf16.msra.mxu1 %v6352_v6 }
  0x35   :  { %4583 = vmatprep.subr.bf16.mxu1 %v6358_v19  ;;  %v314_v19 = vld [vmem:[%s8906_s3 + $0x1c0] sm:$0xff] }
  0x36   :  { %4553 = vmatpush1.bf16.msra.mxu0 %v6337_v54  ;;  %v315_v54 = vld [vmem:[%s8906_s3 + $0x1c8] sm:$0xff] }
  0x37   :  { %4555 = vmatprep.subr.bf16.mxu0 %v6340_v56  ;;  %v304_v56 = vld [vmem:[%s8906_s3 + $0x170] sm:$0xff]  ;;  %v6412_v39 = vpack.c.bf16 %v319_v1, %v315_v54  ;;  %v317_v1 = vld [vmem:[%s8906_s3 + $0x1d8] sm:$0xff] }
  0x38   :  { %4585 = vmatpush1.bf16.msra.mxu1 %v6388_v59  ;;  %v6421_v6 = vpack.c.bf16 %v304_v56, %v300_v12  ;;  %v308_v54 = vld [vmem:[%s8906_s3 + $0x190] sm:$0xff]  ;;  %v321_v56 = vld [vmem:[%s8906_s3 + $0x1f8] sm:$0xff]  ;;  %v6439_v12 = vpack.c.bf16 %v318_v16, %v314_v19  ;;  %v8964_v19 = vmov 0.0  }
  0x39   :  { %4587 = vmatprep.subr.bf16.mxu1 %v6394_v2  ;;  %v6443_v23 = vpack.c.bf16 %v312_v51, %v308_v54  ;;  %v6446_v28 = vpack.c.bf16 %v321_v56, %v317_v1  ;;  %v255_v56 = vld [vmem:[%s8908_s1 + $0x10] sm:$0xff] }
  0x3a   :  { %4557 = vmatpush1.bf16.msra.mxu0 %v6373_v40 }
  0x3b   :  { %4559 = vmatprep.subr.bf16.mxu0 %v6376_v44  ;;  %v316_v44 = vld [vmem:[%s8906_s3 + $0x1d0] sm:$0xff] }
  0x3c   :  { %4589 = vmatpush1.bf16.msra.mxu1 %v6421_v6 }
  0x3d   :  { %4591 = vmatprep.subr.bf16.mxu1 %v6424_v3 }
  0x3e   :  { %4561 = vmatpush1.bf16.msra.mxu0 %v6409_v34  ;;  %v320_v34 = vld [vmem:[%s8906_s3 + $0x1f0] sm:$0xff] }
  0x3f   :  { %4563 = vmatprep.subr.bf16.mxu0 %v6412_v39  ;;  %v6456_v16 = vpack.c.bf16 %v320_v34, %v316_v44  ;;  %v256_v34 = vld [vmem:[%s8908_s1 + $0x18] sm:$0xff] }
  0x40   :  { %4593 = vmatpush1.bf16.msra.mxu1 %v6443_v23 }
  0x41   :  { %4595 = vmatprep.subr.bf16.mxu1 %v6446_v28 }
  0x42   :  { %4565 = vmatpush1.bf16.msra.mxu0 %v6439_v12 }
  0x43   :  { %4599 = vmatprep.subr.bf16.mxu0 %v5889_v4  ;;  %v38_v4 = vld [vmem:[%s8907_s0] sm:$0xff] }
  0x44   :  { %4597 = vmatpush1.bf16.msra.mxu1 %v6456_v16 }
  0x45   :  { %387 = vmatmul.mubr.f32.vlgmr.msra.gmra.mrb[2].mxu0 %v8964_v19  ;;  %4631 = vmatprep.subr.bf16.mxu1 %v5941_v22 }
  0x46   :  { %4601 = vmatpush1.bf16.msra.mxu0 %v5900_v8  ;;  %656 = vmatprep.mubr.f32.mxu0 %v8964_v19  ;;  %v39_v8 = vld [vmem:[%s8907_s0 + $0x8] sm:$0xff] }
  0x47   :  { %4603 = vmatprep.subr.bf16.mxu0 %v5902_v9  ;;  %458 = vmatmul.mubr.f32.vlgmr.msra.gmra.mrb[2].mxu1 %v8964_v19 }
  0x48   :  { %4633 = vmatpush1.bf16.msra.mxu1 %v5949_v25  ;;  %727 = vmatprep.mubr.f32.mxu1 %v8964_v19 }
  0x49   :  { %4635 = vmatprep.subr.bf16.mxu1 %v5974_v33 }
  0x4a   :  { %4605 = vmatpush1.bf16.msra.mxu0 %v5918_v14 }
  0x4b   :  { %4607 = vmatprep.subr.bf16.mxu0 %v5927_v17 }
  0x4c   :  { %4637 = vmatpush1.bf16.msra.mxu1 %v5985_v37 }
  0x4d   :  { %4639 = vmatprep.subr.bf16.mxu1 %v6009_v45  ;;  %v40_v45 = vld [vmem:[%s8907_s0 + $0x10] sm:$0xff] }
  0x4e   :  { %4609 = vmatpush1.bf16.msra.mxu0 %v5952_v26 }
  0x4f   :  { %4611 = vmatprep.subr.bf16.mxu0 %v5965_v30  ;;  %v41_v30 = vld [vmem:[%s8907_s0 + $0x18] sm:$0xff] }
  0x50   :  { %4641 = vmatpush1.bf16.msra.mxu1 %v6018_v48 }
  0x51   :  { %4643 = vmatprep.subr.bf16.mxu1 %v6030_v52 }
  0x52   :  { %4613 = vmatpush1.bf16.msra.mxu0 %v6001_v42 }
  0x53   :  { %4615 = vmatprep.subr.bf16.mxu0 %v6012_v46 }
  0x54   :  { %4645 = vmatpush1.bf16.msra.mxu1 %v6060_v62 }
  0x55   :  { %4647 = vmatprep.subr.bf16.mxu1 %v6066_v0 }
  0x56   :  { %4617 = vmatpush1.bf16.msra.mxu0 %v6039_v55 }
  0x57   :  { %4619 = vmatprep.subr.bf16.mxu0 %v6048_v58 }
  0x58   :  { %4649 = vmatpush1.bf16.msra.mxu1 %v6096_v15 }
  0x59   :  { %4651 = vmatprep.subr.bf16.mxu1 %v6102_v18 }
  0x5a   :  { %4621 = vmatpush1.bf16.msra.mxu0 %v6081_v7 }
  0x5b   :  { %4623 = vmatprep.subr.bf16.mxu0 %v6084_v10 }
  0x5c   :  { %4653 = vmatpush1.bf16.msra.mxu1 %v6132_v32  ;;  %v253_v32 = vld [vmem:[%s8908_s1] sm:$0xff] }
  0x5d   :  { %4655 = vmatprep.subr.bf16.mxu1 %v6138_v35  ;;  %v254_v35 = vld [vmem:[%s8908_s1 + $0x8] sm:$0xff] }
  0x5e   :  { %4625 = vmatpush1.bf16.msra.mxu0 %v6117_v24 }
  0x5f   :  { %4627 = vmatprep.subr.bf16.mxu0 %v6120_v27 }
  0x60   :  { %4657 = vmatpush1.bf16.msra.mxu1 %v6168_v50 }
  0x61   :  { %4659 = vmatprep.subr.bf16.mxu1 %v6174_v53 }
  0x62   :  { %4629 = vmatpush1.bf16.msra.mxu0 %v6153_v41 }
  0x63   :  { %4663 = vmatprep.subr.bf16.mxu0 %v6156_v43 }
  0x64   :  { %4661 = vmatpush1.bf16.msra.mxu1 %v6204_v5 }
  0x65   :  { %4695 = vmatprep.subr.bf16.mxu1 %v6210_v11 }
  0xf8   :  { %v173_v9 = vpop.f32.mrb[0].mxu0 }
  0xf9   :  { %v249_v14 = vadd.f32 %v173_v9, %v38_v4  ;;  %v175_v17 = vpop.f32.mrb[1].mxu0 }
  0xfa   :  { %v250_v22 = vadd.f32 %v175_v17, %v39_v8  ;;  %v244_v33 = vpop.f32.mrb[0].mxu1 }
  0xfb   :  { %v4208_v25 = vmul.f32 -1.442695, %v249_v14  ;;  %v246_v37 = vpop.f32.mrb[1].mxu1  ;;  %v251_v48 = vadd.f32 %v244_v33, %v40_v45  ;;  %v8966_v33 = vld [vmem:[#allocation7_spill] sm:$0xff] }
  0xfc   :  { %v4209_v26 = vmul.f32 -1.442695, %v250_v22  ;;  %v252_v42 = vadd.f32 %v246_v37, %v41_v30  ;;  %v8971_v37 = vld [vmem:[#allocation13_spill] sm:$0xff] }
  0xfd   :  { %5569 = vpow2.f32 %v4208_v25 }
  0xfe   :  { %5571 = vpow2.f32 %v4209_v26  ;;  %v4210_v46 = vmul.f32 -1.442695, %v252_v42 }
 0x100   :  { %5573 = vpow2.f32 %v4210_v46  ;;  %v1016_v46 = vld [vmem:[%s8905_s2 + $0x10] sm:$0xff] }
 0x101   :  { %5575 = vtanh.f32 %v251_v48  ;;  %v1020_v48 = vld [vmem:[%s8905_s2 + $0x30] sm:$0xff] }
 0x107   :  { %v5570_v52 = vpop.eup %5569 }
 0x108   :  { %v5572_v55 = vpop.eup %5571  ;;  %v472_v58 = vadd.f32 1.0, %v5570_v52  ;;  %v6593_v52 = vpack.c.bf16 %v1020_v48, %v1016_v46 }
 0x109   :  { %v478_v62 = vadd.f32 1.0, %v5572_v55  ;;  %v1023_v55 = vld [vmem:[%s8905_s2 + $0x48] sm:$0xff] }
 0x10a   :  { %5577 = vrcp.f32 %v472_v58  ;;  %v5574_v0 = vpop.eup %5573  ;;  %v1027_v58 = vld [vmem:[%s8905_s2 + $0x68] sm:$0xff] }
 0x10b   :  { %5579 = vrcp.f32 %v478_v62  ;;  %v5576_v7 = vpop.eup %5575  ;;  %v485_v15 = vadd.f32 1.0, %v5574_v0  ;;  %v1025_v62 = vld [vmem:[%s8905_s2 + $0x58] sm:$0xff]  ;;  %v6607_v0 = vpack.c.bf16 %v1027_v58, %v1023_v55  ;;  %v1056_v55 = vld [vmem:[%s8905_s2 + $0x150] sm:$0xff] }
 0x10c   :  { %v1060_v58 = vld [vmem:[%s8905_s2 + $0x170] sm:$0xff] }
 0x10d   :  { %5581 = vrcp.f32 %v485_v15  ;;  %v1026_v15 = vld [vmem:[%s8905_s2 + $0x60] sm:$0xff] }
 0x114   :  { %v5578_v10 = vpop.eup %5577 }
 0x115   :  { %v5580_v18 = vpop.eup %5579  ;;  %v489_v24 = vmul.f32 %v5578_v10, %v5576_v7  ;;  %v1029_v7 = vld [vmem:[%s8905_s2 + $0x78] sm:$0xff]  ;;  %v1022_v10 = vld [vmem:[%s8905_s2 + $0x40] sm:$0xff] }
 0x116   :  { %v488_v27 = vmul.f32 0.0, %v5580_v18  ;;  %v6618_v18 = vpack.c.bf16 %v1029_v7, %v1025_v62  ;;  %v6773_v62 = vpack.c.bf16 %v1060_v58, %v1056_v55  ;;  %v1063_v7 = vld [vmem:[%s8905_s2 + $0x188] sm:$0xff] }
 0x117   :  { %v5582_v4 = vpop.eup %5581 }
 0x118   :  { %v6516_v41 = vadd.f32 %v489_v24, %v488_v27  ;;  %v388_v43 = vpop.f32.mrb[2].mxu0  ;;  %v6620_v24 = vpack.c.bf16 %v1026_v15, %v1022_v10  ;;  %v1024_v27 = vld [vmem:[%s8905_s2 + $0x50] sm:$0xff]  ;;  %v1067_v10 = vld [vmem:[%s8905_s2 + $0x1a8] sm:$0xff]  ;;  %v1065_v15 = vld [vmem:[%s8905_s2 + $0x198] sm:$0xff] }
 0x119   :  { %v464_v50 = vadd.f32 %v388_v43, %v253_v32  ;;  %v390_v53 = vpop.f32.mrb[3].mxu0  ;;  %v1028_v32 = vld [vmem:[%s8905_s2 + $0x70] sm:$0xff]  ;;  %v1031_v43 = vld [vmem:[%s8905_s2 + $0x88] sm:$0xff] }
 0x11a   :  { %5583 = vtanh.f32 %v6516_v41  ;;  %v465_v5 = vadd.f32 %v390_v53, %v254_v35  ;;  %v459_v54 = vpop.f32.mrb[2].mxu1  ;;  %v6629_v35 = vpack.c.bf16 %v1028_v32, %v1024_v27  ;;  %v1033_v53 = vld [vmem:[%s8905_s2 + $0x98] sm:$0xff]  ;;  %v6786_v27 = vpack.c.bf16 %v1067_v10, %v1063_v7 }
 0x11b   :  { %v4211_v11 = vmul.f32 -1.442695, %v464_v50  ;;  %v461_v51 = vpop.f32.mrb[3].mxu1  ;;  %v466_v14 = vadd.f32 %v459_v54, %v255_v56  ;;  %v1035_v50 = vld [vmem:[%s8905_s2 + $0xa8] sm:$0xff]  ;;  %v1036_v56 = vld [vmem:[%s8905_s2 + $0xb0] sm:$0xff]  ;;  %v1069_v32 = vld [vmem:[%s8905_s2 + $0x1b8] sm:$0xff] }
 0x11c   :  { %v4212_v44 = vmul.f32 -1.442695, %v465_v5  ;;  %v467_v1 = vadd.f32 %v461_v51, %v256_v34  ;;  %v6643_v5 = vpack.c.bf16 %v1035_v50, %v1031_v43  ;;  %v1034_v34 = vld [vmem:[%s8905_s2 + $0xa0] sm:$0xff] }
 0x11d   :  { %5585 = vpow2.f32 %v4211_v11  ;;  %v1037_v11 = vld [vmem:[%s8905_s2 + $0xb8] sm:$0xff]  ;;  %v1062_v43 = vld [vmem:[%s8905_s2 + $0x180] sm:$0xff] }
 0x11e   :  { %5587 = vpow2.f32 %v4212_v44  ;;  %v4213_v8 = vmul.f32 -1.442695, %v467_v1  ;;  %v1030_v44 = vld [vmem:[%s8905_s2 + $0x80] sm:$0xff]  ;;  %v6654_v54 = vpack.c.bf16 %v1037_v11, %v1033_v53  ;;  %v1032_v1 = vld [vmem:[%s8905_s2 + $0x90] sm:$0xff]  ;;  %v6798_v53 = vpack.c.bf16 %v1069_v32, %v1065_v15  ;;  %v4217_v32 = vld [vmem:[%s8907_s0 + $0x38] sm:$0xff] }
 0x11f   :  { %v6656_v51 = vpack.c.bf16 %v1034_v34, %v1030_v44  ;;  %v1066_v50 = vld [vmem:[%s8905_s2 + $0x1a0] sm:$0xff]  ;;  %v1064_v44 = vld [vmem:[%s8905_s2 + $0x190] sm:$0xff] }
 0x120   :  { %5589 = vpow2.f32 %v4213_v8  ;;  %v1039_v8 = vld [vmem:[%s8905_s2 + $0xc8] sm:$0xff]  ;;  %v6800_v11 = vpack.c.bf16 %v1066_v50, %v1062_v43  ;;  %v1068_v34 = vld [vmem:[%s8905_s2 + $0x1b0] sm:$0xff] }
 0x121   :  { %5591 = vtanh.f32 %v466_v14  ;;  %v1041_v14 = vld [vmem:[%s8905_s2 + $0xd8] sm:$0xff]  ;;  %v4216_v50 = vld [vmem:[%s8907_s0 + $0x30] sm:$0xff] }
 0x124   :  { %v5584_v9 = vpop.eup %5583 }
 0x125   :  { %v492_v17 = vmul.f32 %v5584_v9, %v5582_v4  ;;  %v6665_v4 = vpack.c.bf16 %v1036_v56, %v1032_v1  ;;  %v1043_v9 = vld [vmem:[%s8905_s2 + $0xe8] sm:$0xff]  ;;  %v6809_v1 = vpack.c.bf16 %v1068_v34, %v1064_v44 }
 0x126   :  { %v1071_v56 = vld [vmem:[%s8905_s2 + $0x1c8] sm:$0xff] }
 0x127   :  { %v5586_v22 = vpop.eup %5585  ;;  %657 = vmatmul.mubr.f32.vlgmr.msra.gmra.mrb[4].mxu0 %v492_v17  ;;  %728 = vmatmul.mubr.f32.vlgmr.msra.gmra.mrb[4].mxu1 %v492_v17  ;;  %v6679_v17 = vpack.c.bf16 %v1043_v9, %v1039_v8  ;;  %v1075_v8 = vld [vmem:[%s8905_s2 + $0x1e8] sm:$0xff]  ;;  %v1073_v9 = vld [vmem:[%s8905_s2 + $0x1d8] sm:$0xff] }
 0x128   :  { %v5588_v25 = vpop.eup %5587  ;;  %v497_v26 = vadd.f32 1.0, %v5586_v22  ;;  %4665 = vmatpush1.bf16.msra.mxu0 %v6189_v60  ;;  %4697 = vmatpush1.bf16.msra.mxu1 %v6242_v31  ;;  %v1045_v22 = vld [vmem:[%s8905_s2 + $0xf8] sm:$0xff] }
 0x129   :  { %v503_v30 = vadd.f32 1.0, %v5588_v25  ;;  %4667 = vmatprep.subr.bf16.mxu0 %v6192_v61  ;;  %4699 = vmatprep.subr.bf16.mxu1 %v6248_v36  ;;  %v1038_v25 = vld [vmem:[%s8905_s2 + $0xc0] sm:$0xff] }
 0x12a   :  { %5593 = vrcp.f32 %v497_v26  ;;  %872 = vmatprep.mubr.f32.mxu0 %v8964_v19  ;;  %943 = vmatprep.mubr.f32.mxu1 %v8964_v19  ;;  %v5590_v60 = vpop.eup %5589  ;;  %v1042_v26 = vld [vmem:[%s8905_s2 + $0xe0] sm:$0xff] }
 0x12b   :  { %5595 = vrcp.f32 %v503_v30  ;;  %v5592_v61 = vpop.eup %5591  ;;  %v510_v36 = vadd.f32 1.0, %v5590_v60  ;;  %v6690_v30 = vpack.c.bf16 %v1045_v22, %v1041_v14  ;;  %v6692_v60 = vpack.c.bf16 %v1042_v26, %v1038_v25  ;;  %v1077_v22 = vld [vmem:[%s8905_s2 + $0x1f8] sm:$0xff]  ;;  %v1070_v25 = vld [vmem:[%s8905_s2 + $0x1c0] sm:$0xff] }
 0x12c   :  { %4669 = vmatpush1.bf16.msra.mxu0 %v6226_v20  ;;  %4701 = vmatpush1.bf16.msra.mxu1 %v6279_v57  ;;  %v8965_v20 = vld [vmem:[#allocation10_spill] sm:$0xff]  ;;  %v6822_v14 = vpack.c.bf16 %v1075_v8, %v1071_v56 }
 0x12d   :  { %4671 = vmatprep.subr.bf16.mxu0 %v6230_v21  ;;  %4703 = vmatprep.subr.bf16.mxu1 %v6285_v63  ;;  %v8967_v63 = vld [vmem:[#allocation11_spill] sm:$0xff]  ;;  %5597 = vrcp.f32 %v510_v36 }
 0x12e   :  { %v1074_v26 = vld [vmem:[%s8905_s2 + $0x1e0] sm:$0xff] }
 0x130   :  { %4673 = vmatpush1.bf16.msra.mxu0 %v6263_v47  ;;  %4705 = vmatpush1.bf16.msra.mxu1 %v6316_v29 }
 0x131   :  { %4675 = vmatprep.subr.bf16.mxu0 %v6267_v49  ;;  %4707 = vmatprep.subr.bf16.mxu1 %v6322_v38  ;;  %v8968_v49 = vld [vmem:[#allocation8_spill] sm:$0xff]  ;;  %v8969_v38 = vld [vmem:[#allocation9_spill] sm:$0xff] }
 0x134   :  { %v5594_v31 = vpop.eup %5593  ;;  %4677 = vmatpush1.bf16.msra.mxu0 %v6301_v13  ;;  %4709 = vmatpush1.bf16.msra.mxu1 %v8965_v20  ;;  %v8970_v13 = vld [vmem:[#allocation12_spill] sm:$0xff] }
 0x135   :  { %v5596_v57 = vpop.eup %5595  ;;  %v514_v21 = vmul.f32 %v5594_v31, %v5592_v61  ;;  %4679 = vmatprep.subr.bf16.mxu0 %v8966_v33  ;;  %4711 = vmatprep.subr.bf16.mxu1 %v8967_v63  ;;  %v1040_v61 = vld [vmem:[%s8905_s2 + $0xd0] sm:$0xff]  ;;  %v1047_v20 = vld [vmem:[%s8905_s2 + $0x108] sm:$0xff]  ;;  %v1053_v63 = vld [vmem:[%s8905_s2 + $0x138] sm:$0xff] }
 0x136   :  { %v513_v47 = vmul.f32 0.0, %v5596_v57  ;;  %v1044_v31 = vld [vmem:[%s8905_s2 + $0xf0] sm:$0xff]  ;;  %v1051_v57 = vld [vmem:[%s8905_s2 + $0x128] sm:$0xff] }
 0x137   :  { %v6701_v36 = vpack.c.bf16 %v1044_v31, %v1040_v61  ;;  %v6715_v33 = vpack.c.bf16 %v1051_v57, %v1047_v20  ;;  %v6834_v61 = vpack.c.bf16 %v1077_v22, %v1073_v9  ;;  %v6836_v31 = vpack.c.bf16 %v1074_v26, %v1070_v25  ;;  %v1072_v20 = vld [vmem:[%s8905_s2 + $0x1d0] sm:$0xff] }
 0x138   :  { %v6543_v29 = vadd.f32 %v514_v21, %v513_v47  ;;  %4681 = vmatpush1.bf16.msra.mxu0 %v8968_v49  ;;  %4713 = vmatpush1.bf16.msra.mxu1 %v6388_v59  ;;  %v5598_v59 = vpop.eup %5597  ;;  %v1049_v21 = vld [vmem:[%s8905_s2 + $0x118] sm:$0xff]  ;;  %v1046_v47 = vld [vmem:[%s8905_s2 + $0x100] sm:$0xff]  ;;  %v1076_v57 = vld [vmem:[%s8905_s2 + $0x1f0] sm:$0xff] }
 0x139   :  { %4683 = vmatprep.subr.bf16.mxu0 %v8969_v38  ;;  %4715 = vmatprep.subr.bf16.mxu1 %v6394_v2  ;;  %v1050_v49 = vld [vmem:[%s8905_s2 + $0x120] sm:$0xff]  ;;  %v6726_v38 = vpack.c.bf16 %v1053_v63, %v1049_v21  ;;  %v6845_v21 = vpack.c.bf16 %v1076_v57, %v1072_v20  ;;  %v1231_v63 = vld [vmem:[%s8906_s3 + $0x8] sm:$0xff] }
 0x13a   :  { %5599 = vtanh.f32 %v6543_v29 }
 0x13c   :  { %4685 = vmatpush1.bf16.msra.mxu0 %v6373_v40  ;;  %4717 = vmatpush1.bf16.msra.mxu1 %v6421_v6  ;;  %v1015_v6 = vld [vmem:[%s8905_s2 + $0x8] sm:$0xff] }
 0x13d   :  { %4687 = vmatprep.subr.bf16.mxu0 %v8970_v13  ;;  %4719 = vmatprep.subr.bf16.mxu1 %v6424_v3  ;;  %v1017_v3 = vld [vmem:[%s8905_s2 + $0x18] sm:$0xff]  ;;  %v6728_v13 = vpack.c.bf16 %v1050_v49, %v1046_v47  ;;  %v1235_v47 = vld [vmem:[%s8906_s3 + $0x28] sm:$0xff] }
 0x13e   :  { %v1233_v49 = vld [vmem:[%s8906_s3 + $0x18] sm:$0xff] }
 0x140   :  { %4689 = vmatpush1.bf16.msra.mxu0 %v8971_v37  ;;  %4721 = vmatpush1.bf16.msra.mxu1 %v6443_v23  ;;  %v1021_v23 = vld [vmem:[%s8905_s2 + $0x38] sm:$0xff]  ;;  %v1048_v37 = vld [vmem:[%s8905_s2 + $0x110] sm:$0xff] }
 0x141   :  { %4691 = vmatprep.subr.bf16.mxu0 %v6412_v39  ;;  %4723 = vmatprep.subr.bf16.mxu1 %v6446_v28  ;;  %v1019_v39 = vld [vmem:[%s8905_s2 + $0x28] sm:$0xff]  ;;  %v1014_v28 = vld [vmem:[%s8905_s2] sm:$0xff]  ;;  %v6582_v42 = vpack.c.bf16 %v1021_v23, %v1017_v3  ;;  %v1057_v3 = vld [vmem:[%s8905_s2 + $0x158] sm:$0xff] }
 0x142   :  { %v1061_v23 = vld [vmem:[%s8905_s2 + $0x178] sm:$0xff] }
 0x143   :  { %v6763_v46 = vpack.c.bf16 %v1061_v23, %v1057_v3  ;;  %v4215_v3 = vld [vmem:[%s8907_s0 + $0x28] sm:$0xff] }
 0x144   :  { %v5600_v2 = vpop.eup %5599  ;;  %4693 = vmatpush1.bf16.msra.mxu0 %v6439_v12  ;;  %4725 = vmatpush1.bf16.msra.mxu1 %v6456_v16  ;;  %v6571_v12 = vpack.c.bf16 %v1019_v39, %v1015_v6  ;;  %v1018_v16 = vld [vmem:[%s8905_s2 + $0x20] sm:$0xff]  ;;  %v1059_v6 = vld [vmem:[%s8905_s2 + $0x168] sm:$0xff] }
 0x145   :  { %v517_v40 = vmul.f32 %v5600_v2, %v5598_v59  ;;  %v6584_v45 = vpack.c.bf16 %v1018_v16, %v1014_v28  ;;  %4759 = vmatprep.subr.bf16.mxu1 %v6582_v42  ;;  %v1052_v59 = vld [vmem:[%s8905_s2 + $0x130] sm:$0xff]  ;;  %v1054_v28 = vld [vmem:[%s8905_s2 + $0x140] sm:$0xff] }
 0x146   :  { %4727 = vmatprep.subr.bf16.mxu0 %v6571_v12  ;;  %v6737_v2 = vpack.c.bf16 %v1052_v59, %v1048_v37  ;;  %v1058_v16 = vld [vmem:[%s8905_s2 + $0x160] sm:$0xff]  ;;  %v6858_v37 = vpack.c.bf16 %v1235_v47, %v1231_v63  ;;  %v1237_v59 = vld [vmem:[%s8906_s3 + $0x38] sm:$0xff] }
 0x147   :  { %873 = vmatmul.mubr.f32.vlgmr.msra.gmra.mrb[6].mxu0 %v517_v40  ;;  %944 = vmatmul.mubr.f32.vlgmr.msra.gmra.mrb[6].mxu1 %v517_v40  ;;  %v1055_v40 = vld [vmem:[%s8905_s2 + $0x148] sm:$0xff]  ;;  %v6765_v48 = vpack.c.bf16 %v1058_v16, %v1054_v28 }
 0x148   :  { %1142 = vmatprep.mubr.f32.mxu0 %v8964_v19  ;;  %1213 = vmatprep.mubr.f32.mxu1 %v8964_v19  ;;  %v6748_v39 = vpack.c.bf16 %v1059_v6, %v1055_v40  ;;  %v6864_v40 = vpack.c.bf16 %v1237_v59, %v1233_v49  ;;  %v4214_v6 = vld [vmem:[%s8907_s0 + $0x20] sm:$0xff] }
 0x149   :  { %4729 = vmatpush1.bf16.msra.mxu0 %v6584_v45  ;;  %4761 = vmatpush1.bf16.msra.mxu1 %v6593_v52  ;;  %v4218_v59 = vld [vmem:[%s8908_s1 + $0x20] sm:$0xff] }
 0x14a   :  { %4731 = vmatprep.subr.bf16.mxu0 %v6607_v0  ;;  %4763 = vmatprep.subr.bf16.mxu1 %v6618_v18 }
 0x14d   :  { %4733 = vmatpush1.bf16.msra.mxu0 %v6620_v24  ;;  %4765 = vmatpush1.bf16.msra.mxu1 %v6629_v35 }
 0x14e   :  { %4735 = vmatprep.subr.bf16.mxu0 %v6643_v5  ;;  %4767 = vmatprep.subr.bf16.mxu1 %v6654_v54 }
 0x151   :  { %4737 = vmatpush1.bf16.msra.mxu0 %v6656_v51  ;;  %4769 = vmatpush1.bf16.msra.mxu1 %v6665_v4 }
 0x152   :  { %4739 = vmatprep.subr.bf16.mxu0 %v6679_v17  ;;  %4771 = vmatprep.subr.bf16.mxu1 %v6690_v30 }
 0x155   :  { %4741 = vmatpush1.bf16.msra.mxu0 %v6692_v60  ;;  %4773 = vmatpush1.bf16.msra.mxu1 %v6701_v36 }
 0x156   :  { %4743 = vmatprep.subr.bf16.mxu0 %v6715_v33  ;;  %4775 = vmatprep.subr.bf16.mxu1 %v6726_v38 }
 0x159   :  { %4745 = vmatpush1.bf16.msra.mxu0 %v6728_v13  ;;  %4777 = vmatpush1.bf16.msra.mxu1 %v6737_v2 }
 0x15a   :  { %4747 = vmatprep.subr.bf16.mxu0 %v6748_v39  ;;  %4779 = vmatprep.subr.bf16.mxu1 %v6763_v46 }
 0x15d   :  { %4749 = vmatpush1.bf16.msra.mxu0 %v6765_v48  ;;  %4781 = vmatpush1.bf16.msra.mxu1 %v6773_v62 }
 0x15e   :  { %4751 = vmatprep.subr.bf16.mxu0 %v6786_v27  ;;  %4783 = vmatprep.subr.bf16.mxu1 %v6798_v53 }
 0x161   :  { %4753 = vmatpush1.bf16.msra.mxu0 %v6800_v11  ;;  %4785 = vmatpush1.bf16.msra.mxu1 %v6809_v1 }
 0x162   :  { %4755 = vmatprep.subr.bf16.mxu0 %v6822_v14  ;;  %4787 = vmatprep.subr.bf16.mxu1 %v6834_v61 }
 0x165   :  { %4757 = vmatpush1.bf16.msra.mxu0 %v6836_v31  ;;  %4789 = vmatpush1.bf16.msra.mxu1 %v6845_v21 }
 0x166   :  { %4791 = vmatprep.subr.bf16.mxu0 %v6858_v37  ;;  %4823 = vmatprep.subr.bf16.mxu1 %v6864_v40 }
 0x1fa   :  { %v658_v23 = vpop.f32.mrb[4].mxu0  ;;  %v729_v28 = vpop.f32.mrb[4].mxu1 }
 0x1fb   :  { %v734_v16 = vadd.f32 %v4214_v6, %v658_v23  ;;  %v660_v55 = vpop.f32.mrb[5].mxu0  ;;  %v731_v58 = vpop.f32.mrb[5].mxu1  ;;  %v736_v34 = vadd.f32 %v4216_v50, %v729_v28  ;;  %v4219_v6 = vld [vmem:[%s8908_s1 + $0x28] sm:$0xff]  ;;  %v1230_v50 = vld [vmem:[%s8906_s3] sm:$0xff] }
 0x1fc   :  { %v735_v7 = vadd.f32 %v4215_v3, %v660_v55  ;;  %v737_v43 = vadd.f32 %v4217_v32, %v731_v58  ;;  %v4220_v32 = vld [vmem:[%s8908_s1 + $0x30] sm:$0xff] }
 0x1fd   :  { %v4222_v10 = vmul.f32 -1.442695, %v734_v16 }
 0x1fe   :  { %v4223_v15 = vmul.f32 -1.442695, %v735_v7  ;;  %v4224_v44 = vmul.f32 -1.442695, %v737_v43 }
 0x1ff   :  { %5601 = vpow2.f32 %v4222_v10 }
 0x200   :  { %5603 = vpow2.f32 %v4223_v15  ;;  %v4221_v15 = vld [vmem:[%s8908_s1 + $0x38] sm:$0xff] }
 0x201   :  { %5605 = vpow2.f32 %v4224_v44  ;;  %v1234_v44 = vld [vmem:[%s8906_s3 + $0x20] sm:$0xff] }
 0x202   :  { %5607 = vtanh.f32 %v736_v34  ;;  %v1232_v34 = vld [vmem:[%s8906_s3 + $0x10] sm:$0xff] }
 0x209   :  { %v5602_v56 = vpop.eup %5601 }
 0x20a   :  { %v5604_v8 = vpop.eup %5603  ;;  %v958_v9 = vadd.f32 1.0, %v5602_v56  ;;  %v1236_v56 = vld [vmem:[%s8906_s3 + $0x30] sm:$0xff] }
 0x20b   :  { %v964_v22 = vadd.f32 1.0, %v5604_v8  ;;  %v5606_v25 = vpop.eup %5605  ;;  %v1239_v8 = vld [vmem:[%s8906_s3 + $0x48] sm:$0xff] }
 0x20c   :  { %5609 = vrcp.f32 %v958_v9  ;;  %v5608_v26 = vpop.eup %5607  ;;  %v971_v47 = vadd.f32 1.0, %v5606_v25  ;;  %v1243_v9 = vld [vmem:[%s8906_s3 + $0x68] sm:$0xff]  ;;  %v1245_v25 = vld [vmem:[%s8906_s3 + $0x78] sm:$0xff] }
 0x20d   :  { %5611 = vrcp.f32 %v964_v22  ;;  %v1241_v22 = vld [vmem:[%s8906_s3 + $0x58] sm:$0xff] }
 0x20e   :  { %5613 = vrcp.f32 %v971_v47  ;;  %v6922_v47 = vpack.c.bf16 %v1236_v56, %v1232_v34  ;;  %v1246_v56 = vld [vmem:[%s8906_s3 + $0x80] sm:$0xff] }
 0x216   :  { %v5610_v20 = vpop.eup %5609 }
 0x217   :  { %v5612_v57 = vpop.eup %5611  ;;  %v975_v63 = vmul.f32 %v5610_v20, %v5608_v26 }
 0x218   :  { %v974_v49 = vmul.f32 %v5612_v57, %v6516_v41  ;;  %v5614_v26 = vpop.eup %5613 }
 0x21a   :  { %v6887_v3 = vadd.f32 %v975_v63, %v974_v49  ;;  %v874_v23 = vpop.f32.mrb[6].mxu0  ;;  %v945_v28 = vpop.f32.mrb[6].mxu1  ;;  %v6920_v63 = vpack.c.bf16 %v1234_v44, %v1230_v50  ;;  %v1238_v49 = vld [vmem:[%s8906_s3 + $0x40] sm:$0xff] }
 0x21b   :  { %v950_v16 = vadd.f32 %v4218_v59, %v874_v23  ;;  %v876_v55 = vpop.f32.mrb[7].mxu0  ;;  %v947_v58 = vpop.f32.mrb[7].mxu1  ;;  %v1242_v59 = vld [vmem:[%s8906_s3 + $0x60] sm:$0xff] }
 0x21c   :  { %v951_v7 = vadd.f32 %v4219_v6, %v876_v55  ;;  %5615 = vtanh.f32 %v6887_v3  ;;  %v953_v43 = vadd.f32 %v4221_v15, %v947_v58  ;;  %v952_v6 = vadd.f32 %v4220_v32, %v945_v28  ;;  %v1240_v58 = vld [vmem:[%s8906_s3 + $0x50] sm:$0xff]  ;;  %v1251_v28 = vld [vmem:[%s8906_s3 + $0xa8] sm:$0xff]  ;;  %v1253_v15 = vld [vmem:[%s8906_s3 + $0xb8] sm:$0xff] }
 0x21d   :  { %v4225_v41 = vmul.f32 -1.442695, %v950_v16  ;;  %v6930_v16 = vpack.c.bf16 %v1243_v9, %v1239_v8  ;;  %v6932_v55 = vpack.c.bf16 %v1245_v25, %v1241_v22  ;;  %v6954_v44 = vpack.c.bf16 %v1242_v59, %v1238_v49  ;;  %v1250_v8 = vld [vmem:[%s8906_s3 + $0xa0] sm:$0xff]  ;;  %v1259_v49 = vld [vmem:[%s8906_s3 + $0xe8] sm:$0xff]  ;;  %v1257_v59 = vld [vmem:[%s8906_s3 + $0xd8] sm:$0xff] }
 0x21e   :  { %v4226_v10 = vmul.f32 -1.442695, %v951_v7  ;;  %v4227_v57 = vmul.f32 -1.442695, %v953_v43  ;;  %v1244_v7 = vld [vmem:[%s8906_s3 + $0x70] sm:$0xff] }
 0x21f   :  { %5617 = vpow2.f32 %v4225_v41  ;;  %v1247_v41 = vld [vmem:[%s8906_s3 + $0x88] sm:$0xff]  ;;  %v6956_v34 = vpack.c.bf16 %v1244_v7, %v1240_v58  ;;  %v1254_v7 = vld [vmem:[%s8906_s3 + $0xc0] sm:$0xff] }
 0x220   :  { %5619 = vpow2.f32 %v4226_v10  ;;  %v1249_v10 = vld [vmem:[%s8906_s3 + $0x98] sm:$0xff]  ;;  %v6966_v22 = vpack.c.bf16 %v1251_v28, %v1247_v41  ;;  %v1258_v41 = vld [vmem:[%s8906_s3 + $0xe0] sm:$0xff] }
 0x221   :  { %5621 = vpow2.f32 %v4227_v57  ;;  %8972 = vst [vmem:[#allocation10_spill] sm:$0xff] %v6956_v34  ;;  %v6968_v25 = vpack.c.bf16 %v1253_v15, %v1249_v10  ;;  %v1255_v57 = vld [vmem:[%s8906_s3 + $0xc8] sm:$0xff]  ;;  %v1256_v15 = vld [vmem:[%s8906_s3 + $0xd0] sm:$0xff] }
 0x222   :  { %5623 = vtanh.f32 %v952_v6  ;;  %8973 = vst [vmem:[#allocation7_spill] sm:$0xff] %v6966_v22  ;;  %v1261_v6 = vld [vmem:[%s8906_s3 + $0xf8] sm:$0xff]  ;;  %v7004_v28 = vpack.c.bf16 %v1259_v49, %v1255_v57  ;;  %v1266_v57 = vld [vmem:[%s8906_s3 + $0x120] sm:$0xff] }
 0x223   :  { %8974 = vst [vmem:[#allocation11_spill] sm:$0xff] %v6968_v25  ;;  %v7006_v10 = vpack.c.bf16 %v1261_v6, %v1257_v59  ;;  %v1264_v6 = vld [vmem:[%s8906_s3 + $0x110] sm:$0xff] }
 0x224   :  { %8977 = vst [vmem:[#allocation12_spill] sm:$0xff] %v7004_v28 }
 0x225   :  { %8978 = vst [vmem:[#allocation13_spill] sm:$0xff] %v7006_v10 }
 0x226   :  { %v5616_v20 = vpop.eup %5615 }
 0x227   :  { %v978_v23 = vmul.f32 %v5616_v20, %v5614_v26  ;;  %v1248_v26 = vld [vmem:[%s8906_s3 + $0x90] sm:$0xff] }
 0x228   :  { %v1252_v20 = vld [vmem:[%s8906_s3 + $0xb0] sm:$0xff] }
 0x229   :  { %v5618_v32 = vpop.eup %5617  ;;  %1143 = vmatmul.mubr.f32.vlgmr.msra.gmra.mrb[8].mxu0 %v978_v23  ;;  %1214 = vmatmul.mubr.f32.vlgmr.msra.gmra.mrb[8].mxu1 %v978_v23  ;;  %v6992_v23 = vpack.c.bf16 %v1250_v8, %v1246_v56  ;;  %v6994_v58 = vpack.c.bf16 %v1252_v20, %v1248_v26  ;;  %v1265_v56 = vld [vmem:[%s8906_s3 + $0x118] sm:$0xff]  ;;  %v1262_v20 = vld [vmem:[%s8906_s3 + $0x100] sm:$0xff] }
 0x22a   :  { %v5620_v43 = vpop.eup %5619  ;;  %v983_v50 = vadd.f32 1.0, %v5618_v32  ;;  %4793 = vmatpush1.bf16.msra.mxu0 %v6920_v63  ;;  %4825 = vmatpush1.bf16.msra.mxu1 %v6922_v47  ;;  %v1260_v32 = vld [vmem:[%s8906_s3 + $0xf0] sm:$0xff]  ;;  %v1269_v8 = vld [vmem:[%s8906_s3 + $0x138] sm:$0xff] }
 0x22b   :  { %v989_v9 = vadd.f32 1.0, %v5620_v43  ;;  %4795 = vmatprep.subr.bf16.mxu0 %v6930_v16  ;;  %4827 = vmatprep.subr.bf16.mxu1 %v6932_v55  ;;  %8975 = vst [vmem:[#allocation8_spill] sm:$0xff] %v6992_v23  ;;  %8976 = vst [vmem:[#allocation9_spill] sm:$0xff] %v6994_v58  ;;  %v1263_v43 = vld [vmem:[%s8906_s3 + $0x108] sm:$0xff]  ;;  %v7030_v26 = vpack.c.bf16 %v1260_v32, %v1256_v15  ;;  %v7042_v59 = vpack.c.bf16 %v1269_v8, %v1265_v56  ;;  %v5622_v15 = vpop.eup %5621 }
 0x22c   :  { %5625 = vrcp.f32 %v983_v50  ;;  %1358 = vmatprep.mubr.f32.mxu0 %v8964_v19  ;;  %1429 = vmatprep.mubr.f32.mxu1 %v8964_v19  ;;  %v1267_v50 = vld [vmem:[%s8906_s3 + $0x128] sm:$0xff]  ;;  %v5624_v56 = vpop.eup %5623 }
 0x22d   :  { %5627 = vrcp.f32 %v989_v9  ;;  %v7028_v9 = vpack.c.bf16 %v1258_v41, %v1254_v7  ;;  %8979 = vst [vmem:[#allocation14_spill] sm:$0xff] %v7030_v26  ;;  %v7040_v49 = vpack.c.bf16 %v1267_v50, %v1263_v43  ;;  %v1268_v7 = vld [vmem:[%s8906_s3 + $0x130] sm:$0xff]  ;;  %v1271_v41 = vld [vmem:[%s8906_s3 + $0x148] sm:$0xff]  ;;  %v1273_v43 = vld [vmem:[%s8906_s3 + $0x158] sm:$0xff] }
 0x22e   :  { %4797 = vmatpush1.bf16.msra.mxu0 %v6954_v44  ;;  %4829 = vmatpush1.bf16.msra.mxu1 %v6956_v34  ;;  %v1275_v32 = vld [vmem:[%s8906_s3 + $0x168] sm:$0xff]  ;;  %v1277_v50 = vld [vmem:[%s8906_s3 + $0x178] sm:$0xff]  ;;  %v996_v34 = vadd.f32 1.0, %v5622_v15 }
 0x22f   :  { %4799 = vmatprep.subr.bf16.mxu0 %v6966_v22  ;;  %4831 = vmatprep.subr.bf16.mxu1 %v6968_v25 }
 0x230   :  { %5629 = vrcp.f32 %v996_v34  ;;  %v1287_v34 = vld [vmem:[%s8906_s3 + $0x1c8] sm:$0xff] }
 0x232   :  { %4801 = vmatpush1.bf16.msra.mxu0 %v6992_v23  ;;  %4833 = vmatpush1.bf16.msra.mxu1 %v6994_v58  ;;  %v1270_v58 = vld [vmem:[%s8906_s3 + $0x140] sm:$0xff] }
 0x233   :  { %4803 = vmatprep.subr.bf16.mxu0 %v7004_v28  ;;  %4835 = vmatprep.subr.bf16.mxu1 %v7006_v10  ;;  %v7064_v10 = vpack.c.bf16 %v1266_v57, %v1262_v20  ;;  %v7066_v28 = vpack.c.bf16 %v1268_v7, %v1264_v6  ;;  %v1274_v23 = vld [vmem:[%s8906_s3 + $0x160] sm:$0xff]  ;;  %v7078_v20 = vpack.c.bf16 %v1277_v50, %v1273_v43  ;;  %v1272_v57 = vld [vmem:[%s8906_s3 + $0x150] sm:$0xff]  ;;  %v1279_v7 = vld [vmem:[%s8906_s3 + $0x188] sm:$0xff] }
 0x234   :  { %v1276_v6 = vld [vmem:[%s8906_s3 + $0x170] sm:$0xff]  ;;  %v1285_v43 = vld [vmem:[%s8906_s3 + $0x1b8] sm:$0xff] }
 0x235   :  { %8981 = vst [vmem:[#allocation16_spill] sm:$0xff] %v7078_v20 }
 0x236   :  { %v5626_v8 = vpop.eup %5625  ;;  %4805 = vmatpush1.bf16.msra.mxu0 %v7028_v9  ;;  %4837 = vmatpush1.bf16.msra.mxu1 %v7030_v26  ;;  %v7076_v26 = vpack.c.bf16 %v1275_v32, %v1271_v41  ;;  %v1283_v41 = vld [vmem:[%s8906_s3 + $0x1a8] sm:$0xff]  ;;  %v1281_v32 = vld [vmem:[%s8906_s3 + $0x198] sm:$0xff] }
 0x237   :  { %v5628_v25 = vpop.eup %5627  ;;  %v1000_v22 = vmul.f32 %v5626_v8, %v5624_v56  ;;  %4807 = vmatprep.subr.bf16.mxu0 %v7040_v49  ;;  %4839 = vmatprep.subr.bf16.mxu1 %v7042_v59  ;;  %v7103_v56 = vpack.c.bf16 %v1274_v23, %v1270_v58  ;;  %v1282_v8 = vld [vmem:[%s8906_s3 + $0x1a0] sm:$0xff]  ;;  %v1280_v23 = vld [vmem:[%s8906_s3 + $0x190] sm:$0xff] }
 0x238   :  { %8980 = vst [vmem:[#allocation15_spill] sm:$0xff] %v7076_v26  ;;  %v999_v15 = vmul.f32 %v5628_v25, %v6543_v29  ;;  %v7105_v29 = vpack.c.bf16 %v1276_v6, %v1272_v57  ;;  %v1278_v25 = vld [vmem:[%s8906_s3 + $0x180] sm:$0xff]  ;;  %v1284_v58 = vld [vmem:[%s8906_s3 + $0x1b0] sm:$0xff]  ;;  %v1291_v57 = vld [vmem:[%s8906_s3 + $0x1e8] sm:$0xff] }
 0x239   :  { %v1289_v6 = vld [vmem:[%s8906_s3 + $0x1d8] sm:$0xff] }
 0x23a   :  { %v7099_v50 = vadd.f32 %v1000_v22, %v999_v15  ;;  %4809 = vmatpush1.bf16.msra.mxu0 %v7064_v10  ;;  %4841 = vmatpush1.bf16.msra.mxu1 %v7066_v28  ;;  %8982 = vst [vmem:[#allocation17_spill] sm:$0xff] %v7105_v29  ;;  %v7115_v22 = vpack.c.bf16 %v1283_v41, %v1279_v7  ;;  %v1293_v7 = vld [vmem:[%s8906_s3 + $0x1f8] sm:$0xff] }
 0x23b   :  { %4811 = vmatprep.subr.bf16.mxu0 %v7076_v26  ;;  %4843 = vmatprep.subr.bf16.mxu1 %v7078_v20  ;;  %v7117_v15 = vpack.c.bf16 %v1285_v43, %v1281_v32  ;;  %v7140_v41 = vpack.c.bf16 %v1282_v8, %v1278_v25  ;;  %v7142_v32 = vpack.c.bf16 %v1284_v58, %v1280_v23  ;;  %v1286_v43 = vld [vmem:[%s8906_s3 + $0x1c0] sm:$0xff]  ;;  %v1288_v25 = vld [vmem:[%s8906_s3 + $0x1d0] sm:$0xff] }
 0x23c   :  { %5631 = vtanh.f32 %v7099_v50  ;;  %v7149_v20 = vpack.c.bf16 %v1291_v57, %v1287_v34  ;;  %v7151_v26 = vpack.c.bf16 %v1293_v7, %v1289_v6  ;;  %v1292_v8 = vld [vmem:[%s8906_s3 + $0x1f0] sm:$0xff]  ;;  %v5630_v34 = vpop.eup %5629 }
 0x23d   :  { %v7166_v58 = vpack.c.bf16 %v1292_v8, %v1288_v25  ;;  %v4234_v8 = vld [vmem:[%s8908_s1 + $0x50] sm:$0xff] }
 0x23e   :  { %4813 = vmatpush1.bf16.msra.mxu0 %v7103_v56  ;;  %4845 = vmatpush1.bf16.msra.mxu1 %v7105_v29  ;;  %v1290_v29 = vld [vmem:[%s8906_s3 + $0x1e0] sm:$0xff] }
 0x23f   :  { %4815 = vmatprep.subr.bf16.mxu0 %v7115_v22  ;;  %4847 = vmatprep.subr.bf16.mxu1 %v7117_v15  ;;  %v7164_v23 = vpack.c.bf16 %v1290_v29, %v1286_v43  ;;  %v4235_v43 = vld [vmem:[%s8908_s1 + $0x58] sm:$0xff] }
 0x242   :  { %4817 = vmatpush1.bf16.msra.mxu0 %v7140_v41  ;;  %4849 = vmatpush1.bf16.msra.mxu1 %v7142_v32 }
 0x243   :  { %4819 = vmatprep.subr.bf16.mxu0 %v7149_v20  ;;  %4851 = vmatprep.subr.bf16.mxu1 %v7151_v26 }
 0x246   :  { %v5632_v57 = vpop.eup %5631  ;;  %4821 = vmatpush1.bf16.msra.mxu0 %v7164_v23  ;;  %4853 = vmatpush1.bf16.msra.mxu1 %v7166_v58 }
 0x247   :  { %v1003_v6 = vmul.f32 %v5632_v57, %v5630_v34  ;;  %4855 = vmatprep.subr.bf16.mxu0 %v6571_v12  ;;  %4887 = vmatprep.subr.bf16.mxu1 %v6582_v42  ;;  %v4228_v12 = vld [vmem:[%s8907_s0 + $0x40] sm:$0xff]  ;;  %v4229_v42 = vld [vmem:[%s8907_s0 + $0x48] sm:$0xff] }
 0x249   :  { %1359 = vmatmul.mubr.f32.vlgmr.msra.gmra.mrb[10].mxu0 %v1003_v6  ;;  %1430 = vmatmul.mubr.f32.vlgmr.msra.gmra.mrb[10].mxu1 %v1003_v6 }
 0x24a   :  { %4857 = vmatpush1.bf16.msra.mxu0 %v6584_v45  ;;  %4889 = vmatpush1.bf16.msra.mxu1 %v6593_v52 }
 0x24b   :  { %4859 = vmatprep.subr.bf16.mxu0 %v6607_v0  ;;  %4891 = vmatprep.subr.bf16.mxu1 %v6618_v18 }
 0x24c   :  { %1628 = vmatprep.mubr.f32.mxu0 %v8964_v19  ;;  %1699 = vmatprep.mubr.f32.mxu1 %v8964_v19 }
 0x24e   :  { %4861 = vmatpush1.bf16.msra.mxu0 %v6620_v24  ;;  %4893 = vmatpush1.bf16.msra.mxu1 %v6629_v35 }
 0x24f   :  { %4863 = vmatprep.subr.bf16.mxu0 %v6643_v5  ;;  %4895 = vmatprep.subr.bf16.mxu1 %v6654_v54 }
 0x252   :  { %4865 = vmatpush1.bf16.msra.mxu0 %v6656_v51  ;;  %4897 = vmatpush1.bf16.msra.mxu1 %v6665_v4  ;;  %v4231_v51 = vld [vmem:[%s8907_s0 + $0x58] sm:$0xff] }
 0x253   :  { %4867 = vmatprep.subr.bf16.mxu0 %v6679_v17  ;;  %4899 = vmatprep.subr.bf16.mxu1 %v6690_v30  ;;  %v4230_v17 = vld [vmem:[%s8907_s0 + $0x50] sm:$0xff] }
 0x256   :  { %4869 = vmatpush1.bf16.msra.mxu0 %v6692_v60  ;;  %4901 = vmatpush1.bf16.msra.mxu1 %v6701_v36 }
 0x257   :  { %4871 = vmatprep.subr.bf16.mxu0 %v6715_v33  ;;  %4903 = vmatprep.subr.bf16.mxu1 %v6726_v38 }
 0x25a   :  { %4873 = vmatpush1.bf16.msra.mxu0 %v6728_v13  ;;  %4905 = vmatpush1.bf16.msra.mxu1 %v6737_v2 }
 0x25b   :  { %4875 = vmatprep.subr.bf16.mxu0 %v6748_v39  ;;  %4907 = vmatprep.subr.bf16.mxu1 %v6763_v46 }
 0x25e   :  { %4877 = vmatpush1.bf16.msra.mxu0 %v6765_v48  ;;  %4909 = vmatpush1.bf16.msra.mxu1 %v6773_v62 }
 0x25f   :  { %4879 = vmatprep.subr.bf16.mxu0 %v6786_v27  ;;  %4911 = vmatprep.subr.bf16.mxu1 %v6798_v53 }
 0x262   :  { %4881 = vmatpush1.bf16.msra.mxu0 %v6800_v11  ;;  %4913 = vmatpush1.bf16.msra.mxu1 %v6809_v1  ;;  %v4232_v11 = vld [vmem:[%s8908_s1 + $0x40] sm:$0xff]  ;;  %v4233_v1 = vld [vmem:[%s8908_s1 + $0x48] sm:$0xff] }
 0x263   :  { %4883 = vmatprep.subr.bf16.mxu0 %v6822_v14  ;;  %4915 = vmatprep.subr.bf16.mxu1 %v6834_v61 }
 0x266   :  { %4885 = vmatpush1.bf16.msra.mxu0 %v6836_v31  ;;  %4917 = vmatpush1.bf16.msra.mxu1 %v6845_v21 }
 0x267   :  { %4919 = vmatprep.subr.bf16.mxu0 %v6858_v37  ;;  %4951 = vmatprep.subr.bf16.mxu1 %v6864_v40 }
 0x2fc   :  { %v1144_v45 = vpop.f32.mrb[8].mxu0  ;;  %v1215_v52 = vpop.f32.mrb[8].mxu1 }
 0x2fd   :  { %v1220_v0 = vadd.f32 %v4228_v12, %v1144_v45  ;;  %v1146_v18 = vpop.f32.mrb[9].mxu0  ;;  %v1217_v24 = vpop.f32.mrb[9].mxu1  ;;  %v1222_v60 = vadd.f32 %v4230_v17, %v1215_v52 }
 0x2fe   :  { %v1221_v35 = vadd.f32 %v4229_v42, %v1146_v18  ;;  %v1223_v4 = vadd.f32 %v4231_v51, %v1217_v24  ;;  %v8983_v24 = vld [vmem:[#allocation10_spill] sm:$0xff] }
 0x2ff   :  { %v4236_v5 = vmul.f32 -1.442695, %v1220_v0 }
 0x300   :  { %v4237_v54 = vmul.f32 -1.442695, %v1221_v35  ;;  %v4238_v30 = vmul.f32 -1.442695, %v1223_v4  ;;  %v8984_v35 = vld [vmem:[#allocation7_spill] sm:$0xff] }
 0x301   :  { %5633 = vpow2.f32 %v4236_v5  ;;  %v8987_v5 = vld [vmem:[#allocation9_spill] sm:$0xff] }
 0x302   :  { %5635 = vpow2.f32 %v4237_v54 }
 0x303   :  { %5637 = vpow2.f32 %v4238_v30 }
 0x304   :  { %5639 = vtanh.f32 %v1222_v60 }
 0x30b   :  { %v5634_v36 = vpop.eup %5633 }
 0x30c   :  { %v5636_v33 = vpop.eup %5635  ;;  %v1444_v38 = vadd.f32 1.0, %v5634_v36 }
 0x30d   :  { %v1450_v13 = vadd.f32 1.0, %v5636_v33  ;;  %v5638_v2 = vpop.eup %5637 }
 0x30e   :  { %5641 = vrcp.f32 %v1444_v38  ;;  %v5640_v39 = vpop.eup %5639  ;;  %v1457_v27 = vadd.f32 1.0, %v5638_v2  ;;  %v8991_v38 = vld [vmem:[#allocation15_spill] sm:$0xff] }
 0x30f   :  { %5643 = vrcp.f32 %v1450_v13  ;;  %v1992_v13 = vld [vmem:[%s8905_s2 + $0x30] sm:$0xff] }
 0x310   :  { %5645 = vrcp.f32 %v1457_v27  ;;  %v2001_v27 = vld [vmem:[%s8905_s2 + $0x78] sm:$0xff] }
 0x318   :  { %v5642_v46 = vpop.eup %5641 }
 0x319   :  { %v5644_v48 = vpop.eup %5643  ;;  %v1461_v62 = vmul.f32 %v5642_v46, %v5640_v39  ;;  %v1995_v39 = vld [vmem:[%s8905_s2 + $0x48] sm:$0xff] }
 0x31a   :  { %v1460_v53 = vmul.f32 %v5644_v48, %v6887_v3  ;;  %v5646_v34 = vpop.eup %5645  ;;  %v1999_v46 = vld [vmem:[%s8905_s2 + $0x68] sm:$0xff]  ;;  %v1997_v48 = vld [vmem:[%s8905_s2 + $0x58] sm:$0xff] }
 0x31c   :  { %v7227_v14 = vadd.f32 %v1461_v62, %v1460_v53  ;;  %v1360_v61 = vpop.f32.mrb[10].mxu0  ;;  %v1431_v31 = vpop.f32.mrb[10].mxu1  ;;  %v7319_v62 = vpack.c.bf16 %v1999_v46, %v1995_v39  ;;  %v1994_v53 = vld [vmem:[%s8905_s2 + $0x40] sm:$0xff]  ;;  %v2028_v39 = vld [vmem:[%s8905_s2 + $0x150] sm:$0xff] }
 0x31d   :  { %v1436_v21 = vadd.f32 %v4232_v11, %v1360_v61  ;;  %v1362_v37 = vpop.f32.mrb[11].mxu0  ;;  %v1433_v40 = vpop.f32.mrb[11].mxu1  ;;  %v1438_v12 = vadd.f32 %v4234_v8, %v1431_v31  ;;  %v1998_v11 = vld [vmem:[%s8905_s2 + $0x60] sm:$0xff]  ;;  %v1996_v31 = vld [vmem:[%s8905_s2 + $0x50] sm:$0xff] }
 0x31e   :  { %v1437_v29 = vadd.f32 %v4233_v1, %v1362_v37  ;;  %5647 = vtanh.f32 %v7227_v14  ;;  %v1439_v25 = vadd.f32 %v4235_v43, %v1433_v40  ;;  %v7330_v1 = vpack.c.bf16 %v2001_v27, %v1997_v48  ;;  %v2003_v40 = vld [vmem:[%s8905_s2 + $0x88] sm:$0xff]  ;;  %v2009_v43 = vld [vmem:[%s8905_s2 + $0xb8] sm:$0xff]  ;;  %v2006_v8 = vld [vmem:[%s8905_s2 + $0xa0] sm:$0xff] }
 0x31f   :  { %v4239_v3 = vmul.f32 -1.442695, %v1436_v21  ;;  %v7332_v61 = vpack.c.bf16 %v1998_v11, %v1994_v53  ;;  %v2000_v21 = vld [vmem:[%s8905_s2 + $0x70] sm:$0xff]  ;;  %v2035_v27 = vld [vmem:[%s8905_s2 + $0x188] sm:$0xff]  ;;  %v2037_v11 = vld [vmem:[%s8905_s2 + $0x198] sm:$0xff] }
 0x320   :  { %v4240_v7 = vmul.f32 -1.442695, %v1437_v29  ;;  %v4241_v6 = vmul.f32 -1.442695, %v1439_v25  ;;  %v7341_v37 = vpack.c.bf16 %v2000_v21, %v1996_v31  ;;  %v2007_v29 = vld [vmem:[%s8905_s2 + $0xa8] sm:$0xff]  ;;  %v2002_v25 = vld [vmem:[%s8905_s2 + $0x80] sm:$0xff] }
 0x321   :  { %5649 = vpow2.f32 %v4239_v3  ;;  %v2005_v3 = vld [vmem:[%s8905_s2 + $0x98] sm:$0xff]  ;;  %v2032_v46 = vld [vmem:[%s8905_s2 + $0x170] sm:$0xff]  ;;  %v2039_v53 = vld [vmem:[%s8905_s2 + $0x1a8] sm:$0xff] }
 0x322   :  { %5651 = vpow2.f32 %v4240_v7  ;;  %v7355_v7 = vpack.c.bf16 %v2007_v29, %v2003_v40  ;;  %v7485_v48 = vpack.c.bf16 %v2032_v46, %v2028_v39  ;;  %v7498_v31 = vpack.c.bf16 %v2039_v53, %v2035_v27  ;;  %v2041_v21 = vld [vmem:[%s8905_s2 + $0x1b8] sm:$0xff]  ;;  %v2034_v40 = vld [vmem:[%s8905_s2 + $0x180] sm:$0xff] }
 0x323   :  { %5653 = vpow2.f32 %v4241_v6  ;;  %v2004_v6 = vld [vmem:[%s8905_s2 + $0x90] sm:$0xff]  ;;  %v2038_v29 = vld [vmem:[%s8905_s2 + $0x1a0] sm:$0xff] }
 0x324   :  { %5655 = vtanh.f32 %v1438_v12  ;;  %v2008_v12 = vld [vmem:[%s8905_s2 + $0xb0] sm:$0xff] }
 0x328   :  { %v5648_v57 = vpop.eup %5647 }
 0x329   :  { %v1464_v42 = vmul.f32 %v5648_v57, %v5646_v34  ;;  %v7366_v34 = vpack.c.bf16 %v2009_v43, %v2005_v3  ;;  %v7368_v57 = vpack.c.bf16 %v2006_v8, %v2002_v25  ;;  %v7510_v3 = vpack.c.bf16 %v2041_v21, %v2037_v11  ;;  %v2036_v25 = vld [vmem:[%s8905_s2 + $0x190] sm:$0xff]  ;;  %v4245_v21 = vld [vmem:[%s8907_s0 + $0x78] sm:$0xff] }
 0x32a   :  { %v7512_v43 = vpack.c.bf16 %v2038_v29, %v2034_v40  ;;  %v2040_v8 = vld [vmem:[%s8905_s2 + $0x1b0] sm:$0xff] }
 0x32b   :  { %v5650_v45 = vpop.eup %5649  ;;  %1629 = vmatmul.mubr.f32.vlgmr.msra.gmra.mrb[12].mxu0 %v1464_v42  ;;  %1700 = vmatmul.mubr.f32.vlgmr.msra.gmra.mrb[12].mxu1 %v1464_v42  ;;  %v7377_v42 = vpack.c.bf16 %v2008_v12, %v2004_v6  ;;  %v7521_v6 = vpack.c.bf16 %v2040_v8, %v2036_v25  ;;  %v2043_v12 = vld [vmem:[%s8905_s2 + $0x1c8] sm:$0xff]  ;;  %v4244_v29 = vld [vmem:[%s8907_s0 + $0x70] sm:$0xff] }
 0x32c   :  { %v5652_v52 = vpop.eup %5651  ;;  %v1469_v0 = vadd.f32 1.0, %v5650_v45  ;;  %4921 = vmatpush1.bf16.msra.mxu0 %v6920_v63  ;;  %4953 = vmatpush1.bf16.msra.mxu1 %v6922_v47  ;;  %v8985_v63 = vld [vmem:[#allocation11_spill] sm:$0xff]  ;;  %v8986_v47 = vld [vmem:[#allocation8_spill] sm:$0xff] }
 0x32d   :  { %v1475_v18 = vadd.f32 1.0, %v5652_v52  ;;  %4923 = vmatprep.subr.bf16.mxu0 %v6930_v16  ;;  %4955 = vmatprep.subr.bf16.mxu1 %v6932_v55  ;;  %v8988_v16 = vld [vmem:[#allocation12_spill] sm:$0xff]  ;;  %v8989_v55 = vld [vmem:[#allocation13_spill] sm:$0xff]  ;;  %v5654_v54 = vpop.eup %5653 }
 0x32e   :  { %5657 = vrcp.f32 %v1469_v0  ;;  %1844 = vmatprep.mubr.f32.mxu0 %v8964_v19  ;;  %1915 = vmatprep.mubr.f32.mxu1 %v8964_v19  ;;  %v5656_v51 = vpop.eup %5655  ;;  %v1482_v60 = vadd.f32 1.0, %v5654_v54  ;;  %v2011_v45 = vld [vmem:[%s8905_s2 + $0xc8] sm:$0xff]  ;;  %v2013_v0 = vld [vmem:[%s8905_s2 + $0xd8] sm:$0xff] }
 0x32f   :  { %5659 = vrcp.f32 %v1475_v18  ;;  %v2015_v52 = vld [vmem:[%s8905_s2 + $0xe8] sm:$0xff] }
 0x330   :  { %4925 = vmatpush1.bf16.msra.mxu0 %v6954_v44  ;;  %4957 = vmatpush1.bf16.msra.mxu1 %v8983_v24  ;;  %v8990_v44 = vld [vmem:[#allocation14_spill] sm:$0xff]  ;;  %5661 = vrcp.f32 %v1482_v60  ;;  %v7391_v18 = vpack.c.bf16 %v2015_v52, %v2011_v45  ;;  %v2047_v45 = vld [vmem:[%s8905_s2 + $0x1e8] sm:$0xff] }
 0x331   :  { %4927 = vmatprep.subr.bf16.mxu0 %v8984_v35  ;;  %4959 = vmatprep.subr.bf16.mxu1 %v8985_v63  ;;  %v2017_v24 = vld [vmem:[%s8905_s2 + $0xf8] sm:$0xff]  ;;  %v2010_v35 = vld [vmem:[%s8905_s2 + $0xc0] sm:$0xff] }
 0x332   :  { %v2014_v63 = vld [vmem:[%s8905_s2 + $0xe0] sm:$0xff]  ;;  %v2045_v52 = vld [vmem:[%s8905_s2 + $0x1d8] sm:$0xff] }
 0x333   :  { %v2018_v60 = vld [vmem:[%s8905_s2 + $0x100] sm:$0xff] }
 0x334   :  { %4929 = vmatpush1.bf16.msra.mxu0 %v8986_v47  ;;  %4961 = vmatpush1.bf16.msra.mxu1 %v8987_v5  ;;  %v7402_v47 = vpack.c.bf16 %v2017_v24, %v2013_v0  ;;  %v7404_v5 = vpack.c.bf16 %v2014_v63, %v2010_v35  ;;  %v7534_v0 = vpack.c.bf16 %v2047_v45, %v2043_v12  ;;  %v2049_v24 = vld [vmem:[%s8905_s2 + $0x1f8] sm:$0xff]  ;;  %v2042_v35 = vld [vmem:[%s8905_s2 + $0x1c0] sm:$0xff] }
 0x335   :  { %4931 = vmatprep.subr.bf16.mxu0 %v8988_v16  ;;  %4963 = vmatprep.subr.bf16.mxu1 %v8989_v55  ;;  %v2012_v16 = vld [vmem:[%s8905_s2 + $0xd0] sm:$0xff]  ;;  %v2046_v63 = vld [vmem:[%s8905_s2 + $0x1e0] sm:$0xff] }
 0x336   :  { %v2016_v55 = vld [vmem:[%s8905_s2 + $0xf0] sm:$0xff] }
 0x337   :  { %v7413_v54 = vpack.c.bf16 %v2016_v55, %v2012_v16  ;;  %v7546_v16 = vpack.c.bf16 %v2049_v24, %v2045_v52  ;;  %v7548_v55 = vpack.c.bf16 %v2046_v63, %v2042_v35 }
 0x338   :  { %v5658_v4 = vpop.eup %5657  ;;  %4933 = vmatpush1.bf16.msra.mxu0 %v7028_v9  ;;  %4965 = vmatpush1.bf16.msra.mxu1 %v8990_v44  ;;  %v8992_v9 = vld [vmem:[#allocation16_spill] sm:$0xff]  ;;  %v2021_v44 = vld [vmem:[%s8905_s2 + $0x118] sm:$0xff] }
 0x339   :  { %v5660_v17 = vpop.eup %5659  ;;  %v1486_v30 = vmul.f32 %v5658_v4, %v5656_v51  ;;  %4935 = vmatprep.subr.bf16.mxu0 %v7040_v49  ;;  %4967 = vmatprep.subr.bf16.mxu1 %v7042_v59  ;;  %v8993_v49 = vld [vmem:[#allocation17_spill] sm:$0xff]  ;;  %v2019_v51 = vld [vmem:[%s8905_s2 + $0x108] sm:$0xff] }
 0x33a   :  { %v1485_v36 = vmul.f32 %v5660_v17, %v7099_v50  ;;  %v1987_v50 = vld [vmem:[%s8905_s2 + $0x8] sm:$0xff] }
 0x33b   :  { %v2023_v4 = vld [vmem:[%s8905_s2 + $0x128] sm:$0xff] }
 0x33c   :  { %v7255_v33 = vadd.f32 %v1486_v30, %v1485_v36  ;;  %4937 = vmatpush1.bf16.msra.mxu0 %v7064_v10  ;;  %4969 = vmatpush1.bf16.msra.mxu1 %v7066_v28  ;;  %v5662_v28 = vpop.eup %5661  ;;  %v7427_v17 = vpack.c.bf16 %v2023_v4, %v2019_v51  ;;  %v2025_v30 = vld [vmem:[%s8905_s2 + $0x138] sm:$0xff]  ;;  %v2022_v36 = vld [vmem:[%s8905_s2 + $0x120] sm:$0xff]  ;;  %v2044_v51 = vld [vmem:[%s8905_s2 + $0x1d0] sm:$0xff] }
 0x33d   :  { %4939 = vmatprep.subr.bf16.mxu0 %v8991_v38  ;;  %4971 = vmatprep.subr.bf16.mxu1 %v8992_v9  ;;  %v7438_v38 = vpack.c.bf16 %v2025_v30, %v2021_v44  ;;  %v7440_v9 = vpack.c.bf16 %v2022_v36, %v2018_v60  ;;  %v2048_v4 = vld [vmem:[%s8905_s2 + $0x1f0] sm:$0xff]  ;;  %v2203_v30 = vld [vmem:[%s8906_s3 + $0x8] sm:$0xff]  ;;  %v2205_v36 = vld [vmem:[%s8906_s3 + $0x18] sm:$0xff] }
 0x33e   :  { %5663 = vtanh.f32 %v7255_v33  ;;  %v7557_v44 = vpack.c.bf16 %v2048_v4, %v2044_v51  ;;  %v2207_v60 = vld [vmem:[%s8906_s3 + $0x28] sm:$0xff] }
 0x340   :  { %4941 = vmatpush1.bf16.msra.mxu0 %v7103_v56  ;;  %4973 = vmatpush1.bf16.msra.mxu1 %v8993_v49  ;;  %v2020_v49 = vld [vmem:[%s8905_s2 + $0x110] sm:$0xff] }
 0x341   :  { %4943 = vmatprep.subr.bf16.mxu0 %v7115_v22  ;;  %4975 = vmatprep.subr.bf16.mxu1 %v7117_v15  ;;  %v1993_v22 = vld [vmem:[%s8905_s2 + $0x38] sm:$0xff]  ;;  %v1986_v15 = vld [vmem:[%s8905_s2] sm:$0xff] }
 0x344   :  { %4945 = vmatpush1.bf16.msra.mxu0 %v7140_v41  ;;  %4977 = vmatpush1.bf16.msra.mxu1 %v7142_v32  ;;  %v1990_v41 = vld [vmem:[%s8905_s2 + $0x20] sm:$0xff] }
 0x345   :  { %4947 = vmatprep.subr.bf16.mxu0 %v7149_v20  ;;  %4979 = vmatprep.subr.bf16.mxu1 %v7151_v26  ;;  %v1991_v26 = vld [vmem:[%s8905_s2 + $0x28] sm:$0xff]  ;;  %v1989_v20 = vld [vmem:[%s8905_s2 + $0x18] sm:$0xff] }
 0x346   :  { %v7283_v56 = vpack.c.bf16 %v1991_v26, %v1987_v50  ;;  %v7294_v32 = vpack.c.bf16 %v1993_v22, %v1989_v20  ;;  %v2031_v50 = vld [vmem:[%s8905_s2 + $0x168] sm:$0xff]  ;;  %v2029_v20 = vld [vmem:[%s8905_s2 + $0x158] sm:$0xff] }
 0x347   :  { %v2033_v22 = vld [vmem:[%s8905_s2 + $0x178] sm:$0xff] }
 0x348   :  { %v5664_v10 = vpop.eup %5663  ;;  %4949 = vmatpush1.bf16.msra.mxu0 %v7164_v23  ;;  %4981 = vmatpush1.bf16.msra.mxu1 %v7166_v58  ;;  %v7296_v23 = vpack.c.bf16 %v1990_v41, %v1986_v15  ;;  %v1988_v58 = vld [vmem:[%s8905_s2 + $0x10] sm:$0xff]  ;;  %v2026_v15 = vld [vmem:[%s8905_s2 + $0x140] sm:$0xff] }
 0x349   :  { %v1489_v59 = vmul.f32 %v5664_v10, %v5662_v28  ;;  %4983 = vmatprep.subr.bf16.mxu0 %v7283_v56  ;;  %v7305_v2 = vpack.c.bf16 %v1992_v13, %v1988_v58  ;;  %5015 = vmatprep.subr.bf16.mxu1 %v7294_v32  ;;  %v2024_v28 = vld [vmem:[%s8905_s2 + $0x130] sm:$0xff]  ;;  %v2030_v41 = vld [vmem:[%s8905_s2 + $0x160] sm:$0xff]  ;;  %v7475_v58 = vpack.c.bf16 %v2033_v22, %v2029_v20  ;;  %v4243_v20 = vld [vmem:[%s8907_s0 + $0x68] sm:$0xff] }
 0x34a   :  { %v7449_v10 = vpack.c.bf16 %v2024_v28, %v2020_v49  ;;  %v7477_v13 = vpack.c.bf16 %v2030_v41, %v2026_v15  ;;  %v7570_v49 = vpack.c.bf16 %v2207_v60, %v2203_v30  ;;  %v2209_v28 = vld [vmem:[%s8906_s3 + $0x38] sm:$0xff] }
 0x34b   :  { %1845 = vmatmul.mubr.f32.vlgmr.msra.gmra.mrb[14].mxu0 %v1489_v59  ;;  %1916 = vmatmul.mubr.f32.vlgmr.msra.gmra.mrb[14].mxu1 %v1489_v59  ;;  %v2027_v59 = vld [vmem:[%s8905_s2 + $0x148] sm:$0xff] }
 0x34c   :  { %2114 = vmatprep.mubr.f32.mxu0 %v8964_v19  ;;  %2185 = vmatprep.mubr.f32.mxu1 %v8964_v19  ;;  %v7460_v26 = vpack.c.bf16 %v2031_v50, %v2027_v59  ;;  %v7576_v59 = vpack.c.bf16 %v2209_v28, %v2205_v36  ;;  %v4242_v50 = vld [vmem:[%s8907_s0 + $0x60] sm:$0xff] }
 0x34d   :  { %4985 = vmatpush1.bf16.msra.mxu0 %v7296_v23  ;;  %5017 = vmatpush1.bf16.msra.mxu1 %v7305_v2  ;;  %v4246_v28 = vld [vmem:[%s8908_s1 + $0x60] sm:$0xff] }
 0x34e   :  { %4987 = vmatprep.subr.bf16.mxu0 %v7319_v62  ;;  %5019 = vmatprep.subr.bf16.mxu1 %v7330_v1 }
 0x351   :  { %4989 = vmatpush1.bf16.msra.mxu0 %v7332_v61  ;;  %5021 = vmatpush1.bf16.msra.mxu1 %v7341_v37 }
 0x352   :  { %4991 = vmatprep.subr.bf16.mxu0 %v7355_v7  ;;  %5023 = vmatprep.subr.bf16.mxu1 %v7366_v34 }
 0x355   :  { %4993 = vmatpush1.bf16.msra.mxu0 %v7368_v57  ;;  %5025 = vmatpush1.bf16.msra.mxu1 %v7377_v42 }
 0x356   :  { %4995 = vmatprep.subr.bf16.mxu0 %v7391_v18  ;;  %5027 = vmatprep.subr.bf16.mxu1 %v7402_v47 }
 0x359   :  { %4997 = vmatpush1.bf16.msra.mxu0 %v7404_v5  ;;  %5029 = vmatpush1.bf16.msra.mxu1 %v7413_v54 }
 0x35a   :  { %4999 = vmatprep.subr.bf16.mxu0 %v7427_v17  ;;  %5031 = vmatprep.subr.bf16.mxu1 %v7438_v38 }
 0x35d   :  { %5001 = vmatpush1.bf16.msra.mxu0 %v7440_v9  ;;  %5033 = vmatpush1.bf16.msra.mxu1 %v7449_v10 }
 0x35e   :  { %5003 = vmatprep.subr.bf16.mxu0 %v7460_v26  ;;  %5035 = vmatprep.subr.bf16.mxu1 %v7475_v58 }
 0x361   :  { %5005 = vmatpush1.bf16.msra.mxu0 %v7477_v13  ;;  %5037 = vmatpush1.bf16.msra.mxu1 %v7485_v48 }
 0x362   :  { %5007 = vmatprep.subr.bf16.mxu0 %v7498_v31  ;;  %5039 = vmatprep.subr.bf16.mxu1 %v7510_v3 }
 0x365   :  { %5009 = vmatpush1.bf16.msra.mxu0 %v7512_v43  ;;  %5041 = vmatpush1.bf16.msra.mxu1 %v7521_v6 }
 0x366   :  { %5011 = vmatprep.subr.bf16.mxu0 %v7534_v0  ;;  %5043 = vmatprep.subr.bf16.mxu1 %v7546_v16 }
 0x369   :  { %5013 = vmatpush1.bf16.msra.mxu0 %v7548_v55  ;;  %5045 = vmatpush1.bf16.msra.mxu1 %v7557_v44 }
 0x36a   :  { %5047 = vmatprep.subr.bf16.mxu0 %v7570_v49  ;;  %5079 = vmatprep.subr.bf16.mxu1 %v7576_v59 }
 0x3fe   :  { %v1630_v22 = vpop.f32.mrb[12].mxu0  ;;  %v1701_v15 = vpop.f32.mrb[12].mxu1 }
 0x3ff   :  { %v1706_v41 = vadd.f32 %v4242_v50, %v1630_v22  ;;  %v1632_v39 = vpop.f32.mrb[13].mxu0  ;;  %v1703_v46 = vpop.f32.mrb[13].mxu1  ;;  %v1708_v8 = vadd.f32 %v4244_v29, %v1701_v15  ;;  %v4247_v50 = vld [vmem:[%s8908_s1 + $0x68] sm:$0xff]  ;;  %v2202_v29 = vld [vmem:[%s8906_s3] sm:$0xff] }
 0x400   :  { %v1707_v27 = vadd.f32 %v4243_v20, %v1632_v39  ;;  %v1709_v40 = vadd.f32 %v4245_v21, %v1703_v46  ;;  %v4248_v21 = vld [vmem:[%s8908_s1 + $0x70] sm:$0xff] }
 0x401   :  { %v4250_v53 = vmul.f32 -1.442695, %v1706_v41 }
 0x402   :  { %v4251_v11 = vmul.f32 -1.442695, %v1707_v27  ;;  %v4252_v25 = vmul.f32 -1.442695, %v1709_v40 }
 0x403   :  { %5665 = vpow2.f32 %v4250_v53 }
 0x404   :  { %5667 = vpow2.f32 %v4251_v11  ;;  %v4249_v11 = vld [vmem:[%s8908_s1 + $0x78] sm:$0xff] }
 0x405   :  { %5669 = vpow2.f32 %v4252_v25  ;;  %v2206_v25 = vld [vmem:[%s8906_s3 + $0x20] sm:$0xff] }
 0x406   :  { %5671 = vtanh.f32 %v1708_v8  ;;  %v2204_v8 = vld [vmem:[%s8906_s3 + $0x10] sm:$0xff] }
 0x40d   :  { %v5666_v12 = vpop.eup %5665 }
 0x40e   :  { %v5668_v45 = vpop.eup %5667  ;;  %v1930_v52 = vadd.f32 1.0, %v5666_v12  ;;  %v2208_v12 = vld [vmem:[%s8906_s3 + $0x30] sm:$0xff] }
 0x40f   :  { %v1936_v24 = vadd.f32 1.0, %v5668_v45  ;;  %v5670_v35 = vpop.eup %5669  ;;  %v2211_v45 = vld [vmem:[%s8906_s3 + $0x48] sm:$0xff] }
 0x410   :  { %5673 = vrcp.f32 %v1930_v52  ;;  %v5672_v63 = vpop.eup %5671  ;;  %v1943_v60 = vadd.f32 1.0, %v5670_v35  ;;  %v2215_v52 = vld [vmem:[%s8906_s3 + $0x68] sm:$0xff]  ;;  %v2217_v35 = vld [vmem:[%s8906_s3 + $0x78] sm:$0xff] }
 0x411   :  { %5675 = vrcp.f32 %v1936_v24  ;;  %v2213_v24 = vld [vmem:[%s8906_s3 + $0x58] sm:$0xff] }
 0x412   :  { %5677 = vrcp.f32 %v1943_v60  ;;  %v7634_v60 = vpack.c.bf16 %v2208_v12, %v2204_v8  ;;  %v2218_v12 = vld [vmem:[%s8906_s3 + $0x80] sm:$0xff] }
 0x41a   :  { %v5674_v51 = vpop.eup %5673 }
 0x41b   :  { %v5676_v4 = vpop.eup %5675  ;;  %v1947_v30 = vmul.f32 %v5674_v51, %v5672_v63 }
 0x41c   :  { %v1946_v36 = vmul.f32 %v5676_v4, %v7227_v14  ;;  %v5678_v63 = vpop.eup %5677 }
 0x41e   :  { %v7599_v20 = vadd.f32 %v1947_v30, %v1946_v36  ;;  %v1846_v22 = vpop.f32.mrb[14].mxu0  ;;  %v1917_v15 = vpop.f32.mrb[14].mxu1  ;;  %v7632_v30 = vpack.c.bf16 %v2206_v25, %v2202_v29  ;;  %v2210_v36 = vld [vmem:[%s8906_s3 + $0x40] sm:$0xff] }
 0x41f   :  { %v1922_v41 = vadd.f32 %v4246_v28, %v1846_v22  ;;  %v1848_v39 = vpop.f32.mrb[15].mxu0  ;;  %v1919_v46 = vpop.f32.mrb[15].mxu1  ;;  %v2214_v28 = vld [vmem:[%s8906_s3 + $0x60] sm:$0xff] }
 0x420   :  { %v1923_v27 = vadd.f32 %v4247_v50, %v1848_v39  ;;  %5679 = vtanh.f32 %v7599_v20  ;;  %v1925_v40 = vadd.f32 %v4249_v11, %v1919_v46  ;;  %v1924_v50 = vadd.f32 %v4248_v21, %v1917_v15  ;;  %v2212_v46 = vld [vmem:[%s8906_s3 + $0x50] sm:$0xff]  ;;  %v2223_v15 = vld [vmem:[%s8906_s3 + $0xa8] sm:$0xff]  ;;  %v2225_v11 = vld [vmem:[%s8906_s3 + $0xb8] sm:$0xff] }
 0x421   :  { %v4253_v14 = vmul.f32 -1.442695, %v1922_v41  ;;  %v7642_v41 = vpack.c.bf16 %v2215_v52, %v2211_v45  ;;  %v7644_v39 = vpack.c.bf16 %v2217_v35, %v2213_v24  ;;  %v7666_v25 = vpack.c.bf16 %v2214_v28, %v2210_v36  ;;  %v2222_v45 = vld [vmem:[%s8906_s3 + $0xa0] sm:$0xff]  ;;  %v2231_v36 = vld [vmem:[%s8906_s3 + $0xe8] sm:$0xff]  ;;  %v2229_v28 = vld [vmem:[%s8906_s3 + $0xd8] sm:$0xff] }
 0x422   :  { %v4254_v53 = vmul.f32 -1.442695, %v1923_v27  ;;  %v4255_v4 = vmul.f32 -1.442695, %v1925_v40  ;;  %v2216_v27 = vld [vmem:[%s8906_s3 + $0x70] sm:$0xff] }
 0x423   :  { %5681 = vpow2.f32 %v4253_v14  ;;  %v2219_v14 = vld [vmem:[%s8906_s3 + $0x88] sm:$0xff]  ;;  %v7668_v8 = vpack.c.bf16 %v2216_v27, %v2212_v46  ;;  %v2226_v27 = vld [vmem:[%s8906_s3 + $0xc0] sm:$0xff] }
 0x424   :  { %5683 = vpow2.f32 %v4254_v53  ;;  %v2221_v53 = vld [vmem:[%s8906_s3 + $0x98] sm:$0xff]  ;;  %v7678_v24 = vpack.c.bf16 %v2223_v15, %v2219_v14  ;;  %v2230_v14 = vld [vmem:[%s8906_s3 + $0xe0] sm:$0xff] }
 0x425   :  { %5685 = vpow2.f32 %v4255_v4  ;;  %8994 = vst [vmem:[#allocation10_spill] sm:$0xff] %v7668_v8  ;;  %v7680_v35 = vpack.c.bf16 %v2225_v11, %v2221_v53  ;;  %v2227_v4 = vld [vmem:[%s8906_s3 + $0xc8] sm:$0xff]  ;;  %v2228_v11 = vld [vmem:[%s8906_s3 + $0xd0] sm:$0xff] }
 0x426   :  { %5687 = vtanh.f32 %v1924_v50  ;;  %8995 = vst [vmem:[#allocation7_spill] sm:$0xff] %v7678_v24  ;;  %v2233_v50 = vld [vmem:[%s8906_s3 + $0xf8] sm:$0xff]  ;;  %v7716_v15 = vpack.c.bf16 %v2231_v36, %v2227_v4  ;;  %v2238_v4 = vld [vmem:[%s8906_s3 + $0x120] sm:$0xff] }
 0x427   :  { %8996 = vst [vmem:[#allocation11_spill] sm:$0xff] %v7680_v35  ;;  %v7718_v53 = vpack.c.bf16 %v2233_v50, %v2229_v28  ;;  %v2236_v50 = vld [vmem:[%s8906_s3 + $0x110] sm:$0xff] }
 0x428   :  { %8999 = vst [vmem:[#allocation12_spill] sm:$0xff] %v7716_v15 }
 0x429   :  { %9000 = vst [vmem:[#allocation13_spill] sm:$0xff] %v7718_v53 }
 0x42a   :  { %v5680_v51 = vpop.eup %5679 }
 0x42b   :  { %v1950_v22 = vmul.f32 %v5680_v51, %v5678_v63  ;;  %v2220_v63 = vld [vmem:[%s8906_s3 + $0x90] sm:$0xff] }
 0x42c   :  { %v2224_v51 = vld [vmem:[%s8906_s3 + $0xb0] sm:$0xff] }
 0x42d   :  { %v5682_v21 = vpop.eup %5681  ;;  %2115 = vmatmul.mubr.f32.vlgmr.msra.gmra.mrb[16].mxu0 %v1950_v22  ;;  %2186 = vmatmul.mubr.f32.vlgmr.msra.gmra.mrb[16].mxu1 %v1950_v22  ;;  %v7704_v22 = vpack.c.bf16 %v2222_v45, %v2218_v12  ;;  %v7706_v46 = vpack.c.bf16 %v2224_v51, %v2220_v63  ;;  %v2237_v12 = vld [vmem:[%s8906_s3 + $0x118] sm:$0xff]  ;;  %v2234_v51 = vld [vmem:[%s8906_s3 + $0x100] sm:$0xff] }
 0x42e   :  { %v5684_v40 = vpop.eup %5683  ;;  %v1955_v29 = vadd.f32 1.0, %v5682_v21  ;;  %5049 = vmatpush1.bf16.msra.mxu0 %v7632_v30  ;;  %5081 = vmatpush1.bf16.msra.mxu1 %v7634_v60  ;;  %v2232_v21 = vld [vmem:[%s8906_s3 + $0xf0] sm:$0xff]  ;;  %v2241_v45 = vld [vmem:[%s8906_s3 + $0x138] sm:$0xff] }
 0x42f   :  { %v1961_v52 = vadd.f32 1.0, %v5684_v40  ;;  %5051 = vmatprep.subr.bf16.mxu0 %v7642_v41  ;;  %5083 = vmatprep.subr.bf16.mxu1 %v7644_v39  ;;  %8997 = vst [vmem:[#allocation8_spill] sm:$0xff] %v7704_v22  ;;  %8998 = vst [vmem:[#allocation9_spill] sm:$0xff] %v7706_v46  ;;  %v2235_v40 = vld [vmem:[%s8906_s3 + $0x108] sm:$0xff]  ;;  %v7742_v63 = vpack.c.bf16 %v2232_v21, %v2228_v11  ;;  %v7754_v28 = vpack.c.bf16 %v2241_v45, %v2237_v12  ;;  %v5686_v11 = vpop.eup %5685 }
 0x430   :  { %5689 = vrcp.f32 %v1955_v29  ;;  %2330 = vmatprep.mubr.f32.mxu0 %v8964_v19  ;;  %2401 = vmatprep.mubr.f32.mxu1 %v8964_v19  ;;  %v2239_v29 = vld [vmem:[%s8906_s3 + $0x128] sm:$0xff]  ;;  %v5688_v12 = vpop.eup %5687 }
 0x431   :  { %5691 = vrcp.f32 %v1961_v52  ;;  %v7740_v52 = vpack.c.bf16 %v2230_v14, %v2226_v27  ;;  %9001 = vst [vmem:[#allocation14_spill] sm:$0xff] %v7742_v63  ;;  %v7752_v36 = vpack.c.bf16 %v2239_v29, %v2235_v40  ;;  %v2240_v27 = vld [vmem:[%s8906_s3 + $0x130] sm:$0xff]  ;;  %v2243_v14 = vld [vmem:[%s8906_s3 + $0x148] sm:$0xff]  ;;  %v2245_v40 = vld [vmem:[%s8906_s3 + $0x158] sm:$0xff] }
 0x432   :  { %5053 = vmatpush1.bf16.msra.mxu0 %v7666_v25  ;;  %5085 = vmatpush1.bf16.msra.mxu1 %v7668_v8  ;;  %v2247_v21 = vld [vmem:[%s8906_s3 + $0x168] sm:$0xff]  ;;  %v2249_v29 = vld [vmem:[%s8906_s3 + $0x178] sm:$0xff]  ;;  %v1968_v8 = vadd.f32 1.0, %v5686_v11 }
 0x433   :  { %5055 = vmatprep.subr.bf16.mxu0 %v7678_v24  ;;  %5087 = vmatprep.subr.bf16.mxu1 %v7680_v35 }
 0x434   :  { %5693 = vrcp.f32 %v1968_v8  ;;  %v2259_v8 = vld [vmem:[%s8906_s3 + $0x1c8] sm:$0xff] }
 0x436   :  { %5057 = vmatpush1.bf16.msra.mxu0 %v7704_v22  ;;  %5089 = vmatpush1.bf16.msra.mxu1 %v7706_v46  ;;  %v2242_v46 = vld [vmem:[%s8906_s3 + $0x140] sm:$0xff] }
 0x437   :  { %5059 = vmatprep.subr.bf16.mxu0 %v7716_v15  ;;  %5091 = vmatprep.subr.bf16.mxu1 %v7718_v53  ;;  %v7776_v53 = vpack.c.bf16 %v2238_v4, %v2234_v51  ;;  %v7778_v15 = vpack.c.bf16 %v2240_v27, %v2236_v50  ;;  %v2246_v22 = vld [vmem:[%s8906_s3 + $0x160] sm:$0xff]  ;;  %v7790_v51 = vpack.c.bf16 %v2249_v29, %v2245_v40  ;;  %v2244_v4 = vld [vmem:[%s8906_s3 + $0x150] sm:$0xff]  ;;  %v2251_v27 = vld [vmem:[%s8906_s3 + $0x188] sm:$0xff] }
 0x438   :  { %v2248_v50 = vld [vmem:[%s8906_s3 + $0x170] sm:$0xff]  ;;  %v2257_v40 = vld [vmem:[%s8906_s3 + $0x1b8] sm:$0xff] }
 0x439   :  { %9003 = vst [vmem:[#allocation16_spill] sm:$0xff] %v7790_v51 }
 0x43a   :  { %v5690_v45 = vpop.eup %5689  ;;  %5061 = vmatpush1.bf16.msra.mxu0 %v7740_v52  ;;  %5093 = vmatpush1.bf16.msra.mxu1 %v7742_v63  ;;  %v7788_v63 = vpack.c.bf16 %v2247_v21, %v2243_v14  ;;  %v2255_v14 = vld [vmem:[%s8906_s3 + $0x1a8] sm:$0xff]  ;;  %v2253_v21 = vld [vmem:[%s8906_s3 + $0x198] sm:$0xff] }
 0x43b   :  { %v5692_v35 = vpop.eup %5691  ;;  %v1972_v24 = vmul.f32 %v5690_v45, %v5688_v12  ;;  %5063 = vmatprep.subr.bf16.mxu0 %v7752_v36  ;;  %5095 = vmatprep.subr.bf16.mxu1 %v7754_v28  ;;  %v7815_v12 = vpack.c.bf16 %v2246_v22, %v2242_v46  ;;  %v2254_v45 = vld [vmem:[%s8906_s3 + $0x1a0] sm:$0xff]  ;;  %v2252_v22 = vld [vmem:[%s8906_s3 + $0x190] sm:$0xff] }
 0x43c   :  { %9002 = vst [vmem:[#allocation15_spill] sm:$0xff] %v7788_v63  ;;  %v1971_v11 = vmul.f32 %v5692_v35, %v7255_v33  ;;  %v7817_v33 = vpack.c.bf16 %v2248_v50, %v2244_v4  ;;  %v2250_v35 = vld [vmem:[%s8906_s3 + $0x180] sm:$0xff]  ;;  %v2256_v46 = vld [vmem:[%s8906_s3 + $0x1b0] sm:$0xff]  ;;  %v2263_v4 = vld [vmem:[%s8906_s3 + $0x1e8] sm:$0xff] }
 0x43d   :  { %v2261_v50 = vld [vmem:[%s8906_s3 + $0x1d8] sm:$0xff] }
 0x43e   :  { %v7811_v29 = vadd.f32 %v1972_v24, %v1971_v11  ;;  %5065 = vmatpush1.bf16.msra.mxu0 %v7776_v53  ;;  %5097 = vmatpush1.bf16.msra.mxu1 %v7778_v15  ;;  %9004 = vst [vmem:[#allocation17_spill] sm:$0xff] %v7817_v33  ;;  %v7827_v24 = vpack.c.bf16 %v2255_v14, %v2251_v27  ;;  %v2265_v27 = vld [vmem:[%s8906_s3 + $0x1f8] sm:$0xff] }
 0x43f   :  { %5067 = vmatprep.subr.bf16.mxu0 %v7788_v63  ;;  %5099 = vmatprep.subr.bf16.mxu1 %v7790_v51  ;;  %v7829_v11 = vpack.c.bf16 %v2257_v40, %v2253_v21  ;;  %v7852_v14 = vpack.c.bf16 %v2254_v45, %v2250_v35  ;;  %v7854_v21 = vpack.c.bf16 %v2256_v46, %v2252_v22  ;;  %v2258_v40 = vld [vmem:[%s8906_s3 + $0x1c0] sm:$0xff]  ;;  %v2260_v35 = vld [vmem:[%s8906_s3 + $0x1d0] sm:$0xff] }
 0x440   :  { %5695 = vtanh.f32 %v7811_v29  ;;  %v7861_v51 = vpack.c.bf16 %v2263_v4, %v2259_v8  ;;  %v7863_v63 = vpack.c.bf16 %v2265_v27, %v2261_v50  ;;  %v2264_v45 = vld [vmem:[%s8906_s3 + $0x1f0] sm:$0xff]  ;;  %v5694_v8 = vpop.eup %5693 }
 0x441   :  { %v7878_v46 = vpack.c.bf16 %v2264_v45, %v2260_v35  ;;  %v4262_v45 = vld [vmem:[%s8908_s1 + $0x90] sm:$0xff] }
 0x442   :  { %5069 = vmatpush1.bf16.msra.mxu0 %v7815_v12  ;;  %5101 = vmatpush1.bf16.msra.mxu1 %v7817_v33  ;;  %v2262_v33 = vld [vmem:[%s8906_s3 + $0x1e0] sm:$0xff] }
 0x443   :  { %5071 = vmatprep.subr.bf16.mxu0 %v7827_v24  ;;  %5103 = vmatprep.subr.bf16.mxu1 %v7829_v11  ;;  %v7876_v22 = vpack.c.bf16 %v2262_v33, %v2258_v40  ;;  %v4263_v40 = vld [vmem:[%s8908_s1 + $0x98] sm:$0xff] }
 0x446   :  { %5073 = vmatpush1.bf16.msra.mxu0 %v7852_v14  ;;  %5105 = vmatpush1.bf16.msra.mxu1 %v7854_v21 }
 0x447   :  { %5075 = vmatprep.subr.bf16.mxu0 %v7861_v51  ;;  %5107 = vmatprep.subr.bf16.mxu1 %v7863_v63 }
 0x44a   :  { %v5696_v4 = vpop.eup %5695  ;;  %5077 = vmatpush1.bf16.msra.mxu0 %v7876_v22  ;;  %5109 = vmatpush1.bf16.msra.mxu1 %v7878_v46 }
 0x44b   :  { %v1975_v50 = vmul.f32 %v5696_v4, %v5694_v8  ;;  %5111 = vmatprep.subr.bf16.mxu0 %v7283_v56  ;;  %5143 = vmatprep.subr.bf16.mxu1 %v7294_v32  ;;  %v4256_v56 = vld [vmem:[%s8907_s0 + $0x80] sm:$0xff]  ;;  %v4257_v32 = vld [vmem:[%s8907_s0 + $0x88] sm:$0xff] }
 0x44d   :  { %2331 = vmatmul.mubr.f32.vlgmr.msra.gmra.mrb[18].mxu0 %v1975_v50  ;;  %2402 = vmatmul.mubr.f32.vlgmr.msra.gmra.mrb[18].mxu1 %v1975_v50 }
 0x44e   :  { %5113 = vmatpush1.bf16.msra.mxu0 %v7296_v23  ;;  %5145 = vmatpush1.bf16.msra.mxu1 %v7305_v2 }
 0x44f   :  { %5115 = vmatprep.subr.bf16.mxu0 %v7319_v62  ;;  %5147 = vmatprep.subr.bf16.mxu1 %v7330_v1 }
 0x450   :  { %2600 = vmatprep.mubr.f32.mxu0 %v8964_v19  ;;  %2671 = vmatprep.mubr.f32.mxu1 %v8964_v19 }
 0x452   :  { %5117 = vmatpush1.bf16.msra.mxu0 %v7332_v61  ;;  %5149 = vmatpush1.bf16.msra.mxu1 %v7341_v37 }
 0x453   :  { %5119 = vmatprep.subr.bf16.mxu0 %v7355_v7  ;;  %5151 = vmatprep.subr.bf16.mxu1 %v7366_v34 }
 0x456   :  { %5121 = vmatpush1.bf16.msra.mxu0 %v7368_v57  ;;  %5153 = vmatpush1.bf16.msra.mxu1 %v7377_v42  ;;  %v4259_v57 = vld [vmem:[%s8907_s0 + $0x98] sm:$0xff] }
 0x457   :  { %5123 = vmatprep.subr.bf16.mxu0 %v7391_v18  ;;  %5155 = vmatprep.subr.bf16.mxu1 %v7402_v47  ;;  %v4258_v18 = vld [vmem:[%s8907_s0 + $0x90] sm:$0xff] }
 0x45a   :  { %5125 = vmatpush1.bf16.msra.mxu0 %v7404_v5  ;;  %5157 = vmatpush1.bf16.msra.mxu1 %v7413_v54 }
 0x45b   :  { %5127 = vmatprep.subr.bf16.mxu0 %v7427_v17  ;;  %5159 = vmatprep.subr.bf16.mxu1 %v7438_v38 }
 0x45e   :  { %5129 = vmatpush1.bf16.msra.mxu0 %v7440_v9  ;;  %5161 = vmatpush1.bf16.msra.mxu1 %v7449_v10 }
 0x45f   :  { %5131 = vmatprep.subr.bf16.mxu0 %v7460_v26  ;;  %5163 = vmatprep.subr.bf16.mxu1 %v7475_v58 }
 0x462   :  { %5133 = vmatpush1.bf16.msra.mxu0 %v7477_v13  ;;  %5165 = vmatpush1.bf16.msra.mxu1 %v7485_v48 }
 0x463   :  { %5135 = vmatprep.subr.bf16.mxu0 %v7498_v31  ;;  %5167 = vmatprep.subr.bf16.mxu1 %v7510_v3 }
 0x466   :  { %5137 = vmatpush1.bf16.msra.mxu0 %v7512_v43  ;;  %5169 = vmatpush1.bf16.msra.mxu1 %v7521_v6  ;;  %v4260_v43 = vld [vmem:[%s8908_s1 + $0x80] sm:$0xff]  ;;  %v4261_v6 = vld [vmem:[%s8908_s1 + $0x88] sm:$0xff] }
 0x467   :  { %5139 = vmatprep.subr.bf16.mxu0 %v7534_v0  ;;  %5171 = vmatprep.subr.bf16.mxu1 %v7546_v16 }
 0x46a   :  { %5141 = vmatpush1.bf16.msra.mxu0 %v7548_v55  ;;  %5173 = vmatpush1.bf16.msra.mxu1 %v7557_v44 }
 0x46b   :  { %5175 = vmatprep.subr.bf16.mxu0 %v7570_v49  ;;  %5207 = vmatprep.subr.bf16.mxu1 %v7576_v59 }
 0x500   :  { %v2116_v23 = vpop.f32.mrb[16].mxu0  ;;  %v2187_v2 = vpop.f32.mrb[16].mxu1 }
 0x501   :  { %v2192_v62 = vadd.f32 %v4256_v56, %v2116_v23  ;;  %v2118_v1 = vpop.f32.mrb[17].mxu0  ;;  %v2189_v61 = vpop.f32.mrb[17].mxu1  ;;  %v2194_v5 = vadd.f32 %v4258_v18, %v2187_v2 }
 0x502   :  { %v2193_v37 = vadd.f32 %v4257_v32, %v2118_v1  ;;  %v2195_v42 = vadd.f32 %v4259_v57, %v2189_v61  ;;  %v9005_v61 = vld [vmem:[#allocation10_spill] sm:$0xff] }
 0x503   :  { %v4264_v7 = vmul.f32 -1.442695, %v2192_v62 }
 0x504   :  { %v4265_v34 = vmul.f32 -1.442695, %v2193_v37  ;;  %v4266_v47 = vmul.f32 -1.442695, %v2195_v42  ;;  %v9006_v37 = vld [vmem:[#allocation7_spill] sm:$0xff] }
 0x505   :  { %5697 = vpow2.f32 %v4264_v7  ;;  %v9009_v7 = vld [vmem:[#allocation9_spill] sm:$0xff] }
 0x506   :  { %5699 = vpow2.f32 %v4265_v34 }
 0x507   :  { %5701 = vpow2.f32 %v4266_v47 }
 0x508   :  { %5703 = vtanh.f32 %v2194_v5 }
 0x50f   :  { %v5698_v54 = vpop.eup %5697 }
 0x510   :  { %v5700_v17 = vpop.eup %5699  ;;  %v2416_v38 = vadd.f32 1.0, %v5698_v54 }
 0x511   :  { %v2422_v9 = vadd.f32 1.0, %v5700_v17  ;;  %v5702_v10 = vpop.eup %5701 }
 0x512   :  { %5705 = vrcp.f32 %v2416_v38  ;;  %v5704_v26 = vpop.eup %5703  ;;  %v2429_v31 = vadd.f32 1.0, %v5702_v10  ;;  %v9013_v38 = vld [vmem:[#allocation15_spill] sm:$0xff] }
 0x513   :  { %5707 = vrcp.f32 %v2422_v9  ;;  %v2964_v9 = vld [vmem:[%s8905_s2 + $0x30] sm:$0xff] }
 0x514   :  { %5709 = vrcp.f32 %v2429_v31  ;;  %v2973_v31 = vld [vmem:[%s8905_s2 + $0x78] sm:$0xff] }
 0x51c   :  { %v5706_v58 = vpop.eup %5705 }
 0x51d   :  { %v5708_v13 = vpop.eup %5707  ;;  %v2433_v48 = vmul.f32 %v5706_v58, %v5704_v26  ;;  %v2967_v26 = vld [vmem:[%s8905_s2 + $0x48] sm:$0xff] }
 0x51e   :  { %v2432_v3 = vmul.f32 %v5708_v13, %v7599_v20  ;;  %v5710_v8 = vpop.eup %5709  ;;  %v2971_v58 = vld [vmem:[%s8905_s2 + $0x68] sm:$0xff]  ;;  %v2969_v13 = vld [vmem:[%s8905_s2 + $0x58] sm:$0xff] }
 0x520   :  { %v7939_v0 = vadd.f32 %v2433_v48, %v2432_v3  ;;  %v2332_v16 = vpop.f32.mrb[18].mxu0  ;;  %v2403_v55 = vpop.f32.mrb[18].mxu1  ;;  %v8031_v48 = vpack.c.bf16 %v2971_v58, %v2967_v26  ;;  %v2966_v3 = vld [vmem:[%s8905_s2 + $0x40] sm:$0xff]  ;;  %v3000_v26 = vld [vmem:[%s8905_s2 + $0x150] sm:$0xff] }
 0x521   :  { %v2408_v44 = vadd.f32 %v4260_v43, %v2332_v16  ;;  %v2334_v49 = vpop.f32.mrb[19].mxu0  ;;  %v2405_v59 = vpop.f32.mrb[19].mxu1  ;;  %v2410_v56 = vadd.f32 %v4262_v45, %v2403_v55  ;;  %v2970_v43 = vld [vmem:[%s8905_s2 + $0x60] sm:$0xff]  ;;  %v2968_v55 = vld [vmem:[%s8905_s2 + $0x50] sm:$0xff] }
 0x522   :  { %v2409_v33 = vadd.f32 %v4261_v6, %v2334_v49  ;;  %5711 = vtanh.f32 %v7939_v0  ;;  %v2411_v35 = vadd.f32 %v4263_v40, %v2405_v59  ;;  %v8042_v6 = vpack.c.bf16 %v2973_v31, %v2969_v13  ;;  %v2975_v59 = vld [vmem:[%s8905_s2 + $0x88] sm:$0xff]  ;;  %v2981_v40 = vld [vmem:[%s8905_s2 + $0xb8] sm:$0xff]  ;;  %v2978_v45 = vld [vmem:[%s8905_s2 + $0xa0] sm:$0xff] }
 0x523   :  { %v4267_v20 = vmul.f32 -1.442695, %v2408_v44  ;;  %v8044_v16 = vpack.c.bf16 %v2970_v43, %v2966_v3  ;;  %v2972_v44 = vld [vmem:[%s8905_s2 + $0x70] sm:$0xff]  ;;  %v3007_v31 = vld [vmem:[%s8905_s2 + $0x188] sm:$0xff]  ;;  %v3009_v43 = vld [vmem:[%s8905_s2 + $0x198] sm:$0xff] }
 0x524   :  { %v4268_v27 = vmul.f32 -1.442695, %v2409_v33  ;;  %v4269_v50 = vmul.f32 -1.442695, %v2411_v35  ;;  %v8053_v49 = vpack.c.bf16 %v2972_v44, %v2968_v55  ;;  %v2979_v33 = vld [vmem:[%s8905_s2 + $0xa8] sm:$0xff]  ;;  %v2974_v35 = vld [vmem:[%s8905_s2 + $0x80] sm:$0xff] }
 0x525   :  { %5713 = vpow2.f32 %v4267_v20  ;;  %v2977_v20 = vld [vmem:[%s8905_s2 + $0x98] sm:$0xff]  ;;  %v3004_v58 = vld [vmem:[%s8905_s2 + $0x170] sm:$0xff]  ;;  %v3011_v3 = vld [vmem:[%s8905_s2 + $0x1a8] sm:$0xff] }
 0x526   :  { %5715 = vpow2.f32 %v4268_v27  ;;  %v8067_v27 = vpack.c.bf16 %v2979_v33, %v2975_v59  ;;  %v8197_v13 = vpack.c.bf16 %v3004_v58, %v3000_v26  ;;  %v8210_v55 = vpack.c.bf16 %v3011_v3, %v3007_v31  ;;  %v3013_v44 = vld [vmem:[%s8905_s2 + $0x1b8] sm:$0xff]  ;;  %v3006_v59 = vld [vmem:[%s8905_s2 + $0x180] sm:$0xff] }
 0x527   :  { %5717 = vpow2.f32 %v4269_v50  ;;  %v2976_v50 = vld [vmem:[%s8905_s2 + $0x90] sm:$0xff]  ;;  %v3010_v33 = vld [vmem:[%s8905_s2 + $0x1a0] sm:$0xff] }
 0x528   :  { %5719 = vtanh.f32 %v2410_v56  ;;  %v2980_v56 = vld [vmem:[%s8905_s2 + $0xb0] sm:$0xff] }
 0x52c   :  { %v5712_v4 = vpop.eup %5711 }
 0x52d   :  { %v2436_v32 = vmul.f32 %v5712_v4, %v5710_v8  ;;  %v8078_v8 = vpack.c.bf16 %v2981_v40, %v2977_v20  ;;  %v8080_v4 = vpack.c.bf16 %v2978_v45, %v2974_v35  ;;  %v8222_v20 = vpack.c.bf16 %v3013_v44, %v3009_v43  ;;  %v3008_v35 = vld [vmem:[%s8905_s2 + $0x190] sm:$0xff]  ;;  %v4273_v44 = vld [vmem:[%s8907_s0 + $0xb8] sm:$0xff] }
 0x52e   :  { %v8224_v40 = vpack.c.bf16 %v3010_v33, %v3006_v59  ;;  %v3012_v45 = vld [vmem:[%s8905_s2 + $0x1b0] sm:$0xff] }
 0x52f   :  { %v5714_v23 = vpop.eup %5713  ;;  %2601 = vmatmul.mubr.f32.vlgmr.msra.gmra.mrb[20].mxu0 %v2436_v32  ;;  %2672 = vmatmul.mubr.f32.vlgmr.msra.gmra.mrb[20].mxu1 %v2436_v32  ;;  %v8089_v32 = vpack.c.bf16 %v2980_v56, %v2976_v50  ;;  %v8233_v50 = vpack.c.bf16 %v3012_v45, %v3008_v35  ;;  %v3015_v56 = vld [vmem:[%s8905_s2 + $0x1c8] sm:$0xff]  ;;  %v4272_v33 = vld [vmem:[%s8907_s0 + $0xb0] sm:$0xff] }
 0x530   :  { %v5716_v2 = vpop.eup %5715  ;;  %v2441_v62 = vadd.f32 1.0, %v5714_v23  ;;  %5177 = vmatpush1.bf16.msra.mxu0 %v7632_v30  ;;  %5209 = vmatpush1.bf16.msra.mxu1 %v7634_v60  ;;  %v9007_v30 = vld [vmem:[#allocation11_spill] sm:$0xff]  ;;  %v9008_v60 = vld [vmem:[#allocation8_spill] sm:$0xff] }
 0x531   :  { %v2447_v1 = vadd.f32 1.0, %v5716_v2  ;;  %5179 = vmatprep.subr.bf16.mxu0 %v7642_v41  ;;  %5211 = vmatprep.subr.bf16.mxu1 %v7644_v39  ;;  %v9010_v41 = vld [vmem:[#allocation12_spill] sm:$0xff]  ;;  %v9011_v39 = vld [vmem:[#allocation13_spill] sm:$0xff]  ;;  %v5718_v34 = vpop.eup %5717 }
 0x532   :  { %5721 = vrcp.f32 %v2441_v62  ;;  %2816 = vmatprep.mubr.f32.mxu0 %v8964_v19  ;;  %2887 = vmatprep.mubr.f32.mxu1 %v8964_v19  ;;  %v5720_v57 = vpop.eup %5719  ;;  %v2454_v5 = vadd.f32 1.0, %v5718_v34  ;;  %v2983_v23 = vld [vmem:[%s8905_s2 + $0xc8] sm:$0xff]  ;;  %v2985_v62 = vld [vmem:[%s8905_s2 + $0xd8] sm:$0xff] }
 0x533   :  { %5723 = vrcp.f32 %v2447_v1  ;;  %v2987_v2 = vld [vmem:[%s8905_s2 + $0xe8] sm:$0xff] }
 0x534   :  { %5181 = vmatpush1.bf16.msra.mxu0 %v7666_v25  ;;  %5213 = vmatpush1.bf16.msra.mxu1 %v9005_v61  ;;  %v9012_v25 = vld [vmem:[#allocation14_spill] sm:$0xff]  ;;  %5725 = vrcp.f32 %v2454_v5  ;;  %v8103_v1 = vpack.c.bf16 %v2987_v2, %v2983_v23  ;;  %v3019_v23 = vld [vmem:[%s8905_s2 + $0x1e8] sm:$0xff] }
 0x535   :  { %5183 = vmatprep.subr.bf16.mxu0 %v9006_v37  ;;  %5215 = vmatprep.subr.bf16.mxu1 %v9007_v30  ;;  %v2989_v61 = vld [vmem:[%s8905_s2 + $0xf8] sm:$0xff]  ;;  %v2982_v37 = vld [vmem:[%s8905_s2 + $0xc0] sm:$0xff] }
 0x536   :  { %v2986_v30 = vld [vmem:[%s8905_s2 + $0xe0] sm:$0xff]  ;;  %v3017_v2 = vld [vmem:[%s8905_s2 + $0x1d8] sm:$0xff] }
 0x537   :  { %v2990_v5 = vld [vmem:[%s8905_s2 + $0x100] sm:$0xff] }
 0x538   :  { %5185 = vmatpush1.bf16.msra.mxu0 %v9008_v60  ;;  %5217 = vmatpush1.bf16.msra.mxu1 %v9009_v7  ;;  %v8114_v60 = vpack.c.bf16 %v2989_v61, %v2985_v62  ;;  %v8116_v7 = vpack.c.bf16 %v2986_v30, %v2982_v37  ;;  %v8246_v62 = vpack.c.bf16 %v3019_v23, %v3015_v56  ;;  %v3021_v61 = vld [vmem:[%s8905_s2 + $0x1f8] sm:$0xff]  ;;  %v3014_v37 = vld [vmem:[%s8905_s2 + $0x1c0] sm:$0xff] }
 0x539   :  { %5187 = vmatprep.subr.bf16.mxu0 %v9010_v41  ;;  %5219 = vmatprep.subr.bf16.mxu1 %v9011_v39  ;;  %v2984_v41 = vld [vmem:[%s8905_s2 + $0xd0] sm:$0xff]  ;;  %v3018_v30 = vld [vmem:[%s8905_s2 + $0x1e0] sm:$0xff] }
 0x53a   :  { %v2988_v39 = vld [vmem:[%s8905_s2 + $0xf0] sm:$0xff] }
 0x53b   :  { %v8125_v34 = vpack.c.bf16 %v2988_v39, %v2984_v41  ;;  %v8258_v41 = vpack.c.bf16 %v3021_v61, %v3017_v2  ;;  %v8260_v39 = vpack.c.bf16 %v3018_v30, %v3014_v37 }
 0x53c   :  { %v5722_v42 = vpop.eup %5721  ;;  %5189 = vmatpush1.bf16.msra.mxu0 %v7740_v52  ;;  %5221 = vmatpush1.bf16.msra.mxu1 %v9012_v25  ;;  %v9014_v52 = vld [vmem:[#allocation16_spill] sm:$0xff]  ;;  %v2993_v25 = vld [vmem:[%s8905_s2 + $0x118] sm:$0xff] }
 0x53d   :  { %v5724_v18 = vpop.eup %5723  ;;  %v2458_v47 = vmul.f32 %v5722_v42, %v5720_v57  ;;  %5191 = vmatprep.subr.bf16.mxu0 %v7752_v36  ;;  %5223 = vmatprep.subr.bf16.mxu1 %v7754_v28  ;;  %v9015_v36 = vld [vmem:[#allocation17_spill] sm:$0xff]  ;;  %v2991_v57 = vld [vmem:[%s8905_s2 + $0x108] sm:$0xff] }
 0x53e   :  { %v2457_v54 = vmul.f32 %v5724_v18, %v7811_v29  ;;  %v2959_v29 = vld [vmem:[%s8905_s2 + $0x8] sm:$0xff] }
 0x53f   :  { %v2995_v42 = vld [vmem:[%s8905_s2 + $0x128] sm:$0xff] }
 0x540   :  { %v7967_v17 = vadd.f32 %v2458_v47, %v2457_v54  ;;  %5193 = vmatpush1.bf16.msra.mxu0 %v7776_v53  ;;  %5225 = vmatpush1.bf16.msra.mxu1 %v7778_v15  ;;  %v5726_v15 = vpop.eup %5725  ;;  %v8139_v18 = vpack.c.bf16 %v2995_v42, %v2991_v57  ;;  %v2997_v47 = vld [vmem:[%s8905_s2 + $0x138] sm:$0xff]  ;;  %v2994_v54 = vld [vmem:[%s8905_s2 + $0x120] sm:$0xff]  ;;  %v3016_v57 = vld [vmem:[%s8905_s2 + $0x1d0] sm:$0xff] }
 0x541   :  { %5195 = vmatprep.subr.bf16.mxu0 %v9013_v38  ;;  %5227 = vmatprep.subr.bf16.mxu1 %v9014_v52  ;;  %v8150_v38 = vpack.c.bf16 %v2997_v47, %v2993_v25  ;;  %v8152_v52 = vpack.c.bf16 %v2994_v54, %v2990_v5  ;;  %v3020_v42 = vld [vmem:[%s8905_s2 + $0x1f0] sm:$0xff]  ;;  %v3175_v47 = vld [vmem:[%s8906_s3 + $0x8] sm:$0xff]  ;;  %v3177_v54 = vld [vmem:[%s8906_s3 + $0x18] sm:$0xff] }
 0x542   :  { %5727 = vtanh.f32 %v7967_v17  ;;  %v8269_v25 = vpack.c.bf16 %v3020_v42, %v3016_v57  ;;  %v3179_v5 = vld [vmem:[%s8906_s3 + $0x28] sm:$0xff] }
 0x544   :  { %5197 = vmatpush1.bf16.msra.mxu0 %v7815_v12  ;;  %5229 = vmatpush1.bf16.msra.mxu1 %v9015_v36  ;;  %v2992_v36 = vld [vmem:[%s8905_s2 + $0x110] sm:$0xff] }
 0x545   :  { %5199 = vmatprep.subr.bf16.mxu0 %v7827_v24  ;;  %5231 = vmatprep.subr.bf16.mxu1 %v7829_v11  ;;  %v2965_v24 = vld [vmem:[%s8905_s2 + $0x38] sm:$0xff]  ;;  %v2958_v11 = vld [vmem:[%s8905_s2] sm:$0xff] }
 0x548   :  { %5201 = vmatpush1.bf16.msra.mxu0 %v7852_v14  ;;  %5233 = vmatpush1.bf16.msra.mxu1 %v7854_v21  ;;  %v2962_v14 = vld [vmem:[%s8905_s2 + $0x20] sm:$0xff] }
 0x549   :  { %5203 = vmatprep.subr.bf16.mxu0 %v7861_v51  ;;  %5235 = vmatprep.subr.bf16.mxu1 %v7863_v63  ;;  %v2963_v63 = vld [vmem:[%s8905_s2 + $0x28] sm:$0xff]  ;;  %v2961_v51 = vld [vmem:[%s8905_s2 + $0x18] sm:$0xff] }
 0x54a   :  { %v7995_v12 = vpack.c.bf16 %v2963_v63, %v2959_v29  ;;  %v8006_v21 = vpack.c.bf16 %v2965_v24, %v2961_v51  ;;  %v3003_v29 = vld [vmem:[%s8905_s2 + $0x168] sm:$0xff]  ;;  %v3001_v51 = vld [vmem:[%s8905_s2 + $0x158] sm:$0xff] }
 0x54b   :  { %v3005_v24 = vld [vmem:[%s8905_s2 + $0x178] sm:$0xff] }
 0x54c   :  { %v5728_v53 = vpop.eup %5727  ;;  %5205 = vmatpush1.bf16.msra.mxu0 %v7876_v22  ;;  %5237 = vmatpush1.bf16.msra.mxu1 %v7878_v46  ;;  %v8008_v22 = vpack.c.bf16 %v2962_v14, %v2958_v11  ;;  %v2960_v46 = vld [vmem:[%s8905_s2 + $0x10] sm:$0xff]  ;;  %v2998_v11 = vld [vmem:[%s8905_s2 + $0x140] sm:$0xff] }
 0x54d   :  { %v2461_v28 = vmul.f32 %v5728_v53, %v5726_v15  ;;  %5239 = vmatprep.subr.bf16.mxu0 %v7995_v12  ;;  %v8017_v10 = vpack.c.bf16 %v2964_v9, %v2960_v46  ;;  %5271 = vmatprep.subr.bf16.mxu1 %v8006_v21  ;;  %v2996_v15 = vld [vmem:[%s8905_s2 + $0x130] sm:$0xff]  ;;  %v3002_v14 = vld [vmem:[%s8905_s2 + $0x160] sm:$0xff]  ;;  %v8187_v46 = vpack.c.bf16 %v3005_v24, %v3001_v51  ;;  %v4271_v51 = vld [vmem:[%s8907_s0 + $0xa8] sm:$0xff] }
 0x54e   :  { %v8161_v53 = vpack.c.bf16 %v2996_v15, %v2992_v36  ;;  %v8189_v9 = vpack.c.bf16 %v3002_v14, %v2998_v11  ;;  %v8282_v36 = vpack.c.bf16 %v3179_v5, %v3175_v47  ;;  %v3181_v15 = vld [vmem:[%s8906_s3 + $0x38] sm:$0xff] }
 0x54f   :  { %2817 = vmatmul.mubr.f32.vlgmr.msra.gmra.mrb[22].mxu0 %v2461_v28  ;;  %2888 = vmatmul.mubr.f32.vlgmr.msra.gmra.mrb[22].mxu1 %v2461_v28  ;;  %v2999_v28 = vld [vmem:[%s8905_s2 + $0x148] sm:$0xff] }
 0x550   :  { %3086 = vmatprep.mubr.f32.mxu0 %v8964_v19  ;;  %3157 = vmatprep.mubr.f32.mxu1 %v8964_v19  ;;  %v8172_v63 = vpack.c.bf16 %v3003_v29, %v2999_v28  ;;  %v8288_v28 = vpack.c.bf16 %v3181_v15, %v3177_v54  ;;  %v4270_v29 = vld [vmem:[%s8907_s0 + $0xa0] sm:$0xff] }
 0x551   :  { %5241 = vmatpush1.bf16.msra.mxu0 %v8008_v22  ;;  %5273 = vmatpush1.bf16.msra.mxu1 %v8017_v10  ;;  %v4274_v15 = vld [vmem:[%s8908_s1 + $0xa0] sm:$0xff] }
 0x552   :  { %5243 = vmatprep.subr.bf16.mxu0 %v8031_v48  ;;  %5275 = vmatprep.subr.bf16.mxu1 %v8042_v6 }
 0x555   :  { %5245 = vmatpush1.bf16.msra.mxu0 %v8044_v16  ;;  %5277 = vmatpush1.bf16.msra.mxu1 %v8053_v49 }
 0x556   :  { %5247 = vmatprep.subr.bf16.mxu0 %v8067_v27  ;;  %5279 = vmatprep.subr.bf16.mxu1 %v8078_v8 }
 0x559   :  { %5249 = vmatpush1.bf16.msra.mxu0 %v8080_v4  ;;  %5281 = vmatpush1.bf16.msra.mxu1 %v8089_v32 }
 0x55a   :  { %5251 = vmatprep.subr.bf16.mxu0 %v8103_v1  ;;  %5283 = vmatprep.subr.bf16.mxu1 %v8114_v60 }
 0x55d   :  { %5253 = vmatpush1.bf16.msra.mxu0 %v8116_v7  ;;  %5285 = vmatpush1.bf16.msra.mxu1 %v8125_v34 }
 0x55e   :  { %5255 = vmatprep.subr.bf16.mxu0 %v8139_v18  ;;  %5287 = vmatprep.subr.bf16.mxu1 %v8150_v38 }
 0x561   :  { %5257 = vmatpush1.bf16.msra.mxu0 %v8152_v52  ;;  %5289 = vmatpush1.bf16.msra.mxu1 %v8161_v53 }
 0x562   :  { %5259 = vmatprep.subr.bf16.mxu0 %v8172_v63  ;;  %5291 = vmatprep.subr.bf16.mxu1 %v8187_v46 }
 0x565   :  { %5261 = vmatpush1.bf16.msra.mxu0 %v8189_v9  ;;  %5293 = vmatpush1.bf16.msra.mxu1 %v8197_v13 }
 0x566   :  { %5263 = vmatprep.subr.bf16.mxu0 %v8210_v55  ;;  %5295 = vmatprep.subr.bf16.mxu1 %v8222_v20 }
 0x569   :  { %5265 = vmatpush1.bf16.msra.mxu0 %v8224_v40  ;;  %5297 = vmatpush1.bf16.msra.mxu1 %v8233_v50 }
 0x56a   :  { %5267 = vmatprep.subr.bf16.mxu0 %v8246_v62  ;;  %5299 = vmatprep.subr.bf16.mxu1 %v8258_v41 }
 0x56d   :  { %5269 = vmatpush1.bf16.msra.mxu0 %v8260_v39  ;;  %5301 = vmatpush1.bf16.msra.mxu1 %v8269_v25 }
 0x56e   :  { %5303 = vmatprep.subr.bf16.mxu0 %v8282_v36  ;;  %5335 = vmatprep.subr.bf16.mxu1 %v8288_v28 }
 0x602   :  { %v2602_v24 = vpop.f32.mrb[20].mxu0  ;;  %v2673_v11 = vpop.f32.mrb[20].mxu1 }
 0x603   :  { %v2678_v14 = vadd.f32 %v4270_v29, %v2602_v24  ;;  %v2604_v26 = vpop.f32.mrb[21].mxu0  ;;  %v2675_v58 = vpop.f32.mrb[21].mxu1  ;;  %v2680_v45 = vadd.f32 %v4272_v33, %v2673_v11  ;;  %v4275_v29 = vld [vmem:[%s8908_s1 + $0xa8] sm:$0xff]  ;;  %v3174_v33 = vld [vmem:[%s8906_s3] sm:$0xff] }
 0x604   :  { %v2679_v31 = vadd.f32 %v4271_v51, %v2604_v26  ;;  %v2681_v59 = vadd.f32 %v4273_v44, %v2675_v58  ;;  %v4276_v44 = vld [vmem:[%s8908_s1 + $0xb0] sm:$0xff] }
 0x605   :  { %v4278_v3 = vmul.f32 -1.442695, %v2678_v14 }
 0x606   :  { %v4279_v43 = vmul.f32 -1.442695, %v2679_v31  ;;  %v4280_v35 = vmul.f32 -1.442695, %v2681_v59 }
 0x607   :  { %5729 = vpow2.f32 %v4278_v3 }
 0x608   :  { %5731 = vpow2.f32 %v4279_v43  ;;  %v4277_v43 = vld [vmem:[%s8908_s1 + $0xb8] sm:$0xff] }
 0x609   :  { %5733 = vpow2.f32 %v4280_v35  ;;  %v3178_v35 = vld [vmem:[%s8906_s3 + $0x20] sm:$0xff] }
 0x60a   :  { %5735 = vtanh.f32 %v2680_v45  ;;  %v3176_v45 = vld [vmem:[%s8906_s3 + $0x10] sm:$0xff] }
 0x611   :  { %v5730_v56 = vpop.eup %5729 }
 0x612   :  { %v5732_v23 = vpop.eup %5731  ;;  %v2902_v2 = vadd.f32 1.0, %v5730_v56  ;;  %v3180_v56 = vld [vmem:[%s8906_s3 + $0x30] sm:$0xff] }
 0x613   :  { %v2908_v61 = vadd.f32 1.0, %v5732_v23  ;;  %v5734_v37 = vpop.eup %5733  ;;  %v3183_v23 = vld [vmem:[%s8906_s3 + $0x48] sm:$0xff] }
 0x614   :  { %5737 = vrcp.f32 %v2902_v2  ;;  %v5736_v30 = vpop.eup %5735  ;;  %v2915_v5 = vadd.f32 1.0, %v5734_v37  ;;  %v3187_v2 = vld [vmem:[%s8906_s3 + $0x68] sm:$0xff]  ;;  %v3189_v37 = vld [vmem:[%s8906_s3 + $0x78] sm:$0xff] }
 0x615   :  { %5739 = vrcp.f32 %v2908_v61  ;;  %v3185_v61 = vld [vmem:[%s8906_s3 + $0x58] sm:$0xff] }
 0x616   :  { %5741 = vrcp.f32 %v2915_v5  ;;  %v8346_v5 = vpack.c.bf16 %v3180_v56, %v3176_v45  ;;  %v3190_v56 = vld [vmem:[%s8906_s3 + $0x80] sm:$0xff] }
 0x61e   :  { %v5738_v57 = vpop.eup %5737 }
 0x61f   :  { %v5740_v42 = vpop.eup %5739  ;;  %v2919_v47 = vmul.f32 %v5738_v57, %v5736_v30 }
 0x620   :  { %v2918_v54 = vmul.f32 %v5740_v42, %v7939_v0  ;;  %v5742_v30 = vpop.eup %5741 }
 0x622   :  { %v8311_v51 = vadd.f32 %v2919_v47, %v2918_v54  ;;  %v2818_v24 = vpop.f32.mrb[22].mxu0  ;;  %v2889_v11 = vpop.f32.mrb[22].mxu1  ;;  %v8344_v47 = vpack.c.bf16 %v3178_v35, %v3174_v33  ;;  %v3182_v54 = vld [vmem:[%s8906_s3 + $0x40] sm:$0xff] }
 0x623   :  { %v2894_v14 = vadd.f32 %v4274_v15, %v2818_v24  ;;  %v2820_v26 = vpop.f32.mrb[23].mxu0  ;;  %v2891_v58 = vpop.f32.mrb[23].mxu1  ;;  %v3186_v15 = vld [vmem:[%s8906_s3 + $0x60] sm:$0xff] }
 0x624   :  { %v2895_v31 = vadd.f32 %v4275_v29, %v2820_v26  ;;  %5743 = vtanh.f32 %v8311_v51  ;;  %v2897_v59 = vadd.f32 %v4277_v43, %v2891_v58  ;;  %v2896_v29 = vadd.f32 %v4276_v44, %v2889_v11  ;;  %v3184_v58 = vld [vmem:[%s8906_s3 + $0x50] sm:$0xff]  ;;  %v3195_v11 = vld [vmem:[%s8906_s3 + $0xa8] sm:$0xff]  ;;  %v3197_v43 = vld [vmem:[%s8906_s3 + $0xb8] sm:$0xff] }
 0x625   :  { %v4281_v0 = vmul.f32 -1.442695, %v2894_v14  ;;  %v8354_v14 = vpack.c.bf16 %v3187_v2, %v3183_v23  ;;  %v8356_v26 = vpack.c.bf16 %v3189_v37, %v3185_v61  ;;  %v8378_v35 = vpack.c.bf16 %v3186_v15, %v3182_v54  ;;  %v3194_v23 = vld [vmem:[%s8906_s3 + $0xa0] sm:$0xff]  ;;  %v3203_v54 = vld [vmem:[%s8906_s3 + $0xe8] sm:$0xff]  ;;  %v3201_v15 = vld [vmem:[%s8906_s3 + $0xd8] sm:$0xff] }
 0x626   :  { %v4282_v3 = vmul.f32 -1.442695, %v2895_v31  ;;  %v4283_v42 = vmul.f32 -1.442695, %v2897_v59  ;;  %v3188_v31 = vld [vmem:[%s8906_s3 + $0x70] sm:$0xff] }
 0x627   :  { %5745 = vpow2.f32 %v4281_v0  ;;  %v3191_v0 = vld [vmem:[%s8906_s3 + $0x88] sm:$0xff]  ;;  %v8380_v45 = vpack.c.bf16 %v3188_v31, %v3184_v58  ;;  %v3198_v31 = vld [vmem:[%s8906_s3 + $0xc0] sm:$0xff] }
 0x628   :  { %5747 = vpow2.f32 %v4282_v3  ;;  %v3193_v3 = vld [vmem:[%s8906_s3 + $0x98] sm:$0xff]  ;;  %v8390_v61 = vpack.c.bf16 %v3195_v11, %v3191_v0  ;;  %v3202_v0 = vld [vmem:[%s8906_s3 + $0xe0] sm:$0xff] }
 0x629   :  { %5749 = vpow2.f32 %v4283_v42  ;;  %9016 = vst [vmem:[#allocation10_spill] sm:$0xff] %v8380_v45  ;;  %v8392_v37 = vpack.c.bf16 %v3197_v43, %v3193_v3  ;;  %v3199_v42 = vld [vmem:[%s8906_s3 + $0xc8] sm:$0xff]  ;;  %v3200_v43 = vld [vmem:[%s8906_s3 + $0xd0] sm:$0xff] }
 0x62a   :  { %5751 = vtanh.f32 %v2896_v29  ;;  %9017 = vst [vmem:[#allocation7_spill] sm:$0xff] %v8390_v61  ;;  %v3205_v29 = vld [vmem:[%s8906_s3 + $0xf8] sm:$0xff]  ;;  %v8428_v11 = vpack.c.bf16 %v3203_v54, %v3199_v42  ;;  %v3210_v42 = vld [vmem:[%s8906_s3 + $0x120] sm:$0xff] }
 0x62b   :  { %9018 = vst [vmem:[#allocation11_spill] sm:$0xff] %v8392_v37  ;;  %v8430_v3 = vpack.c.bf16 %v3205_v29, %v3201_v15  ;;  %v3208_v29 = vld [vmem:[%s8906_s3 + $0x110] sm:$0xff] }
 0x62c   :  { %9021 = vst [vmem:[#allocation12_spill] sm:$0xff] %v8428_v11 }
 0x62d   :  { %9022 = vst [vmem:[#allocation13_spill] sm:$0xff] %v8430_v3 }
 0x62e   :  { %v5744_v57 = vpop.eup %5743 }
 0x62f   :  { %v2922_v24 = vmul.f32 %v5744_v57, %v5742_v30  ;;  %v3192_v30 = vld [vmem:[%s8906_s3 + $0x90] sm:$0xff] }
 0x630   :  { %v3196_v57 = vld [vmem:[%s8906_s3 + $0xb0] sm:$0xff] }
 0x631   :  { %v5746_v44 = vpop.eup %5745  ;;  %3087 = vmatmul.mubr.f32.vlgmr.msra.gmra.mrb[24].mxu0 %v2922_v24  ;;  %3158 = vmatmul.mubr.f32.vlgmr.msra.gmra.mrb[24].mxu1 %v2922_v24  ;;  %v8416_v24 = vpack.c.bf16 %v3194_v23, %v3190_v56  ;;  %v8418_v58 = vpack.c.bf16 %v3196_v57, %v3192_v30  ;;  %v3209_v56 = vld [vmem:[%s8906_s3 + $0x118] sm:$0xff]  ;;  %v3206_v57 = vld [vmem:[%s8906_s3 + $0x100] sm:$0xff] }
 0x632   :  { %v5748_v59 = vpop.eup %5747  ;;  %v2927_v33 = vadd.f32 1.0, %v5746_v44  ;;  %5305 = vmatpush1.bf16.msra.mxu0 %v8344_v47  ;;  %5337 = vmatpush1.bf16.msra.mxu1 %v8346_v5  ;;  %v3204_v44 = vld [vmem:[%s8906_s3 + $0xf0] sm:$0xff]  ;;  %v3213_v23 = vld [vmem:[%s8906_s3 + $0x138] sm:$0xff] }
 0x633   :  { %v2933_v2 = vadd.f32 1.0, %v5748_v59  ;;  %5307 = vmatprep.subr.bf16.mxu0 %v8354_v14  ;;  %5339 = vmatprep.subr.bf16.mxu1 %v8356_v26  ;;  %9019 = vst [vmem:[#allocation8_spill] sm:$0xff] %v8416_v24  ;;  %9020 = vst [vmem:[#allocation9_spill] sm:$0xff] %v8418_v58  ;;  %v3207_v59 = vld [vmem:[%s8906_s3 + $0x108] sm:$0xff]  ;;  %v8454_v30 = vpack.c.bf16 %v3204_v44, %v3200_v43  ;;  %v8466_v15 = vpack.c.bf16 %v3213_v23, %v3209_v56  ;;  %v5750_v43 = vpop.eup %5749 }
 0x634   :  { %5753 = vrcp.f32 %v2927_v33  ;;  %3302 = vmatprep.mubr.f32.mxu0 %v8964_v19  ;;  %3373 = vmatprep.mubr.f32.mxu1 %v8964_v19  ;;  %v3211_v33 = vld [vmem:[%s8906_s3 + $0x128] sm:$0xff]  ;;  %v5752_v56 = vpop.eup %5751 }
 0x635   :  { %5755 = vrcp.f32 %v2933_v2  ;;  %v8452_v2 = vpack.c.bf16 %v3202_v0, %v3198_v31  ;;  %9023 = vst [vmem:[#allocation14_spill] sm:$0xff] %v8454_v30  ;;  %v8464_v54 = vpack.c.bf16 %v3211_v33, %v3207_v59  ;;  %v3212_v31 = vld [vmem:[%s8906_s3 + $0x130] sm:$0xff]  ;;  %v3215_v0 = vld [vmem:[%s8906_s3 + $0x148] sm:$0xff]  ;;  %v3217_v59 = vld [vmem:[%s8906_s3 + $0x158] sm:$0xff] }
 0x636   :  { %5309 = vmatpush1.bf16.msra.mxu0 %v8378_v35  ;;  %5341 = vmatpush1.bf16.msra.mxu1 %v8380_v45  ;;  %v3219_v44 = vld [vmem:[%s8906_s3 + $0x168] sm:$0xff]  ;;  %v3221_v33 = vld [vmem:[%s8906_s3 + $0x178] sm:$0xff]  ;;  %v2940_v45 = vadd.f32 1.0, %v5750_v43 }
 0x637   :  { %5311 = vmatprep.subr.bf16.mxu0 %v8390_v61  ;;  %5343 = vmatprep.subr.bf16.mxu1 %v8392_v37 }
 0x638   :  { %5757 = vrcp.f32 %v2940_v45  ;;  %v3231_v45 = vld [vmem:[%s8906_s3 + $0x1c8] sm:$0xff] }
 0x63a   :  { %5313 = vmatpush1.bf16.msra.mxu0 %v8416_v24  ;;  %5345 = vmatpush1.bf16.msra.mxu1 %v8418_v58  ;;  %v3214_v58 = vld [vmem:[%s8906_s3 + $0x140] sm:$0xff] }
 0x63b   :  { %5315 = vmatprep.subr.bf16.mxu0 %v8428_v11  ;;  %5347 = vmatprep.subr.bf16.mxu1 %v8430_v3  ;;  %v8488_v3 = vpack.c.bf16 %v3210_v42, %v3206_v57  ;;  %v8490_v11 = vpack.c.bf16 %v3212_v31, %v3208_v29  ;;  %v3218_v24 = vld [vmem:[%s8906_s3 + $0x160] sm:$0xff]  ;;  %v8502_v57 = vpack.c.bf16 %v3221_v33, %v3217_v59  ;;  %v3216_v42 = vld [vmem:[%s8906_s3 + $0x150] sm:$0xff]  ;;  %v3223_v31 = vld [vmem:[%s8906_s3 + $0x188] sm:$0xff] }
 0x63c   :  { %v3220_v29 = vld [vmem:[%s8906_s3 + $0x170] sm:$0xff]  ;;  %v3229_v59 = vld [vmem:[%s8906_s3 + $0x1b8] sm:$0xff] }
 0x63d   :  { %9025 = vst [vmem:[#allocation16_spill] sm:$0xff] %v8502_v57 }
 0x63e   :  { %v5754_v23 = vpop.eup %5753  ;;  %5317 = vmatpush1.bf16.msra.mxu0 %v8452_v2  ;;  %5349 = vmatpush1.bf16.msra.mxu1 %v8454_v30  ;;  %v8500_v30 = vpack.c.bf16 %v3219_v44, %v3215_v0  ;;  %v3227_v0 = vld [vmem:[%s8906_s3 + $0x1a8] sm:$0xff]  ;;  %v3225_v44 = vld [vmem:[%s8906_s3 + $0x198] sm:$0xff] }
 0x63f   :  { %v5756_v37 = vpop.eup %5755  ;;  %v2944_v61 = vmul.f32 %v5754_v23, %v5752_v56  ;;  %5319 = vmatprep.subr.bf16.mxu0 %v8464_v54  ;;  %5351 = vmatprep.subr.bf16.mxu1 %v8466_v15  ;;  %v8527_v56 = vpack.c.bf16 %v3218_v24, %v3214_v58  ;;  %v3226_v23 = vld [vmem:[%s8906_s3 + $0x1a0] sm:$0xff]  ;;  %v3224_v24 = vld [vmem:[%s8906_s3 + $0x190] sm:$0xff] }
 0x640   :  { %9024 = vst [vmem:[#allocation15_spill] sm:$0xff] %v8500_v30  ;;  %v2943_v43 = vmul.f32 %v5756_v37, %v7967_v17  ;;  %v8529_v17 = vpack.c.bf16 %v3220_v29, %v3216_v42  ;;  %v3222_v37 = vld [vmem:[%s8906_s3 + $0x180] sm:$0xff]  ;;  %v3228_v58 = vld [vmem:[%s8906_s3 + $0x1b0] sm:$0xff]  ;;  %v3235_v42 = vld [vmem:[%s8906_s3 + $0x1e8] sm:$0xff] }
 0x641   :  { %v3233_v29 = vld [vmem:[%s8906_s3 + $0x1d8] sm:$0xff] }
 0x642   :  { %v8523_v33 = vadd.f32 %v2944_v61, %v2943_v43  ;;  %5321 = vmatpush1.bf16.msra.mxu0 %v8488_v3  ;;  %5353 = vmatpush1.bf16.msra.mxu1 %v8490_v11  ;;  %9026 = vst [vmem:[#allocation17_spill] sm:$0xff] %v8529_v17  ;;  %v8539_v61 = vpack.c.bf16 %v3227_v0, %v3223_v31  ;;  %v3237_v31 = vld [vmem:[%s8906_s3 + $0x1f8] sm:$0xff] }
 0x643   :  { %5323 = vmatprep.subr.bf16.mxu0 %v8500_v30  ;;  %5355 = vmatprep.subr.bf16.mxu1 %v8502_v57  ;;  %v8541_v43 = vpack.c.bf16 %v3229_v59, %v3225_v44  ;;  %v8564_v0 = vpack.c.bf16 %v3226_v23, %v3222_v37  ;;  %v8566_v44 = vpack.c.bf16 %v3228_v58, %v3224_v24  ;;  %v3230_v59 = vld [vmem:[%s8906_s3 + $0x1c0] sm:$0xff]  ;;  %v3232_v37 = vld [vmem:[%s8906_s3 + $0x1d0] sm:$0xff] }
 0x644   :  { %5759 = vtanh.f32 %v8523_v33  ;;  %v8573_v57 = vpack.c.bf16 %v3235_v42, %v3231_v45  ;;  %v8575_v30 = vpack.c.bf16 %v3237_v31, %v3233_v29  ;;  %v3236_v23 = vld [vmem:[%s8906_s3 + $0x1f0] sm:$0xff]  ;;  %v5758_v45 = vpop.eup %5757 }
 0x645   :  { %v8590_v58 = vpack.c.bf16 %v3236_v23, %v3232_v37  ;;  %v4290_v23 = vld [vmem:[%s8908_s1 + $0xd0] sm:$0xff] }
 0x646   :  { %5325 = vmatpush1.bf16.msra.mxu0 %v8527_v56  ;;  %5357 = vmatpush1.bf16.msra.mxu1 %v8529_v17  ;;  %v3234_v17 = vld [vmem:[%s8906_s3 + $0x1e0] sm:$0xff] }
 0x647   :  { %5327 = vmatprep.subr.bf16.mxu0 %v8539_v61  ;;  %5359 = vmatprep.subr.bf16.mxu1 %v8541_v43  ;;  %v8588_v24 = vpack.c.bf16 %v3234_v17, %v3230_v59  ;;  %v4291_v59 = vld [vmem:[%s8908_s1 + $0xd8] sm:$0xff] }
 0x64a   :  { %5329 = vmatpush1.bf16.msra.mxu0 %v8564_v0  ;;  %5361 = vmatpush1.bf16.msra.mxu1 %v8566_v44 }
 0x64b   :  { %5331 = vmatprep.subr.bf16.mxu0 %v8573_v57  ;;  %5363 = vmatprep.subr.bf16.mxu1 %v8575_v30 }
 0x64e   :  { %v5760_v42 = vpop.eup %5759  ;;  %5333 = vmatpush1.bf16.msra.mxu0 %v8588_v24  ;;  %5365 = vmatpush1.bf16.msra.mxu1 %v8590_v58 }
 0x64f   :  { %v2947_v29 = vmul.f32 %v5760_v42, %v5758_v45  ;;  %5367 = vmatprep.subr.bf16.mxu0 %v7995_v12  ;;  %5399 = vmatprep.subr.bf16.mxu1 %v8006_v21  ;;  %v4284_v12 = vld [vmem:[%s8907_s0 + $0xc0] sm:$0xff]  ;;  %v4285_v21 = vld [vmem:[%s8907_s0 + $0xc8] sm:$0xff] }
 0x651   :  { %3303 = vmatmul.mubr.f32.vlgmr.msra.gmra.mrb[26].mxu0 %v2947_v29  ;;  %3374 = vmatmul.mubr.f32.vlgmr.msra.gmra.mrb[26].mxu1 %v2947_v29 }
 0x652   :  { %5369 = vmatpush1.bf16.msra.mxu0 %v8008_v22  ;;  %5401 = vmatpush1.bf16.msra.mxu1 %v8017_v10 }
 0x653   :  { %5371 = vmatprep.subr.bf16.mxu0 %v8031_v48  ;;  %5403 = vmatprep.subr.bf16.mxu1 %v8042_v6 }
 0x654   :  { %3572 = vmatprep.mubr.f32.mxu0 %v8964_v19  ;;  %3643 = vmatprep.mubr.f32.mxu1 %v8964_v19 }
 0x656   :  { %5373 = vmatpush1.bf16.msra.mxu0 %v8044_v16  ;;  %5405 = vmatpush1.bf16.msra.mxu1 %v8053_v49 }
 0x657   :  { %5375 = vmatprep.subr.bf16.mxu0 %v8067_v27  ;;  %5407 = vmatprep.subr.bf16.mxu1 %v8078_v8 }
 0x65a   :  { %5377 = vmatpush1.bf16.msra.mxu0 %v8080_v4  ;;  %5409 = vmatpush1.bf16.msra.mxu1 %v8089_v32  ;;  %v4287_v4 = vld [vmem:[%s8907_s0 + $0xd8] sm:$0xff] }
 0x65b   :  { %5379 = vmatprep.subr.bf16.mxu0 %v8103_v1  ;;  %5411 = vmatprep.subr.bf16.mxu1 %v8114_v60  ;;  %v4286_v1 = vld [vmem:[%s8907_s0 + $0xd0] sm:$0xff] }
 0x65e   :  { %5381 = vmatpush1.bf16.msra.mxu0 %v8116_v7  ;;  %5413 = vmatpush1.bf16.msra.mxu1 %v8125_v34 }
 0x65f   :  { %5383 = vmatprep.subr.bf16.mxu0 %v8139_v18  ;;  %5415 = vmatprep.subr.bf16.mxu1 %v8150_v38 }
 0x662   :  { %5385 = vmatpush1.bf16.msra.mxu0 %v8152_v52  ;;  %5417 = vmatpush1.bf16.msra.mxu1 %v8161_v53 }
 0x663   :  { %5387 = vmatprep.subr.bf16.mxu0 %v8172_v63  ;;  %5419 = vmatprep.subr.bf16.mxu1 %v8187_v46 }
 0x666   :  { %5389 = vmatpush1.bf16.msra.mxu0 %v8189_v9  ;;  %5421 = vmatpush1.bf16.msra.mxu1 %v8197_v13 }
 0x667   :  { %5391 = vmatprep.subr.bf16.mxu0 %v8210_v55  ;;  %5423 = vmatprep.subr.bf16.mxu1 %v8222_v20 }
 0x66a   :  { %5393 = vmatpush1.bf16.msra.mxu0 %v8224_v40  ;;  %5425 = vmatpush1.bf16.msra.mxu1 %v8233_v50  ;;  %v4288_v40 = vld [vmem:[%s8908_s1 + $0xc0] sm:$0xff]  ;;  %v4289_v50 = vld [vmem:[%s8908_s1 + $0xc8] sm:$0xff] }
 0x66b   :  { %5395 = vmatprep.subr.bf16.mxu0 %v8246_v62  ;;  %5427 = vmatprep.subr.bf16.mxu1 %v8258_v41 }
 0x66e   :  { %5397 = vmatpush1.bf16.msra.mxu0 %v8260_v39  ;;  %5429 = vmatpush1.bf16.msra.mxu1 %v8269_v25 }
 0x66f   :  { %5431 = vmatprep.subr.bf16.mxu0 %v8282_v36  ;;  %5463 = vmatprep.subr.bf16.mxu1 %v8288_v28 }
 0x704   :  { %v3088_v22 = vpop.f32.mrb[24].mxu0  ;;  %v3159_v10 = vpop.f32.mrb[24].mxu1 }
 0x705   :  { %v3164_v48 = vadd.f32 %v4284_v12, %v3088_v22  ;;  %v3090_v6 = vpop.f32.mrb[25].mxu0  ;;  %v3161_v16 = vpop.f32.mrb[25].mxu1  ;;  %v3166_v7 = vadd.f32 %v4286_v1, %v3159_v10 }
 0x706   :  { %v3165_v49 = vadd.f32 %v4285_v21, %v3090_v6  ;;  %v3167_v32 = vadd.f32 %v4287_v4, %v3161_v16  ;;  %v9027_v16 = vld [vmem:[#allocation10_spill] sm:$0xff] }
 0x707   :  { %v4292_v27 = vmul.f32 -1.442695, %v3164_v48 }
 0x708   :  { %v4293_v8 = vmul.f32 -1.442695, %v3165_v49  ;;  %v4294_v60 = vmul.f32 -1.442695, %v3167_v32  ;;  %v9028_v49 = vld [vmem:[#allocation7_spill] sm:$0xff] }
 0x709   :  { %5761 = vpow2.f32 %v4292_v27  ;;  %v9031_v27 = vld [vmem:[#allocation9_spill] sm:$0xff] }
 0x70a   :  { %5763 = vpow2.f32 %v4293_v8 }
 0x70b   :  { %5765 = vpow2.f32 %v4294_v60 }
 0x70c   :  { %5767 = vtanh.f32 %v3166_v7 }
 0x713   :  { %v5762_v34 = vpop.eup %5761 }
 0x714   :  { %v5764_v18 = vpop.eup %5763  ;;  %v3388_v38 = vadd.f32 1.0, %v5762_v34 }
 0x715   :  { %v3394_v52 = vadd.f32 1.0, %v5764_v18  ;;  %v5766_v53 = vpop.eup %5765 }
 0x716   :  { %5769 = vrcp.f32 %v3388_v38  ;;  %v5768_v63 = vpop.eup %5767  ;;  %v3401_v55 = vadd.f32 1.0, %v5766_v53  ;;  %v9035_v38 = vld [vmem:[#allocation15_spill] sm:$0xff]  ;;  %v3932_v53 = vld [vmem:[%s8909_s4 + $0x38] sm:$0xff] }
 0x717   :  { %5771 = vrcp.f32 %v3394_v52  ;;  %v3931_v52 = vld [vmem:[%s8909_s4 + $0x30] sm:$0xff] }
 0x718   :  { %5773 = vrcp.f32 %v3401_v55  ;;  %v3935_v55 = vld [vmem:[%s8909_s4 + $0x50] sm:$0xff] }
 0x720   :  { %v5770_v46 = vpop.eup %5769 }
 0x721   :  { %v5772_v9 = vpop.eup %5771  ;;  %v3405_v13 = vmul.f32 %v5770_v46, %v5768_v63  ;;  %v5528_v63 = vpack.c.bf16 %v3932_v53, %v3931_v52  ;;  %v3933_v46 = vld [vmem:[%s8909_s4 + $0x40] sm:$0xff] }
 0x722   :  { %v3404_v20 = vmul.f32 %v5772_v9, %v8311_v51  ;;  %v5774_v45 = vpop.eup %5773  ;;  %v3934_v9 = vld [vmem:[%s8909_s4 + $0x48] sm:$0xff] }
 0x724   :  { %v8651_v62 = vadd.f32 %v3405_v13, %v3404_v20  ;;  %v3304_v41 = vpop.f32.mrb[26].mxu0  ;;  %v3375_v39 = vpop.f32.mrb[26].mxu1  ;;  %v5531_v13 = vpack.c.bf16 %v3934_v9, %v3933_v46  ;;  %v3936_v20 = vld [vmem:[%s8909_s4 + $0x58] sm:$0xff] }
 0x725   :  { %v3380_v25 = vadd.f32 %v4288_v40, %v3304_v41  ;;  %v3306_v36 = vpop.f32.mrb[27].mxu0  ;;  %v3377_v28 = vpop.f32.mrb[27].mxu1  ;;  %v3382_v12 = vadd.f32 %v4290_v23, %v3375_v39  ;;  %v5534_v40 = vpack.c.bf16 %v3936_v20, %v3935_v55  ;;  %v3938_v41 = vld [vmem:[%s8909_s4 + $0x68] sm:$0xff] }
 0x726   :  { %v3381_v17 = vadd.f32 %v4289_v50, %v3306_v36  ;;  %5775 = vtanh.f32 %v8651_v62  ;;  %v3383_v37 = vadd.f32 %v4291_v59, %v3377_v28  ;;  %v3937_v50 = vld [vmem:[%s8909_s4 + $0x60] sm:$0xff]  ;;  %v3940_v36 = vld [vmem:[%s8909_s4 + $0x78] sm:$0xff]  ;;  %v3944_v59 = vld [vmem:[%s8910_s5 + $0x10] sm:$0xff] }
 0x727   :  { %v4295_v51 = vmul.f32 -1.442695, %v3380_v25  ;;  %v5537_v39 = vpack.c.bf16 %v3938_v41, %v3937_v50  ;;  %v3939_v25 = vld [vmem:[%s8909_s4 + $0x70] sm:$0xff]  ;;  %v4303_v55 = vld [vmem:[%s8908_s1 + $0xe8] sm:$0xff] }
 0x728   :  { %v4296_v31 = vmul.f32 -1.442695, %v3381_v17  ;;  %v4297_v29 = vmul.f32 -1.442695, %v3383_v37  ;;  %v5540_v28 = vpack.c.bf16 %v3940_v36, %v3939_v25  ;;  %v3942_v17 = vld [vmem:[%s8910_s5] sm:$0xff]  ;;  %v3945_v37 = vld [vmem:[%s8910_s5 + $0x18] sm:$0xff] }
 0x729   :  { %5777 = vpow2.f32 %v4295_v51  ;;  %v3943_v51 = vld [vmem:[%s8910_s5 + $0x8] sm:$0xff]  ;;  %v5498_v23 = vpack.c.bf16 %v3945_v37, %v3944_v59 }
 0x72a   :  { %5779 = vpow2.f32 %v4296_v31  ;;  %v5495_v31 = vpack.c.bf16 %v3943_v51, %v3942_v17 }
 0x72b   :  { %5781 = vpow2.f32 %v4297_v29 }
 0x72c   :  { %5783 = vtanh.f32 %v3382_v12  ;;  %v3948_v12 = vld [vmem:[%s8910_s5 + $0x30] sm:$0xff] }
 0x730   :  { %v5776_v42 = vpop.eup %5775 }
 0x731   :  { %v3408_v21 = vmul.f32 %v5776_v42, %v5774_v45  ;;  %v3946_v45 = vld [vmem:[%s8910_s5 + $0x20] sm:$0xff]  ;;  %v3947_v42 = vld [vmem:[%s8910_s5 + $0x28] sm:$0xff] }
 0x732   :  { %v5501_v29 = vpack.c.bf16 %v3947_v42, %v3946_v45 }
 0x733   :  { %v5778_v22 = vpop.eup %5777  ;;  %3573 = vmatmul.mubr.f32.vlgmr.msra.gmra.mrb[28].mxu0 %v3408_v21  ;;  %3644 = vmatmul.mubr.f32.vlgmr.msra.gmra.mrb[28].mxu1 %v3408_v21  ;;  %v3949_v21 = vld [vmem:[%s8910_s5 + $0x38] sm:$0xff] }
 0x734   :  { %v5780_v10 = vpop.eup %5779  ;;  %v3413_v48 = vadd.f32 1.0, %v5778_v22  ;;  %5433 = vmatpush1.bf16.msra.mxu0 %v8344_v47  ;;  %5465 = vmatpush1.bf16.msra.mxu1 %v8346_v5  ;;  %v9029_v47 = vld [vmem:[#allocation11_spill] sm:$0xff]  ;;  %v9030_v5 = vld [vmem:[#allocation8_spill] sm:$0xff]  ;;  %v5504_v22 = vpack.c.bf16 %v3949_v21, %v3948_v12 }
 0x735   :  { %v3419_v6 = vadd.f32 1.0, %v5780_v10  ;;  %5435 = vmatprep.subr.bf16.mxu0 %v8354_v14  ;;  %5467 = vmatprep.subr.bf16.mxu1 %v8356_v26  ;;  %v9032_v14 = vld [vmem:[#allocation12_spill] sm:$0xff]  ;;  %v9033_v26 = vld [vmem:[#allocation13_spill] sm:$0xff]  ;;  %v5782_v8 = vpop.eup %5781  ;;  %v3950_v10 = vld [vmem:[%s8910_s5 + $0x40] sm:$0xff] }
 0x736   :  { %5785 = vrcp.f32 %v3413_v48  ;;  %3788 = vmatprep.mubr.f32.mxu0 %v8964_v19  ;;  %3859 = vmatprep.mubr.f32.mxu1 %v8964_v19  ;;  %v5784_v4 = vpop.eup %5783  ;;  %v3426_v7 = vadd.f32 1.0, %v5782_v8  ;;  %v3951_v48 = vld [vmem:[%s8910_s5 + $0x48] sm:$0xff]  ;;  %v3957_v8 = vld [vmem:[%s8910_s5 + $0x78] sm:$0xff] }
 0x737   :  { %5787 = vrcp.f32 %v3419_v6  ;;  %v5507_v6 = vpack.c.bf16 %v3951_v48, %v3950_v10 }
 0x738   :  { %5437 = vmatpush1.bf16.msra.mxu0 %v8378_v35  ;;  %5469 = vmatpush1.bf16.msra.mxu1 %v9027_v16  ;;  %v9034_v35 = vld [vmem:[#allocation14_spill] sm:$0xff]  ;;  %5789 = vrcp.f32 %v3426_v7  ;;  %v3952_v16 = vld [vmem:[%s8910_s5 + $0x50] sm:$0xff] }
 0x739   :  { %5439 = vmatprep.subr.bf16.mxu0 %v9028_v49  ;;  %5471 = vmatprep.subr.bf16.mxu1 %v9029_v47  ;;  %v3953_v49 = vld [vmem:[%s8910_s5 + $0x58] sm:$0xff]  ;;  %v3954_v47 = vld [vmem:[%s8910_s5 + $0x60] sm:$0xff] }
 0x73c   :  { %5441 = vmatpush1.bf16.msra.mxu0 %v9030_v5  ;;  %5473 = vmatpush1.bf16.msra.mxu1 %v9031_v27  ;;  %v5510_v5 = vpack.c.bf16 %v3953_v49, %v3952_v16  ;;  %v3955_v27 = vld [vmem:[%s8910_s5 + $0x68] sm:$0xff] }
 0x73d   :  { %5443 = vmatprep.subr.bf16.mxu0 %v9032_v14  ;;  %5475 = vmatprep.subr.bf16.mxu1 %v9033_v26  ;;  %v5513_v14 = vpack.c.bf16 %v3955_v27, %v3954_v47  ;;  %v3956_v26 = vld [vmem:[%s8910_s5 + $0x70] sm:$0xff] }
 0x740   :  { %v5786_v32 = vpop.eup %5785  ;;  %5445 = vmatpush1.bf16.msra.mxu0 %v8452_v2  ;;  %5477 = vmatpush1.bf16.msra.mxu1 %v9034_v35  ;;  %v9036_v2 = vld [vmem:[#allocation16_spill] sm:$0xff] }
 0x741   :  { %v5788_v1 = vpop.eup %5787  ;;  %v3430_v60 = vmul.f32 %v5786_v32, %v5784_v4  ;;  %5447 = vmatprep.subr.bf16.mxu0 %v8464_v54  ;;  %5479 = vmatprep.subr.bf16.mxu1 %v8466_v15  ;;  %v9037_v54 = vld [vmem:[#allocation17_spill] sm:$0xff]  ;;  %v5516_v4 = vpack.c.bf16 %v3957_v8, %v3956_v26  ;;  %v4298_v32 = vld [vmem:[%s8907_s0 + $0xe0] sm:$0xff]  ;;  %v4299_v35 = vld [vmem:[%s8907_s0 + $0xe8] sm:$0xff] }
 0x742   :  { %v3429_v34 = vmul.f32 %v5788_v1, %v8523_v33  ;;  %v3925_v33 = vld [vmem:[%s8909_s4] sm:$0xff] }
 0x744   :  { %v8679_v18 = vadd.f32 %v3430_v60, %v3429_v34  ;;  %5449 = vmatpush1.bf16.msra.mxu0 %v8488_v3  ;;  %5481 = vmatpush1.bf16.msra.mxu1 %v8490_v11  ;;  %v5790_v11 = vpop.eup %5789 }
 0x745   :  { %5451 = vmatprep.subr.bf16.mxu0 %v9035_v38  ;;  %5483 = vmatprep.subr.bf16.mxu1 %v9036_v2 }
 0x746   :  { %5791 = vtanh.f32 %v8679_v18 }
 0x748   :  { %5453 = vmatpush1.bf16.msra.mxu0 %v8527_v56  ;;  %5485 = vmatpush1.bf16.msra.mxu1 %v9037_v54  ;;  %v3926_v56 = vld [vmem:[%s8909_s4 + $0x8] sm:$0xff] }
 0x749   :  { %5455 = vmatprep.subr.bf16.mxu0 %v8539_v61  ;;  %5487 = vmatprep.subr.bf16.mxu1 %v8541_v43  ;;  %v5826_v61 = vmov 0.0|0.0   ;;  %v3928_v43 = vld [vmem:[%s8909_s4 + $0x18] sm:$0xff] }
 0x74c   :  { %5457 = vmatpush1.bf16.msra.mxu0 %v8564_v0  ;;  %5489 = vmatpush1.bf16.msra.mxu1 %v8566_v44  ;;  %v3929_v44 = vld [vmem:[%s8909_s4 + $0x20] sm:$0xff] }
 0x74d   :  { %5459 = vmatprep.subr.bf16.mxu0 %v8573_v57  ;;  %5491 = vmatprep.subr.bf16.mxu1 %v8575_v30  ;;  %v5519_v57 = vpack.c.bf16 %v3926_v56, %v3925_v33  ;;  %v3927_v30 = vld [vmem:[%s8909_s4 + $0x10] sm:$0xff] }
 0x74e   :  { %v5522_v0 = vpack.c.bf16 %v3928_v43, %v3927_v30  ;;  %v4300_v33 = vld [vmem:[%s8907_s0 + $0xf0] sm:$0xff] }
 0x750   :  { %v5792_v3 = vpop.eup %5791  ;;  %5461 = vmatpush1.bf16.msra.mxu0 %v8588_v24  ;;  %5493 = vmatpush1.bf16.msra.mxu1 %v8590_v58  ;;  %v3930_v24 = vld [vmem:[%s8909_s4 + $0x28] sm:$0xff] }
 0x751   :  { %v3433_v15 = vmul.f32 %v5792_v3, %v5790_v11  ;;  %5518 = vmatprep.subr.bf16.mxu1 %v5826_v61  ;;  %5494 = vmatprep.subr.bf16.mxu0 %v5826_v61  ;;  %v5525_v58 = vpack.c.bf16 %v3930_v24, %v3929_v44  ;;  %v4301_v3 = vld [vmem:[%s8907_s0 + $0xf8] sm:$0xff] }
 0x753   :  { %3789 = vmatmul.mubr.f32.vlgmr.msra.gmra.mrb[30].mxu0 %v3433_v15  ;;  %3860 = vmatmul.mubr.f32.vlgmr.msra.gmra.mrb[30].mxu1 %v3433_v15 }
 0x754   :  { %5520 = vmatpush3.bf16.msra.mxu1 %v5519_v57  ;;  %4432 = vmatprep.mubr.msk.f32.mxu1 %vm5827_vm0, %v8964_v19 }
 0x755   :  { %5521 = vmatprep.subr.bf16.mxu1 %v5826_v61  ;;  %4397 = vmatprep.mubr.msk.f32.mxu0 %vm5827_vm0, %v8964_v19 }
 0x756   :  { %5496 = vmatpush3.bf16.msra.mxu0 %v5495_v31  ;;  %v4304_v31 = vld [vmem:[%s8908_s1 + $0xf0] sm:$0xff] }
 0x757   :  { %5497 = vmatprep.subr.bf16.mxu0 %v5826_v61 }
 0x758   :  { %5523 = vmatpush3.bf16.msra.mxu1 %v5522_v0 }
 0x759   :  { %5524 = vmatprep.subr.bf16.mxu1 %v5826_v61 }
 0x75a   :  { %5499 = vmatpush3.bf16.msra.mxu0 %v5498_v23 }
 0x75b   :  { %5500 = vmatprep.subr.bf16.mxu0 %v5826_v61 }
 0x75c   :  { %5526 = vmatpush3.bf16.msra.mxu1 %v5525_v58 }
 0x75d   :  { %5527 = vmatprep.subr.bf16.mxu1 %v5826_v61 }
 0x75e   :  { %5502 = vmatpush3.bf16.msra.mxu0 %v5501_v29 }
 0x75f   :  { %5503 = vmatprep.subr.bf16.mxu0 %v5826_v61 }
 0x760   :  { %5529 = vmatpush3.bf16.msra.mxu1 %v5528_v63 }
 0x761   :  { %5530 = vmatprep.subr.bf16.mxu1 %v5826_v61 }
 0x762   :  { %5505 = vmatpush3.bf16.msra.mxu0 %v5504_v22 }
 0x763   :  { %5506 = vmatprep.subr.bf16.mxu0 %v5826_v61 }
 0x764   :  { %5532 = vmatpush3.bf16.msra.mxu1 %v5531_v13  ;;  %v4302_v13 = vld [vmem:[%s8908_s1 + $0xe0] sm:$0xff] }
 0x765   :  { %5533 = vmatprep.subr.bf16.mxu1 %v5826_v61 }
 0x766   :  { %5508 = vmatpush3.bf16.msra.mxu0 %v5507_v6 }
 0x767   :  { %5509 = vmatprep.subr.bf16.mxu0 %v5826_v61 }
 0x768   :  { %5535 = vmatpush3.bf16.msra.mxu1 %v5534_v40 }
 0x769   :  { %5536 = vmatprep.subr.bf16.mxu1 %v5826_v61 }
 0x76a   :  { %5511 = vmatpush3.bf16.msra.mxu0 %v5510_v5 }
 0x76b   :  { %5512 = vmatprep.subr.bf16.mxu0 %v5826_v61 }
 0x76c   :  { %5538 = vmatpush3.bf16.msra.mxu1 %v5537_v39 }
 0x76d   :  { %5539 = vmatprep.subr.bf16.mxu1 %v5826_v61 }
 0x76e   :  { %5514 = vmatpush3.bf16.msra.mxu0 %v5513_v14 }
 0x76f   :  { %5515 = vmatprep.subr.bf16.mxu0 %v5826_v61 }
 0x770   :  { %5541 = vmatpush3.bf16.msra.mxu1 %v5540_v28 }
 0x772   :  { %5517 = vmatpush3.bf16.msra.mxu0 %v5516_v4  ;;  %v4109_v4 = vld [vmem:[%s8911_s7] sm:$0xff] }
 0x773   :  { %5542 = vmatprep.subr.bf16.mxu0 %v5826_v61 }
 0x806   :  { %v3574_v1 = vpop.f32.mrb[28].mxu0  ;;  %v3645_v60 = vpop.f32.mrb[28].mxu1 }
 0x807   :  { %v3650_v7 = vadd.f32 %v4298_v32, %v3574_v1  ;;  %v3576_v34 = vpop.f32.mrb[29].mxu0  ;;  %v3647_v38 = vpop.f32.mrb[29].mxu1  ;;  %v3652_v57 = vadd.f32 %v4300_v33, %v3645_v60  ;;  %v4110_v32 = vld [vmem:[%s8911_s7 + $0x8] sm:$0xff]  ;;  %v4112_v1 = vld [vmem:[%s8911_s7 + $0x18] sm:$0xff]  ;;  %v4119_v33 = vld [vmem:[%s8911_s7 + $0x50] sm:$0xff] }
 0x808   :  { %v3651_v2 = vadd.f32 %v4299_v35, %v3576_v34  ;;  %v3653_v15 = vadd.f32 %v4301_v3, %v3647_v38  ;;  %v5543_v35 = vpack.c.bf16 %v4110_v32, %v4109_v4  ;;  %v4115_v38 = vld [vmem:[%s8911_s7 + $0x30] sm:$0xff]  ;;  %v4118_v3 = vld [vmem:[%s8911_s7 + $0x48] sm:$0xff] }
 0x809   :  { %v4306_v54 = vmul.f32 -1.442695, %v3650_v7  ;;  %v4114_v7 = vld [vmem:[%s8911_s7 + $0x28] sm:$0xff] }
 0x80a   :  { %v4307_v11 = vmul.f32 -1.442695, %v3651_v2  ;;  %v4308_v56 = vmul.f32 -1.442695, %v3653_v15  ;;  %v4116_v2 = vld [vmem:[%s8911_s7 + $0x38] sm:$0xff] }
 0x80b   :  { %5793 = vpow2.f32 %v4306_v54  ;;  %v5552_v54 = vpack.c.bf16 %v4116_v2, %v4115_v38 }
 0x80c   :  { %5795 = vpow2.f32 %v4307_v11  ;;  %v4117_v11 = vld [vmem:[%s8911_s7 + $0x40] sm:$0xff] }
 0x80d   :  { %5797 = vpow2.f32 %v4308_v56  ;;  %v5555_v15 = vpack.c.bf16 %v4118_v3, %v4117_v11  ;;  %v4120_v56 = vld [vmem:[%s8911_s7 + $0x58] sm:$0xff] }
 0x80e   :  { %5799 = vtanh.f32 %v3652_v57  ;;  %v5558_v57 = vpack.c.bf16 %v4120_v56, %v4119_v33 }
 0x815   :  { %v5794_v30 = vpop.eup %5793 }
 0x816   :  { %v5796_v43 = vpop.eup %5795  ;;  %v3874_v0 = vadd.f32 1.0, %v5794_v30  ;;  %v4121_v30 = vld [vmem:[%s8911_s7 + $0x60] sm:$0xff] }
 0x817   :  { %v3880_v44 = vadd.f32 1.0, %v5796_v43  ;;  %v5798_v24 = vpop.eup %5797  ;;  %v4122_v43 = vld [vmem:[%s8911_s7 + $0x68] sm:$0xff] }
 0x818   :  { %5801 = vrcp.f32 %v3874_v0  ;;  %v5800_v58 = vpop.eup %5799  ;;  %v3887_v46 = vadd.f32 1.0, %v5798_v24  ;;  %v5561_v0 = vpack.c.bf16 %v4122_v43, %v4121_v30  ;;  %v4124_v24 = vld [vmem:[%s8911_s7 + $0x78] sm:$0xff] }
 0x819   :  { %5803 = vrcp.f32 %v3880_v44  ;;  %v4123_v44 = vld [vmem:[%s8911_s7 + $0x70] sm:$0xff] }
 0x81a   :  { %5805 = vrcp.f32 %v3887_v46 }
 0x822   :  { %v5802_v52 = vpop.eup %5801 }
 0x823   :  { %v5804_v53 = vpop.eup %5803  ;;  %v3891_v63 = vmul.f32 %v5802_v52, %v5800_v58  ;;  %v5564_v58 = vpack.c.bf16 %v4124_v24, %v4123_v44  ;;  %v14_v52 = vstv %s8912_s8 }
 0x824   :  { %v3890_v9 = vmul.f32 %v5804_v53, %v8651_v62  ;;  %v4305_v62 = vld [vmem:[%s8908_s1 + $0xf8] sm:$0xff]  ;;  %v5806_v59 = vpop.eup %5805  ;;  %15 = vst [vmem:[#allocation6] sm:$0x1] %v14_v52 }
 0x826   :  { %v3892_v20 = vadd.f32 %v3891_v63, %v3890_v9  ;;  %v3790_v40 = vpop.f32.mrb[30].mxu0  ;;  %v3861_v50 = vpop.f32.mrb[30].mxu1 }
 0x827   :  { %v3866_v41 = vadd.f32 %v4302_v13, %v3790_v40  ;;  %v3792_v39 = vpop.f32.mrb[31].mxu0  ;;  %v3863_v25 = vpop.f32.mrb[31].mxu1  ;;  %v3868_v45 = vadd.f32 %v4304_v31, %v3861_v50 }
 0x828   :  { %5807 = vtanh.f32 %v3892_v20  ;;  %v3867_v36 = vadd.f32 %v4303_v55, %v3792_v39  ;;  %v3869_v51 = vadd.f32 %v4305_v62, %v3863_v25 }
 0x829   :  { %v4309_v28 = vmul.f32 -1.442695, %v3866_v41 }
 0x82a   :  { %v4310_v17 = vmul.f32 -1.442695, %v3867_v36  ;;  %v4311_v23 = vmul.f32 -1.442695, %v3869_v51 }
 0x82b   :  { %5809 = vpow2.f32 %v4309_v28  ;;  %v4313_v50 = vld [vmem:[#allocation6] ss:$0 sm:$0xff] }
 0x82c   :  { %5811 = vpow2.f32 %v4310_v17 }
 0x82d   :  { %5813 = vpow2.f32 %v4311_v23 }
 0x82e   :  { %5815 = vtanh.f32 %v3868_v45 }
 0x832   :  { %v5808_v37 = vpop.eup %5807 }
 0x833   :  { %v3894_v42 = vmul.f32 %v5808_v37, %v5806_v59 }
 0x835   :  { %v5810_v29 = vpop.eup %5809  ;;  %4433 = vmatmul.mubr.f32.vlgmr.msra.gmra.mrb[32].mxu1 %v3894_v42 }
 0x836   :  { %v5812_v12 = vpop.eup %5811  ;;  %v3899_v21 = vadd.f32 1.0, %v5810_v29 }
 0x837   :  { %v3905_v22 = vadd.f32 1.0, %v5812_v12  ;;  %v5814_v10 = vpop.eup %5813 }
 0x838   :  { %5817 = vrcp.f32 %v3899_v21  ;;  %v5816_v48 = vpop.eup %5815  ;;  %v3912_v47 = vadd.f32 1.0, %v5814_v10 }
 0x839   :  { %5819 = vrcp.f32 %v3905_v22 }
 0x83a   :  { %5821 = vrcp.f32 %v3912_v47 }
 0x842   :  { %v5818_v6 = vpop.eup %5817 }
 0x843   :  { %v5820_v16 = vpop.eup %5819  ;;  %v3916_v49 = vmul.f32 %v5818_v6, %v5816_v48 }
 0x844   :  { %v3915_v5 = vmul.f32 %v5820_v16, %v8679_v18  ;;  %v5822_v14 = vpop.eup %5821  ;;  %v4111_v18 = vld [vmem:[%s8911_s7 + $0x10] sm:$0xff] }
 0x845   :  { %v5546_v60 = vpack.c.bf16 %v4112_v1, %v4111_v18 }
 0x846   :  { %v3917_v27 = vadd.f32 %v3916_v49, %v3915_v5 }
 0x848   :  { %5823 = vtanh.f32 %v3917_v27 }
 0x852   :  { %v5824_v26 = vpop.eup %5823 }
 0x853   :  { %v3919_v8 = vmul.f32 %v5824_v26, %v5822_v14 }
 0x855   :  { %4398 = vmatmul.mubr.f32.vlgmr.msra.gmra.mrb[32].mxu0 %v3919_v8 }
 0x856   :  { %4467 = vmatprep.mubr.msk.f32.mxu0 %vm5827_vm0, %v8964_v19  ;;  %5544 = vmatpush3.bf16.msra.mxu0 %v5543_v35  ;;  %v4113_v19 = vld [vmem:[%s8911_s7 + $0x20] sm:$0xff] }
 0x857   :  { %5545 = vmatprep.subr.bf16.mxu0 %v5826_v61  ;;  %v5549_v34 = vpack.c.bf16 %v4114_v7, %v4113_v19 }
 0x85a   :  { %5547 = vmatpush3.bf16.msra.mxu0 %v5546_v60 }
 0x85b   :  { %5548 = vmatprep.subr.bf16.mxu0 %v5826_v61 }
 0x85e   :  { %5550 = vmatpush3.bf16.msra.mxu0 %v5549_v34 }
 0x85f   :  { %5551 = vmatprep.subr.bf16.mxu0 %v5826_v61 }
 0x862   :  { %5553 = vmatpush3.bf16.msra.mxu0 %v5552_v54 }
 0x863   :  { %5554 = vmatprep.subr.bf16.mxu0 %v5826_v61 }
 0x866   :  { %5556 = vmatpush3.bf16.msra.mxu0 %v5555_v15 }
 0x867   :  { %5557 = vmatprep.subr.bf16.mxu0 %v5826_v61 }
 0x86a   :  { %5559 = vmatpush3.bf16.msra.mxu0 %v5558_v57 }
 0x86b   :  { %5560 = vmatprep.subr.bf16.mxu0 %v5826_v61 }
 0x86e   :  { %5562 = vmatpush3.bf16.msra.mxu0 %v5561_v0 }
 0x86f   :  { %5563 = vmatprep.subr.bf16.mxu0 %v5826_v61  ;;  %v4312_v61 = vld [vmem:[%s8913_s6] ss:$0 sm:$0xff] }
 0x872   :  { %5565 = vmatpush3.bf16.msra.mxu0 %v5564_v58 }
 0x908   :  { %v4094_v53 = vpop.f32.mrb[32].mxu1 }
 0x909   :  { %v4434_v63 = vpop.f32.mrb[33].mxu1 }
 0x928   :  { %v4024_v46 = vpop.f32.mrb[32].mxu0 }
 0x929   :  { %v4095_v9 = vadd.f32 %v4094_v53, %v4024_v46  ;;  %v4399_v13 = vpop.f32.mrb[33].mxu0 }
 0x92b   :  { %v4105_v55 = vadd.f32 %v4312_v61, %v4095_v9 }
 0x92d   :  { %v4107_v20 = vmul.f32 0.01, %v4105_v55  ;;  %vm4106_vm1 = vcmp.ge.f32.partialorder %v4105_v55, 0.0 }
 0x92f   :  { %v4108_v40 = vsel %vm4106_vm1, %v4105_v55, %v4107_v20 }
 0x930   :  { %4468 = vmatmul.mubr.f32.vlgmr.msra.gmra.mrb[34].mxu0 %v4108_v40 }
 0xa03   :  { %v4198_v41 = vpop.f32.mrb[34].mxu0 }
 0xa04   :  { %v4199_v39 = vadd.f32 %v4313_v50, %v4198_v41  ;;  %v4469_v25 = vpop.f32.mrb[35].mxu0 }
 0xa06   :  { %4203 = vst.msk [vmem:[%s8914_s9] sm:$0xff] %vm4202_vm2, %v4199_v39 }

</bundles_post_ra>
